<compile_context>
chip_gen: v7x
topology: tpu7x:2x2x1
jax: 0.10.0
libtpu: 0.0.40
codegen_flags: <defaults>
</compile_context>

<pallas_src>
import functools
import math

import jax
import jax.numpy as jnp
import numpy as np
from jax import lax
from jax.experimental import pallas as pl
from jax.experimental.pallas import tpu as pltpu


# ----------------------------------------------------------------------------
# Positional timing signal (constant table, plain JAX glue).
# ----------------------------------------------------------------------------
def timing_signal(length, channels, min_ts=1.0, max_ts=1.0e4):
    position = jnp.arange(length, dtype=jnp.float32)
    num_ts = channels // 2
    log_inc = math.log(max_ts / min_ts) / max(num_ts - 1, 1)
    inv = min_ts * jnp.exp(jnp.arange(num_ts, dtype=jnp.float32) * -log_inc)
    scaled = position[:, None] * inv[None, :]
    sig = jnp.concatenate([jnp.sin(scaled), jnp.cos(scaled)], axis=1)
    if channels % 2:
        sig = jnp.pad(sig, ((0, 0), (0, 1)))
    return sig  # (length, channels)


def _layer_norm(h, gamma, beta, eps=1e-5):
    mu = jnp.mean(h, axis=-1, keepdims=True)
    var = jnp.mean((h - mu) ** 2, axis=-1, keepdims=True)
    return (h - mu) * lax.rsqrt(var + eps) * gamma + beta


# ----------------------------------------------------------------------------
# Fused Pallas kernel: PosEncoder + conv stack + self-attention + FFN.
# One batch-block (bb elements, bb*L rows) per grid step; rows are NLC-flattened.
# ----------------------------------------------------------------------------
def encoder_block_kernel(
    x_ref, mask_ref, sig_ref,
    lncg_ref, lncb_ref, wtap_ref, bpw_ref,
    ln1g_ref, ln1b_ref, wqkv_ref,
    ln2g_ref, ln2b_ref, wf1_ref, bf1_ref, wf2_ref, bf2_ref,
    out_ref,
    *, conv_num, k, heads):
    f32 = jnp.float32
    bf16 = jnp.bfloat16

    M, C = x_ref.shape                    # M = Bb * L rows, C channels (lanes)
    Bb, _, L = mask_ref.shape
    d = C // heads
    pad = k // 2
    Z = heads * Bb

    # --- PosEncoder: rows are already (b, l)-flattened NLC; sig pre-tiled ---
    out = x_ref[...] + sig_ref[...]                    # (M, C) f32

    # Row index within its sequence (for conv edge masking), hoisted.
    row_l = lax.broadcasted_iota(jnp.int32, (M, 1), 0) % L

    lncg = lncg_ref[...]
    lncb = lncb_ref[...]
    bpw = bpw_ref[...]
    wtap = wtap_ref[...]                               # (conv_num, k, C, C) f32

    # --- conv blocks: LN -> (depthwise ⊗ pointwise folded) MXU taps -> relu -> +res
    for i in range(conv_num):
        res = out
        h = _layer_norm(out, lncg[i][None, :], lncb[i][None, :])   # (M, C) f32
        acc = jnp.zeros((M, C), f32)
        for j in range(k):
            sj = j - pad
            if sj == 0:
                hj = h
            else:
                # shift along rows via XLU roll, zero rows that crossed a
                # sequence boundary (replaces zero-pad concat + unaligned slices)
                hj = pltpu.roll(h, shift=(-sj) % M, axis=0)
                valid = jnp.logical_and(row_l + sj >= 0, row_l + sj < L)
                hj = jnp.where(valid, hj, 0.0)
            # W_j = diag(w_dw[i,j]) @ w_pw[i]  (folded in the wrapper), f32 MXU
            acc = acc + jnp.dot(hj, wtap[i, j], preferred_element_type=f32)
        out = jnp.maximum(acc + bpw[i][None, :], 0.0) + res

    # --- self attention: fused K|V|Q projection, all heads in one batch ---
    res = out
    h = _layer_norm(out, ln1g_ref[...], ln1b_ref[...])
    qkv = jnp.dot(h.astype(bf16), wqkv_ref[...],
                  preferred_element_type=f32)          # (M, 3C) = [K | V | Q]
    qkv16 = qkv.astype(bf16)                           # single cast, reused below

    def head_stack(base):
        # (M, C) column-sliced per head -> (heads*Bb, L, d), z = h*Bb + b
        return jnp.concatenate(
            [qkv16[:, base + hh * d: base + (hh + 1) * d].reshape(Bb, L, d)
             for hh in range(heads)], axis=0)

    kh = head_stack(0)
    vh = head_stack(C)
    qh = head_stack(2 * C)            # 1/sqrt(d) already folded into the weights

    maskb = mask_ref[...]                              # (Bb, 1, L) key mask {0,1}
    mask_z = jnp.tile(maskb, (heads, 1, 1))            # (Z, 1, L)
    neg_z = -1e30 * (1.0 - mask_z)

    logits = jnp.einsum("zqd,zkd->zqk", qh, kh,
                        preferred_element_type=f32)    # (Z, L, L)
    logits = mask_z * logits + neg_z                   # mask keys only
    m = jnp.max(logits, axis=-1, keepdims=True)
    e = jnp.exp(logits - m)
    # denominator >= 1 thanks to max-subtraction, so approx reciprocal is safe
    w = e * pl.reciprocal(jnp.sum(e, axis=-1, keepdims=True), approx=True)
    o = jnp.einsum("zqk,zkd->zqd", w.astype(bf16), vh,
                   preferred_element_type=f32)         # (Z, L, d)
    att = jnp.concatenate([o[hh * Bb:(hh + 1) * Bb] for hh in range(heads)],
                          axis=-1)                     # (Bb, L, C)
    out = att.reshape(M, C) + res

    # --- feed-forward (1x1 convs), bf16 MXU with f32 accumulation ---
    res = out
    h = _layer_norm(out, ln2g_ref[...], ln2b_ref[...])
    h1 = jnp.maximum(
        jnp.dot(h.astype(bf16), wf1_ref[...], preferred_element_type=f32)
        + bf1_ref[...], 0.0)
    h2 = jnp.dot(h1.astype(bf16), wf2_ref[...], preferred_element_type=f32) + bf2_ref[...]
    out_ref[...] = h2 + res                            # lane-dense (M, C) store


# ----------------------------------------------------------------------------
# Wrapper: weight fusion / folding + one XLA layout op each way + pallas_call.
# ----------------------------------------------------------------------------
def encoder_block(x_ncl, mask, p, *, conv_num, k, heads, block_b=None):
    B, C, L = x_ncl.shape
    assert C % heads == 0
    d = C // heads

    # One XLA transpose NCL -> NLC, flattened to (B*L, C) rows (no in-kernel
    # per-element transposes).
    x = jnp.transpose(x_ncl, (0, 2, 1)).astype(jnp.float32).reshape(B * L, C)
    mask3 = mask.reshape(B, 1, L).astype(jnp.float32)

    # Batch elements per grid step: target ~512 rows, but keep >= 2 grid steps
    # when B >= 2 so the "parallel" axis can shard across v7x's two TensorCores.
    if block_b is None:
        bb = max(1, min(B, 512 // max(L, 1)))
        if B >= 2:
            bb = min(bb, max(1, B // 2))
        while B % bb:
            bb -= 1
    else:
        bb = block_b
    grid = (B // bb,)
    mblk = bb * L

    sig = jnp.tile(timing_signal(L, C), (bb, 1))       # (bb*L, C) constant

    # Fused K|V|Q projection (Q pre-scaled by 1/sqrt(d)); bf16 matmul weights.
    w_qkv = jnp.concatenate(
        [p["w_mem"], p["w_qry"] * (float(d) ** -0.5)], axis=1).astype(jnp.bfloat16)
    # Diag-fold depthwise into pointwise: W_j[c, c'] = w_dw[j, c] * w_pw[c, c'].
    w_tap = (p["w_dw"][:, :, :, None] * p["w_pw"][:, None, :, :]).astype(jnp.float32)
    w_f1 = p["w_f1"].astype(jnp.bfloat16)
    w_f2 = p["w_f2"].astype(jnp.bfloat16)

    kern = functools.partial(encoder_block_kernel, conv_num=conv_num, k=k, heads=heads)

    def build(weight_mode):
        def wspec(shape):
            n = len(shape)
            if weight_mode is None:
                return pl.BlockSpec(shape, lambda g, _n=n: (0,) * _n)
            return pl.BlockSpec(shape, lambda g, _n=n: (0,) * _n,
                                pipeline_mode=weight_mode)

        in_specs = [
            pl.BlockSpec((mblk, C), lambda g: (g, 0)),      # x rows (NLC-flat)
            pl.BlockSpec((bb, 1, L), lambda g: (g, 0, 0)),  # key mask
            wspec((mblk, C)),                               # positional signal
            wspec((conv_num, C)), wspec((conv_num, C)),     # norm_C gamma / beta
            wspec((conv_num, k, C, C)),                     # folded conv taps
            wspec((conv_num, C)),                           # pointwise bias
            wspec((1, C)), wspec((1, C)),                   # norm_1 gamma / beta
            wspec((C, 3 * C)),                              # fused KVQ projection
            wspec((1, C)), wspec((1, C)),                   # norm_2 gamma / beta
            wspec((C, C)), wspec((1, C)),                   # FFN_1 w / b
            wspec((C, C)), wspec((1, C)),                   # FFN_2 w / b
        ]
        return pl.pallas_call(
            kern,
            grid=grid,
            in_specs=in_specs,
            out_specs=pl.BlockSpec((mblk, C), lambda g: (g, 0)),
            out_shape=jax.ShapeDtypeStruct((B * L, C), jnp.float32),
            compiler_params=pltpu.CompilerParams(
                dimension_semantics=("parallel",),
                vmem_limit_bytes=48 * 1024 * 1024),
        )

    args = (x, mask3, sig,
            p["ln_c_g"], p["ln_c_b"], w_tap, p["b_pw"],
            p["ln1_g"], p["ln1_b"], w_qkv,
            p["ln2_g"], p["ln2_b"], w_f1, p["b_f1"], w_f2, p["b_f2"])

    try:
        # Single-buffer the grid-invariant weight operands (reclaims VMEM,
        # mostly relevant on v7x's 64 MiB); fall back if pipeline_mode /
        # Buffered(1) is not supported by the installed JAX.
        out = build(pl.Buffered(1))(*args)
        out = jax.block_until_ready(out)
    except Exception:
        out = build(None)(*args)

    # One XLA layout op back to PyTorch's (B, C, L).
    return jnp.transpose(out.reshape(B, L, C), (0, 2, 1))


# ----------------------------------------------------------------------------
# Pure-JAX f32 reference (mirrors the PyTorch forward in eval mode).
# ----------------------------------------------------------------------------
def reference(x_ncl, mask, p, *, conv_num, k, heads):
    B, C, L = x_ncl.shape
    x = jnp.transpose(x_ncl, (0, 2, 1)).astype(jnp.float32)   # (B, L, C)
    out = x + timing_signal(L, C)[None]
    pad = k // 2
    d = C // heads

    for i in range(conv_num):
        res = out
        h = _layer_norm(out, p["ln_c_g"][i], p["ln_c_b"][i])
        hp = jnp.pad(h, ((0, 0), (pad, pad), (0, 0)))
        dw = sum(hp[:, j:j + L, :] * p["w_dw"][i, j] for j in range(k))
        pw = jnp.einsum("blc,cd->bld", dw, p["w_pw"][i]) + p["b_pw"][i]
        out = jax.nn.relu(pw) + res

    res = out
    h = _layer_norm(out, p["ln1_g"], p["ln1_b"])
    mem = h @ p["w_mem"]
    qry = h @ p["w_qry"]
    k_all, v_all = mem[..., :C], mem[..., C:]

    def split(t):
        return t.reshape(B, L, heads, d).transpose(0, 2, 1, 3)

    Q = split(qry) * (float(d) ** -0.5)
    K = split(k_all)
    V = split(v_all)
    logits = jnp.einsum("bhqd,bhkd->bhqk", Q, K)
    m = mask.astype(jnp.float32)[:, None, None, :]
    logits = m * logits + -1e30 * (1.0 - m)
    w = jax.nn.softmax(logits, axis=-1)
    att = jnp.einsum("bhqk,bhkd->bhqd", w, V).transpose(0, 2, 1, 3).reshape(B, L, C)
    out = att + res

    res = out
    h = _layer_norm(out, p["ln2_g"], p["ln2_b"])
    h = jax.nn.relu(h @ p["w_f1"] + p["b_f1"])
    h = h @ p["w_f2"] + p["b_f2"]
    out = h + res
    return jnp.transpose(out, (0, 2, 1))


if __name__ == "__main__":
    B, C, L = 2, 32, 16          # enc_filters = 32
    CONV_NUM, K, HEADS = 2, 5, 4

    key = jax.random.PRNGKey(0)
    ks = jax.random.split(key, 12)
    p = dict(
        ln_c_g=jnp.ones((CONV_NUM, C), jnp.float32),
        ln_c_b=jnp.zeros((CONV_NUM, C), jnp.float32),
        w_dw=jax.random.normal(ks[0], (CONV_NUM, K, C), jnp.float32) * 0.2,
        w_pw=jax.random.normal(ks[1], (CONV_NUM, C, C), jnp.float32) / math.sqrt(C),
        b_pw=jax.random.normal(ks[2], (CONV_NUM, C), jnp.float32) * 0.05,
        ln1_g=jnp.ones((1, C), jnp.float32),
        ln1_b=jnp.zeros((1, C), jnp.float32),
        w_mem=jax.random.normal(ks[3], (C, 2 * C), jnp.float32) / math.sqrt(C),
        w_qry=jax.random.normal(ks[4], (C, C), jnp.float32) / math.sqrt(C),
        ln2_g=jnp.ones((1, C), jnp.float32),
        ln2_b=jnp.zeros((1, C), jnp.float32),
        w_f1=jax.random.normal(ks[5], (C, C), jnp.float32) / math.sqrt(C),
        b_f1=jax.random.normal(ks[6], (1, C), jnp.float32) * 0.05,
        w_f2=jax.random.normal(ks[7], (C, C), jnp.float32) / math.sqrt(C),
        b_f2=jax.random.normal(ks[8], (1, C), jnp.float32) * 0.05,
    )

    x = jax.random.normal(ks[9], (B, C, L), jnp.float32)   # PyTorch NCL input
    lengths = jnp.array([L, 10])
    mask = (jnp.arange(L)[None, :] < lengths[:, None]).astype(jnp.float32)  # (B, L)

    # TODO(synk): training-mode dropout / stochastic layer_dropout is not
    # reproduced (no RNG-exact equivalent); eval-mode (identity + residual) is.
    out = encoder_block(x, mask, p, conv_num=CONV_NUM, k=K, heads=HEADS)
    out = jax.block_until_ready(out)

    ref = reference(x, mask, p, conv_num=CONV_NUM, k=K, heads=HEADS)
    # bf16 MXU inputs (f32 accumulation) + approx reciprocal => slightly looser tol.
    np.testing.assert_allclose(np.asarray(out), np.asarray(ref), rtol=5e-2, atol=5e-2)
    print("KERNEL_OK")
</pallas_src>

<mosaic_0001>
module attributes {stable_mosaic.version = 11 : i64} {
  func.func @encoder_block_kernel(%arg0: i32, %arg1: memref<16x32xf32, #tpu.memory_space<vmem>>, %arg2: memref<1x1x16xf32, #tpu.memory_space<vmem>>, %arg3: memref<16x32xf32, #tpu.memory_space<vmem>>, %arg4: memref<2x32xf32, #tpu.memory_space<vmem>>, %arg5: memref<2x32xf32, #tpu.memory_space<vmem>>, %arg6: memref<2x5x32x32xf32, #tpu.memory_space<vmem>>, %arg7: memref<2x32xf32, #tpu.memory_space<vmem>>, %arg8: memref<1x32xf32, #tpu.memory_space<vmem>>, %arg9: memref<1x32xf32, #tpu.memory_space<vmem>>, %arg10: memref<32x96xbf16, #tpu.memory_space<vmem>>, %arg11: memref<1x32xf32, #tpu.memory_space<vmem>>, %arg12: memref<1x32xf32, #tpu.memory_space<vmem>>, %arg13: memref<32x32xbf16, #tpu.memory_space<vmem>>, %arg14: memref<1x32xf32, #tpu.memory_space<vmem>>, %arg15: memref<32x32xbf16, #tpu.memory_space<vmem>>, %arg16: memref<1x32xf32, #tpu.memory_space<vmem>>, %arg17: memref<16x32xf32, #tpu.memory_space<vmem>>) attributes {dimension_semantics = [#tpu.dimension_semantics<parallel>], iteration_bounds = array<i64: 2>, scalar_prefetch = 0 : i64, scratch_operands = 0 : i64, tpu.core_type = #tpu.core_type<tc>, window_params = [{transform_indices = @transform_0, window_bounds = array<i64: 16, 32>}, {transform_indices = @transform_1, window_bounds = array<i64: 1, 1, 16>}, {pipeline_mode = #tpu.pipeline_mode<synchronous>, transform_indices = @transform_2, window_bounds = array<i64: 16, 32>}, {pipeline_mode = #tpu.pipeline_mode<synchronous>, transform_indices = @transform_3, window_bounds = array<i64: 2, 32>}, {pipeline_mode = #tpu.pipeline_mode<synchronous>, transform_indices = @transform_4, window_bounds = array<i64: 2, 32>}, {pipeline_mode = #tpu.pipeline_mode<synchronous>, transform_indices = @transform_5, window_bounds = array<i64: 2, 5, 32, 32>}, {pipeline_mode = #tpu.pipeline_mode<synchronous>, transform_indices = @transform_6, window_bounds = array<i64: 2, 32>}, {pipeline_mode = #tpu.pipeline_mode<synchronous>, transform_indices = @transform_7, window_bounds = array<i64: 1, 32>}, {pipeline_mode = #tpu.pipeline_mode<synchronous>, transform_indices = @transform_8, window_bounds = array<i64: 1, 32>}, {pipeline_mode = #tpu.pipeline_mode<synchronous>, transform_indices = @transform_9, window_bounds = array<i64: 32, 96>}, {pipeline_mode = #tpu.pipeline_mode<synchronous>, transform_indices = @transform_10, window_bounds = array<i64: 1, 32>}, {pipeline_mode = #tpu.pipeline_mode<synchronous>, transform_indices = @transform_11, window_bounds = array<i64: 1, 32>}, {pipeline_mode = #tpu.pipeline_mode<synchronous>, transform_indices = @transform_12, window_bounds = array<i64: 32, 32>}, {pipeline_mode = #tpu.pipeline_mode<synchronous>, transform_indices = @transform_13, window_bounds = array<i64: 1, 32>}, {pipeline_mode = #tpu.pipeline_mode<synchronous>, transform_indices = @transform_14, window_bounds = array<i64: 32, 32>}, {pipeline_mode = #tpu.pipeline_mode<synchronous>, transform_indices = @transform_15, window_bounds = array<i64: 1, 32>}, {transform_indices = @transform_16, window_bounds = array<i64: 16, 32>}]} {
    %c0 = arith.constant 0 : index
    %c0_0 = arith.constant 0 : index
    %0 = vector.load %arg1[%c0, %c0_0] : memref<16x32xf32, #tpu.memory_space<vmem>>, vector<16x32xf32>
    %c0_1 = arith.constant 0 : index
    %c0_2 = arith.constant 0 : index
    %1 = vector.load %arg3[%c0_1, %c0_2] : memref<16x32xf32, #tpu.memory_space<vmem>>, vector<16x32xf32>
    %2 = arith.addf %0, %1 : vector<16x32xf32>
    %3 = tpu.iota {dimensions = array<i32: 0>} : vector<16x1xi32>
    %c16_i32 = arith.constant 16 : i32
    %c0_i32 = arith.constant 0 : i32
    %4 = arith.cmpi eq, %c16_i32, %c0_i32 : i32
    %c1_i32 = arith.constant 1 : i32
    %5 = arith.select %4, %c1_i32, %c16_i32 : i32
    %6 = vector.broadcast %5 : i32 to vector<16x1xi32>
    %7 = arith.remsi %3, %6 : vector<16x1xi32>
    %c0_i32_3 = arith.constant 0 : i32
    %8 = vector.broadcast %c0_i32_3 : i32 to vector<16x1xi32>
    %9 = arith.cmpi ne, %7, %8 : vector<16x1xi32>
    %c0_i32_4 = arith.constant 0 : i32
    %10 = vector.broadcast %c0_i32_4 : i32 to vector<16x1xi32>
    %11 = arith.cmpi slt, %7, %10 : vector<16x1xi32>
    %c0_i32_5 = arith.constant 0 : i32
    %12 = arith.cmpi slt, %5, %c0_i32_5 : i32
    %13 = vector.broadcast %12 : i1 to vector<16x1xi1>
    %14 = vector.broadcast %13 : vector<16x1xi1> to vector<16x1xi1>
    %15 = arith.xori %11, %14 : vector<16x1xi1>
    %16 = arith.andi %15, %9 : vector<16x1xi1>
    %17 = vector.broadcast %5 : i32 to vector<16x1xi32>
    %18 = arith.addi %7, %17 : vector<16x1xi32>
    %19 = arith.select %16, %18, %7 : vector<16x1xi1>, vector<16x1xi32>
    %c0_6 = arith.constant 0 : index
    %c0_7 = arith.constant 0 : index
    %20 = vector.load %arg4[%c0_6, %c0_7] : memref<2x32xf32, #tpu.memory_space<vmem>>, vector<2x32xf32>
    %c0_8 = arith.constant 0 : index
    %c0_9 = arith.constant 0 : index
    %21 = vector.load %arg5[%c0_8, %c0_9] : memref<2x32xf32, #tpu.memory_space<vmem>>, vector<2x32xf32>
    %c0_10 = arith.constant 0 : index
    %c0_11 = arith.constant 0 : index
    %22 = vector.load %arg7[%c0_10, %c0_11] : memref<2x32xf32, #tpu.memory_space<vmem>>, vector<2x32xf32>
    %c0_12 = arith.constant 0 : index
    %c0_13 = arith.constant 0 : index
    %c0_14 = arith.constant 0 : index
    %c0_15 = arith.constant 0 : index
    %23 = vector.load %arg6[%c0_12, %c0_13, %c0_14, %c0_15] : memref<2x5x32x32xf32, #tpu.memory_space<vmem>>, vector<2x5x32x32xf32>
    %24 = vector.extract_strided_slice %20 {offsets = [0, 0], sizes = [1, 32], strides = [1, 1]} : vector<2x32xf32> to vector<1x32xf32>
    %25 = vector.shape_cast %24 : vector<1x32xf32> to vector<32xf32>
    %26 = vector.shape_cast %25 : vector<32xf32> to vector<1x32xf32>
    %27 = vector.extract_strided_slice %21 {offsets = [0, 0], sizes = [1, 32], strides = [1, 1]} : vector<2x32xf32> to vector<1x32xf32>
    %28 = vector.shape_cast %27 : vector<1x32xf32> to vector<32xf32>
    %29 = vector.shape_cast %28 : vector<32xf32> to vector<1x32xf32>
    %cst = arith.constant dense<0.000000e+00> : vector<16xf32>
    %30 = vector.multi_reduction <add>, %2, %cst [1] : vector<16x32xf32> to vector<16xf32>
    %31 = vector.shape_cast %30 : vector<16xf32> to vector<16x1xf32>
    %cst_16 = arith.constant 3.200000e+01 : f32
    %32 = vector.broadcast %cst_16 : f32 to vector<16x1xf32>
    %33 = arith.divf %31, %32 : vector<16x1xf32>
    %34 = vector.broadcast %33 : vector<16x1xf32> to vector<16x32xf32>
    %35 = arith.subf %2, %34 : vector<16x32xf32>
    %36 = arith.mulf %35, %35 : vector<16x32xf32>
    %cst_17 = arith.constant dense<0.000000e+00> : vector<16xf32>
    %37 = vector.multi_reduction <add>, %36, %cst_17 [1] : vector<16x32xf32> to vector<16xf32>
    %38 = vector.shape_cast %37 : vector<16xf32> to vector<16x1xf32>
    %cst_18 = arith.constant 3.200000e+01 : f32
    %39 = vector.broadcast %cst_18 : f32 to vector<16x1xf32>
    %40 = arith.divf %38, %39 : vector<16x1xf32>
    %41 = vector.broadcast %33 : vector<16x1xf32> to vector<16x32xf32>
    %42 = arith.subf %2, %41 : vector<16x32xf32>
    %cst_19 = arith.constant 9.99999974E-6 : f32
    %43 = vector.broadcast %cst_19 : f32 to vector<16x1xf32>
    %44 = arith.addf %40, %43 : vector<16x1xf32>
    %45 = math.rsqrt %44 : vector<16x1xf32>
    %46 = vector.broadcast %45 : vector<16x1xf32> to vector<16x32xf32>
    %47 = arith.mulf %42, %46 : vector<16x32xf32>
    %48 = vector.broadcast %26 : vector<1x32xf32> to vector<16x32xf32>
    %49 = arith.mulf %47, %48 : vector<16x32xf32>
    %50 = vector.broadcast %29 : vector<1x32xf32> to vector<16x32xf32>
    %51 = arith.addf %49, %50 : vector<16x32xf32>
    %cst_20 = arith.constant 0.000000e+00 : f32
    %52 = vector.broadcast %cst_20 : f32 to vector<16x32xf32>
    %c2_i32 = arith.constant 2 : i32
    %53 = tpu.dynamic_rotate %51 by %c2_i32 dim 0 : vector<16x32xf32>, i32 -> vector<16x32xf32>
    %c-2_i32 = arith.constant -2 : i32
    %54 = vector.broadcast %c-2_i32 : i32 to vector<16x1xi32>
    %55 = arith.addi %19, %54 : vector<16x1xi32>
    %c0_i32_21 = arith.constant 0 : i32
    %56 = vector.broadcast %c0_i32_21 : i32 to vector<16x1xi32>
    %57 = arith.cmpi sge, %55, %56 : vector<16x1xi32>
    %c-2_i32_22 = arith.constant -2 : i32
    %58 = vector.broadcast %c-2_i32_22 : i32 to vector<16x1xi32>
    %59 = arith.addi %19, %58 : vector<16x1xi32>
    %c16_i32_23 = arith.constant 16 : i32
    %60 = vector.broadcast %c16_i32_23 : i32 to vector<16x1xi32>
    %61 = arith.cmpi slt, %59, %60 : vector<16x1xi32>
    %62 = arith.andi %57, %61 : vector<16x1xi1>
    %cst_24 = arith.constant 0.000000e+00 : f32
    %63 = vector.shape_cast %62 : vector<16x1xi1> to vector<16x1xi1>
    %64 = vector.broadcast %63 : vector<16x1xi1> to vector<16x32xi1>
    %65 = vector.broadcast %cst_24 : f32 to vector<16x32xf32>
    %66 = arith.select %64, %53, %65 : vector<16x32xi1>, vector<16x32xf32>
    %67 = vector.extract_strided_slice %23 {offsets = [0, 0, 0, 0], sizes = [1, 1, 32, 32], strides = [1, 1, 1, 1]} : vector<2x5x32x32xf32> to vector<1x1x32x32xf32>
    %68 = vector.shape_cast %67 : vector<1x1x32x32xf32> to vector<32x32xf32>
    %cst_25 = arith.constant dense<0.000000e+00> : vector<16x32xf32>
    %69 = tpu.matmul %66, %68, %cst_25 {dimension_numbers = #tpu.dot_dimension_numbers<[1], [0], [0], [1], [0, 0, 1, 1], [], []>} : vector<16x32xf32>, vector<32x32xf32>, vector<16x32xf32> -> vector<16x32xf32>
    %70 = arith.addf %52, %69 : vector<16x32xf32>
    %c1_i32_26 = arith.constant 1 : i32
    %71 = tpu.dynamic_rotate %51 by %c1_i32_26 dim 0 : vector<16x32xf32>, i32 -> vector<16x32xf32>
    %c-1_i32 = arith.constant -1 : i32
    %72 = vector.broadcast %c-1_i32 : i32 to vector<16x1xi32>
    %73 = arith.addi %19, %72 : vector<16x1xi32>
    %c0_i32_27 = arith.constant 0 : i32
    %74 = vector.broadcast %c0_i32_27 : i32 to vector<16x1xi32>
    %75 = arith.cmpi sge, %73, %74 : vector<16x1xi32>
    %c-1_i32_28 = arith.constant -1 : i32
    %76 = vector.broadcast %c-1_i32_28 : i32 to vector<16x1xi32>
    %77 = arith.addi %19, %76 : vector<16x1xi32>
    %c16_i32_29 = arith.constant 16 : i32
    %78 = vector.broadcast %c16_i32_29 : i32 to vector<16x1xi32>
    %79 = arith.cmpi slt, %77, %78 : vector<16x1xi32>
    %80 = arith.andi %75, %79 : vector<16x1xi1>
    %cst_30 = arith.constant 0.000000e+00 : f32
    %81 = vector.shape_cast %80 : vector<16x1xi1> to vector<16x1xi1>
    %82 = vector.broadcast %81 : vector<16x1xi1> to vector<16x32xi1>
    %83 = vector.broadcast %cst_30 : f32 to vector<16x32xf32>
    %84 = arith.select %82, %71, %83 : vector<16x32xi1>, vector<16x32xf32>
    %85 = vector.extract_strided_slice %23 {offsets = [0, 1, 0, 0], sizes = [1, 1, 32, 32], strides = [1, 1, 1, 1]} : vector<2x5x32x32xf32> to vector<1x1x32x32xf32>
    %86 = vector.shape_cast %85 : vector<1x1x32x32xf32> to vector<32x32xf32>
    %cst_31 = arith.constant dense<0.000000e+00> : vector<16x32xf32>
    %87 = tpu.matmul %84, %86, %cst_31 {dimension_numbers = #tpu.dot_dimension_numbers<[1], [0], [0], [1], [0, 0, 1, 1], [], []>} : vector<16x32xf32>, vector<32x32xf32>, vector<16x32xf32> -> vector<16x32xf32>
    %88 = arith.addf %70, %87 : vector<16x32xf32>
    %89 = vector.extract_strided_slice %23 {offsets = [0, 2, 0, 0], sizes = [1, 1, 32, 32], strides = [1, 1, 1, 1]} : vector<2x5x32x32xf32> to vector<1x1x32x32xf32>
    %90 = vector.shape_cast %89 : vector<1x1x32x32xf32> to vector<32x32xf32>
    %cst_32 = arith.constant dense<0.000000e+00> : vector<16x32xf32>
    %91 = tpu.matmul %51, %90, %cst_32 {dimension_numbers = #tpu.dot_dimension_numbers<[1], [0], [0], [1], [0, 0, 1, 1], [], []>} : vector<16x32xf32>, vector<32x32xf32>, vector<16x32xf32> -> vector<16x32xf32>
    %92 = arith.addf %88, %91 : vector<16x32xf32>
    %c15_i32 = arith.constant 15 : i32
    %93 = tpu.dynamic_rotate %51 by %c15_i32 dim 0 : vector<16x32xf32>, i32 -> vector<16x32xf32>
    %c1_i32_33 = arith.constant 1 : i32
    %94 = vector.broadcast %c1_i32_33 : i32 to vector<16x1xi32>
    %95 = arith.addi %19, %94 : vector<16x1xi32>
    %c0_i32_34 = arith.constant 0 : i32
    %96 = vector.broadcast %c0_i32_34 : i32 to vector<16x1xi32>
    %97 = arith.cmpi sge, %95, %96 : vector<16x1xi32>
    %c1_i32_35 = arith.constant 1 : i32
    %98 = vector.broadcast %c1_i32_35 : i32 to vector<16x1xi32>
    %99 = arith.addi %19, %98 : vector<16x1xi32>
    %c16_i32_36 = arith.constant 16 : i32
    %100 = vector.broadcast %c16_i32_36 : i32 to vector<16x1xi32>
    %101 = arith.cmpi slt, %99, %100 : vector<16x1xi32>
    %102 = arith.andi %97, %101 : vector<16x1xi1>
    %cst_37 = arith.constant 0.000000e+00 : f32
    %103 = vector.shape_cast %102 : vector<16x1xi1> to vector<16x1xi1>
    %104 = vector.broadcast %103 : vector<16x1xi1> to vector<16x32xi1>
    %105 = vector.broadcast %cst_37 : f32 to vector<16x32xf32>
    %106 = arith.select %104, %93, %105 : vector<16x32xi1>, vector<16x32xf32>
    %107 = vector.extract_strided_slice %23 {offsets = [0, 3, 0, 0], sizes = [1, 1, 32, 32], strides = [1, 1, 1, 1]} : vector<2x5x32x32xf32> to vector<1x1x32x32xf32>
    %108 = vector.shape_cast %107 : vector<1x1x32x32xf32> to vector<32x32xf32>
    %cst_38 = arith.constant dense<0.000000e+00> : vector<16x32xf32>
    %109 = tpu.matmul %106, %108, %cst_38 {dimension_numbers = #tpu.dot_dimension_numbers<[1], [0], [0], [1], [0, 0, 1, 1], [], []>} : vector<16x32xf32>, vector<32x32xf32>, vector<16x32xf32> -> vector<16x32xf32>
    %110 = arith.addf %92, %109 : vector<16x32xf32>
    %c14_i32 = arith.constant 14 : i32
    %111 = tpu.dynamic_rotate %51 by %c14_i32 dim 0 : vector<16x32xf32>, i32 -> vector<16x32xf32>
    %c2_i32_39 = arith.constant 2 : i32
    %112 = vector.broadcast %c2_i32_39 : i32 to vector<16x1xi32>
    %113 = arith.addi %19, %112 : vector<16x1xi32>
    %c0_i32_40 = arith.constant 0 : i32
    %114 = vector.broadcast %c0_i32_40 : i32 to vector<16x1xi32>
    %115 = arith.cmpi sge, %113, %114 : vector<16x1xi32>
    %c2_i32_41 = arith.constant 2 : i32
    %116 = vector.broadcast %c2_i32_41 : i32 to vector<16x1xi32>
    %117 = arith.addi %19, %116 : vector<16x1xi32>
    %c16_i32_42 = arith.constant 16 : i32
    %118 = vector.broadcast %c16_i32_42 : i32 to vector<16x1xi32>
    %119 = arith.cmpi slt, %117, %118 : vector<16x1xi32>
    %120 = arith.andi %115, %119 : vector<16x1xi1>
    %cst_43 = arith.constant 0.000000e+00 : f32
    %121 = vector.shape_cast %120 : vector<16x1xi1> to vector<16x1xi1>
    %122 = vector.broadcast %121 : vector<16x1xi1> to vector<16x32xi1>
    %123 = vector.broadcast %cst_43 : f32 to vector<16x32xf32>
    %124 = arith.select %122, %111, %123 : vector<16x32xi1>, vector<16x32xf32>
    %125 = vector.extract_strided_slice %23 {offsets = [0, 4, 0, 0], sizes = [1, 1, 32, 32], strides = [1, 1, 1, 1]} : vector<2x5x32x32xf32> to vector<1x1x32x32xf32>
    %126 = vector.shape_cast %125 : vector<1x1x32x32xf32> to vector<32x32xf32>
    %cst_44 = arith.constant dense<0.000000e+00> : vector<16x32xf32>
    %127 = tpu.matmul %124, %126, %cst_44 {dimension_numbers = #tpu.dot_dimension_numbers<[1], [0], [0], [1], [0, 0, 1, 1], [], []>} : vector<16x32xf32>, vector<32x32xf32>, vector<16x32xf32> -> vector<16x32xf32>
    %128 = arith.addf %110, %127 : vector<16x32xf32>
    %129 = vector.extract_strided_slice %22 {offsets = [0, 0], sizes = [1, 32], strides = [1, 1]} : vector<2x32xf32> to vector<1x32xf32>
    %130 = vector.shape_cast %129 : vector<1x32xf32> to vector<32xf32>
    %131 = vector.shape_cast %130 : vector<32xf32> to vector<1x32xf32>
    %132 = vector.broadcast %131 : vector<1x32xf32> to vector<16x32xf32>
    %133 = arith.addf %128, %132 : vector<16x32xf32>
    %cst_45 = arith.constant 0.000000e+00 : f32
    %134 = vector.broadcast %cst_45 : f32 to vector<16x32xf32>
    %135 = arith.maximumf %133, %134 : vector<16x32xf32>
    %136 = arith.addf %135, %2 : vector<16x32xf32>
    %137 = vector.extract_strided_slice %20 {offsets = [1, 0], sizes = [1, 32], strides = [1, 1]} : vector<2x32xf32> to vector<1x32xf32>
    %138 = vector.shape_cast %137 : vector<1x32xf32> to vector<32xf32>
    %139 = vector.shape_cast %138 : vector<32xf32> to vector<1x32xf32>
    %140 = vector.extract_strided_slice %21 {offsets = [1, 0], sizes = [1, 32], strides = [1, 1]} : vector<2x32xf32> to vector<1x32xf32>
    %141 = vector.shape_cast %140 : vector<1x32xf32> to vector<32xf32>
    %142 = vector.shape_cast %141 : vector<32xf32> to vector<1x32xf32>
    %cst_46 = arith.constant dense<0.000000e+00> : vector<16xf32>
    %143 = vector.multi_reduction <add>, %136, %cst_46 [1] : vector<16x32xf32> to vector<16xf32>
    %144 = vector.shape_cast %143 : vector<16xf32> to vector<16x1xf32>
    %cst_47 = arith.constant 3.200000e+01 : f32
    %145 = vector.broadcast %cst_47 : f32 to vector<16x1xf32>
    %146 = arith.divf %144, %145 : vector<16x1xf32>
    %147 = vector.broadcast %146 : vector<16x1xf32> to vector<16x32xf32>
    %148 = arith.subf %136, %147 : vector<16x32xf32>
    %149 = arith.mulf %148, %148 : vector<16x32xf32>
    %cst_48 = arith.constant dense<0.000000e+00> : vector<16xf32>
    %150 = vector.multi_reduction <add>, %149, %cst_48 [1] : vector<16x32xf32> to vector<16xf32>
    %151 = vector.shape_cast %150 : vector<16xf32> to vector<16x1xf32>
    %cst_49 = arith.constant 3.200000e+01 : f32
    %152 = vector.broadcast %cst_49 : f32 to vector<16x1xf32>
    %153 = arith.divf %151, %152 : vector<16x1xf32>
    %154 = vector.broadcast %146 : vector<16x1xf32> to vector<16x32xf32>
    %155 = arith.subf %136, %154 : vector<16x32xf32>
    %cst_50 = arith.constant 9.99999974E-6 : f32
    %156 = vector.broadcast %cst_50 : f32 to vector<16x1xf32>
    %157 = arith.addf %153, %156 : vector<16x1xf32>
    %158 = math.rsqrt %157 : vector<16x1xf32>
    %159 = vector.broadcast %158 : vector<16x1xf32> to vector<16x32xf32>
    %160 = arith.mulf %155, %159 : vector<16x32xf32>
    %161 = vector.broadcast %139 : vector<1x32xf32> to vector<16x32xf32>
    %162 = arith.mulf %160, %161 : vector<16x32xf32>
    %163 = vector.broadcast %142 : vector<1x32xf32> to vector<16x32xf32>
    %164 = arith.addf %162, %163 : vector<16x32xf32>
    %cst_51 = arith.constant 0.000000e+00 : f32
    %165 = vector.broadcast %cst_51 : f32 to vector<16x32xf32>
    %c2_i32_52 = arith.constant 2 : i32
    %166 = tpu.dynamic_rotate %164 by %c2_i32_52 dim 0 : vector<16x32xf32>, i32 -> vector<16x32xf32>
    %c-2_i32_53 = arith.constant -2 : i32
    %167 = vector.broadcast %c-2_i32_53 : i32 to vector<16x1xi32>
    %168 = arith.addi %19, %167 : vector<16x1xi32>
    %c0_i32_54 = arith.constant 0 : i32
    %169 = vector.broadcast %c0_i32_54 : i32 to vector<16x1xi32>
    %170 = arith.cmpi sge, %168, %169 : vector<16x1xi32>
    %c-2_i32_55 = arith.constant -2 : i32
    %171 = vector.broadcast %c-2_i32_55 : i32 to vector<16x1xi32>
    %172 = arith.addi %19, %171 : vector<16x1xi32>
    %c16_i32_56 = arith.constant 16 : i32
    %173 = vector.broadcast %c16_i32_56 : i32 to vector<16x1xi32>
    %174 = arith.cmpi slt, %172, %173 : vector<16x1xi32>
    %175 = arith.andi %170, %174 : vector<16x1xi1>
    %cst_57 = arith.constant 0.000000e+00 : f32
    %176 = vector.shape_cast %175 : vector<16x1xi1> to vector<16x1xi1>
    %177 = vector.broadcast %176 : vector<16x1xi1> to vector<16x32xi1>
    %178 = vector.broadcast %cst_57 : f32 to vector<16x32xf32>
    %179 = arith.select %177, %166, %178 : vector<16x32xi1>, vector<16x32xf32>
    %180 = vector.extract_strided_slice %23 {offsets = [1, 0, 0, 0], sizes = [1, 1, 32, 32], strides = [1, 1, 1, 1]} : vector<2x5x32x32xf32> to vector<1x1x32x32xf32>
    %181 = vector.shape_cast %180 : vector<1x1x32x32xf32> to vector<32x32xf32>
    %cst_58 = arith.constant dense<0.000000e+00> : vector<16x32xf32>
    %182 = tpu.matmul %179, %181, %cst_58 {dimension_numbers = #tpu.dot_dimension_numbers<[1], [0], [0], [1], [0, 0, 1, 1], [], []>} : vector<16x32xf32>, vector<32x32xf32>, vector<16x32xf32> -> vector<16x32xf32>
    %183 = arith.addf %165, %182 : vector<16x32xf32>
    %c1_i32_59 = arith.constant 1 : i32
    %184 = tpu.dynamic_rotate %164 by %c1_i32_59 dim 0 : vector<16x32xf32>, i32 -> vector<16x32xf32>
    %c-1_i32_60 = arith.constant -1 : i32
    %185 = vector.broadcast %c-1_i32_60 : i32 to vector<16x1xi32>
    %186 = arith.addi %19, %185 : vector<16x1xi32>
    %c0_i32_61 = arith.constant 0 : i32
    %187 = vector.broadcast %c0_i32_61 : i32 to vector<16x1xi32>
    %188 = arith.cmpi sge, %186, %187 : vector<16x1xi32>
    %c-1_i32_62 = arith.constant -1 : i32
    %189 = vector.broadcast %c-1_i32_62 : i32 to vector<16x1xi32>
    %190 = arith.addi %19, %189 : vector<16x1xi32>
    %c16_i32_63 = arith.constant 16 : i32
    %191 = vector.broadcast %c16_i32_63 : i32 to vector<16x1xi32>
    %192 = arith.cmpi slt, %190, %191 : vector<16x1xi32>
    %193 = arith.andi %188, %192 : vector<16x1xi1>
    %cst_64 = arith.constant 0.000000e+00 : f32
    %194 = vector.shape_cast %193 : vector<16x1xi1> to vector<16x1xi1>
    %195 = vector.broadcast %194 : vector<16x1xi1> to vector<16x32xi1>
    %196 = vector.broadcast %cst_64 : f32 to vector<16x32xf32>
    %197 = arith.select %195, %184, %196 : vector<16x32xi1>, vector<16x32xf32>
    %198 = vector.extract_strided_slice %23 {offsets = [1, 1, 0, 0], sizes = [1, 1, 32, 32], strides = [1, 1, 1, 1]} : vector<2x5x32x32xf32> to vector<1x1x32x32xf32>
    %199 = vector.shape_cast %198 : vector<1x1x32x32xf32> to vector<32x32xf32>
    %cst_65 = arith.constant dense<0.000000e+00> : vector<16x32xf32>
    %200 = tpu.matmul %197, %199, %cst_65 {dimension_numbers = #tpu.dot_dimension_numbers<[1], [0], [0], [1], [0, 0, 1, 1], [], []>} : vector<16x32xf32>, vector<32x32xf32>, vector<16x32xf32> -> vector<16x32xf32>
    %201 = arith.addf %183, %200 : vector<16x32xf32>
    %202 = vector.extract_strided_slice %23 {offsets = [1, 2, 0, 0], sizes = [1, 1, 32, 32], strides = [1, 1, 1, 1]} : vector<2x5x32x32xf32> to vector<1x1x32x32xf32>
    %203 = vector.shape_cast %202 : vector<1x1x32x32xf32> to vector<32x32xf32>
    %cst_66 = arith.constant dense<0.000000e+00> : vector<16x32xf32>
    %204 = tpu.matmul %164, %203, %cst_66 {dimension_numbers = #tpu.dot_dimension_numbers<[1], [0], [0], [1], [0, 0, 1, 1], [], []>} : vector<16x32xf32>, vector<32x32xf32>, vector<16x32xf32> -> vector<16x32xf32>
    %205 = arith.addf %201, %204 : vector<16x32xf32>
    %c15_i32_67 = arith.constant 15 : i32
    %206 = tpu.dynamic_rotate %164 by %c15_i32_67 dim 0 : vector<16x32xf32>, i32 -> vector<16x32xf32>
    %c1_i32_68 = arith.constant 1 : i32
    %207 = vector.broadcast %c1_i32_68 : i32 to vector<16x1xi32>
    %208 = arith.addi %19, %207 : vector<16x1xi32>
    %c0_i32_69 = arith.constant 0 : i32
    %209 = vector.broadcast %c0_i32_69 : i32 to vector<16x1xi32>
    %210 = arith.cmpi sge, %208, %209 : vector<16x1xi32>
    %c1_i32_70 = arith.constant 1 : i32
    %211 = vector.broadcast %c1_i32_70 : i32 to vector<16x1xi32>
    %212 = arith.addi %19, %211 : vector<16x1xi32>
    %c16_i32_71 = arith.constant 16 : i32
    %213 = vector.broadcast %c16_i32_71 : i32 to vector<16x1xi32>
    %214 = arith.cmpi slt, %212, %213 : vector<16x1xi32>
    %215 = arith.andi %210, %214 : vector<16x1xi1>
    %cst_72 = arith.constant 0.000000e+00 : f32
    %216 = vector.shape_cast %215 : vector<16x1xi1> to vector<16x1xi1>
    %217 = vector.broadcast %216 : vector<16x1xi1> to vector<16x32xi1>
    %218 = vector.broadcast %cst_72 : f32 to vector<16x32xf32>
    %219 = arith.select %217, %206, %218 : vector<16x32xi1>, vector<16x32xf32>
    %220 = vector.extract_strided_slice %23 {offsets = [1, 3, 0, 0], sizes = [1, 1, 32, 32], strides = [1, 1, 1, 1]} : vector<2x5x32x32xf32> to vector<1x1x32x32xf32>
    %221 = vector.shape_cast %220 : vector<1x1x32x32xf32> to vector<32x32xf32>
    %cst_73 = arith.constant dense<0.000000e+00> : vector<16x32xf32>
    %222 = tpu.matmul %219, %221, %cst_73 {dimension_numbers = #tpu.dot_dimension_numbers<[1], [0], [0], [1], [0, 0, 1, 1], [], []>} : vector<16x32xf32>, vector<32x32xf32>, vector<16x32xf32> -> vector<16x32xf32>
    %223 = arith.addf %205, %222 : vector<16x32xf32>
    %c14_i32_74 = arith.constant 14 : i32
    %224 = tpu.dynamic_rotate %164 by %c14_i32_74 dim 0 : vector<16x32xf32>, i32 -> vector<16x32xf32>
    %c2_i32_75 = arith.constant 2 : i32
    %225 = vector.broadcast %c2_i32_75 : i32 to vector<16x1xi32>
    %226 = arith.addi %19, %225 : vector<16x1xi32>
    %c0_i32_76 = arith.constant 0 : i32
    %227 = vector.broadcast %c0_i32_76 : i32 to vector<16x1xi32>
    %228 = arith.cmpi sge, %226, %227 : vector<16x1xi32>
    %c2_i32_77 = arith.constant 2 : i32
    %229 = vector.broadcast %c2_i32_77 : i32 to vector<16x1xi32>
    %230 = arith.addi %19, %229 : vector<16x1xi32>
    %c16_i32_78 = arith.constant 16 : i32
    %231 = vector.broadcast %c16_i32_78 : i32 to vector<16x1xi32>
    %232 = arith.cmpi slt, %230, %231 : vector<16x1xi32>
    %233 = arith.andi %228, %232 : vector<16x1xi1>
    %cst_79 = arith.constant 0.000000e+00 : f32
    %234 = vector.shape_cast %233 : vector<16x1xi1> to vector<16x1xi1>
    %235 = vector.broadcast %234 : vector<16x1xi1> to vector<16x32xi1>
    %236 = vector.broadcast %cst_79 : f32 to vector<16x32xf32>
    %237 = arith.select %235, %224, %236 : vector<16x32xi1>, vector<16x32xf32>
    %238 = vector.extract_strided_slice %23 {offsets = [1, 4, 0, 0], sizes = [1, 1, 32, 32], strides = [1, 1, 1, 1]} : vector<2x5x32x32xf32> to vector<1x1x32x32xf32>
    %239 = vector.shape_cast %238 : vector<1x1x32x32xf32> to vector<32x32xf32>
    %cst_80 = arith.constant dense<0.000000e+00> : vector<16x32xf32>
    %240 = tpu.matmul %237, %239, %cst_80 {dimension_numbers = #tpu.dot_dimension_numbers<[1], [0], [0], [1], [0, 0, 1, 1], [], []>} : vector<16x32xf32>, vector<32x32xf32>, vector<16x32xf32> -> vector<16x32xf32>
    %241 = arith.addf %223, %240 : vector<16x32xf32>
    %242 = vector.extract_strided_slice %22 {offsets = [1, 0], sizes = [1, 32], strides = [1, 1]} : vector<2x32xf32> to vector<1x32xf32>
    %243 = vector.shape_cast %242 : vector<1x32xf32> to vector<32xf32>
    %244 = vector.shape_cast %243 : vector<32xf32> to vector<1x32xf32>
    %245 = vector.broadcast %244 : vector<1x32xf32> to vector<16x32xf32>
    %246 = arith.addf %241, %245 : vector<16x32xf32>
    %cst_81 = arith.constant 0.000000e+00 : f32
    %247 = vector.broadcast %cst_81 : f32 to vector<16x32xf32>
    %248 = arith.maximumf %246, %247 : vector<16x32xf32>
    %249 = arith.addf %248, %136 : vector<16x32xf32>
    %c0_82 = arith.constant 0 : index
    %c0_83 = arith.constant 0 : index
    %250 = vector.load %arg8[%c0_82, %c0_83] : memref<1x32xf32, #tpu.memory_space<vmem>>, vector<1x32xf32>
    %c0_84 = arith.constant 0 : index
    %c0_85 = arith.constant 0 : index
    %251 = vector.load %arg9[%c0_84, %c0_85] : memref<1x32xf32, #tpu.memory_space<vmem>>, vector<1x32xf32>
    %cst_86 = arith.constant dense<0.000000e+00> : vector<16xf32>
    %252 = vector.multi_reduction <add>, %249, %cst_86 [1] : vector<16x32xf32> to vector<16xf32>
    %253 = vector.shape_cast %252 : vector<16xf32> to vector<16x1xf32>
    %cst_87 = arith.constant 3.200000e+01 : f32
    %254 = vector.broadcast %cst_87 : f32 to vector<16x1xf32>
    %255 = arith.divf %253, %254 : vector<16x1xf32>
    %256 = vector.broadcast %255 : vector<16x1xf32> to vector<16x32xf32>
    %257 = arith.subf %249, %256 : vector<16x32xf32>
    %258 = arith.mulf %257, %257 : vector<16x32xf32>
    %cst_88 = arith.constant dense<0.000000e+00> : vector<16xf32>
    %259 = vector.multi_reduction <add>, %258, %cst_88 [1] : vector<16x32xf32> to vector<16xf32>
    %260 = vector.shape_cast %259 : vector<16xf32> to vector<16x1xf32>
    %cst_89 = arith.constant 3.200000e+01 : f32
    %261 = vector.broadcast %cst_89 : f32 to vector<16x1xf32>
    %262 = arith.divf %260, %261 : vector<16x1xf32>
    %263 = vector.broadcast %255 : vector<16x1xf32> to vector<16x32xf32>
    %264 = arith.subf %249, %263 : vector<16x32xf32>
    %cst_90 = arith.constant 9.99999974E-6 : f32
    %265 = vector.broadcast %cst_90 : f32 to vector<16x1xf32>
    %266 = arith.addf %262, %265 : vector<16x1xf32>
    %267 = math.rsqrt %266 : vector<16x1xf32>
    %268 = vector.broadcast %267 : vector<16x1xf32> to vector<16x32xf32>
    %269 = arith.mulf %264, %268 : vector<16x32xf32>
    %270 = vector.broadcast %250 : vector<1x32xf32> to vector<16x32xf32>
    %271 = arith.mulf %269, %270 : vector<16x32xf32>
    %272 = vector.broadcast %251 : vector<1x32xf32> to vector<16x32xf32>
    %273 = arith.addf %271, %272 : vector<16x32xf32>
    %274 = arith.truncf %273 : vector<16x32xf32> to vector<16x32xbf16>
    %c0_91 = arith.constant 0 : index
    %c0_92 = arith.constant 0 : index
    %275 = vector.load %arg10[%c0_91, %c0_92] : memref<32x96xbf16, #tpu.memory_space<vmem>>, vector<32x96xbf16>
    %cst_93 = arith.constant dense<0.000000e+00> : vector<16x96xf32>
    %276 = tpu.matmul %274, %275, %cst_93 {dimension_numbers = #tpu.dot_dimension_numbers<[1], [0], [0], [1], [0, 0, 1, 1], [], []>} : vector<16x32xbf16>, vector<32x96xbf16>, vector<16x96xf32> -> vector<16x96xf32>
    %277 = arith.truncf %276 : vector<16x96xf32> to vector<16x96xbf16>
    %278 = vector.extract_strided_slice %277 {offsets = [0, 0], sizes = [16, 8], strides = [1, 1]} : vector<16x96xbf16> to vector<16x8xbf16>
    %279 = vector.shape_cast %278 : vector<16x8xbf16> to vector<1x16x8xbf16>
    %280 = vector.extract_strided_slice %277 {offsets = [0, 8], sizes = [16, 8], strides = [1, 1]} : vector<16x96xbf16> to vector<16x8xbf16>
    %281 = vector.shape_cast %280 : vector<16x8xbf16> to vector<1x16x8xbf16>
    %282 = vector.extract_strided_slice %277 {offsets = [0, 16], sizes = [16, 8], strides = [1, 1]} : vector<16x96xbf16> to vector<16x8xbf16>
    %283 = vector.shape_cast %282 : vector<16x8xbf16> to vector<1x16x8xbf16>
    %284 = vector.extract_strided_slice %277 {offsets = [0, 24], sizes = [16, 8], strides = [1, 1]} : vector<16x96xbf16> to vector<16x8xbf16>
    %285 = vector.shape_cast %284 : vector<16x8xbf16> to vector<1x16x8xbf16>
    %286 = tpu.concatenate %279, %281, %283, %285 in 0 : vector<1x16x8xbf16>, vector<1x16x8xbf16>, vector<1x16x8xbf16>, vector<1x16x8xbf16> -> vector<4x16x8xbf16>
    %287 = vector.extract_strided_slice %277 {offsets = [0, 32], sizes = [16, 8], strides = [1, 1]} : vector<16x96xbf16> to vector<16x8xbf16>
    %288 = vector.shape_cast %287 : vector<16x8xbf16> to vector<1x16x8xbf16>
    %289 = vector.extract_strided_slice %277 {offsets = [0, 40], sizes = [16, 8], strides = [1, 1]} : vector<16x96xbf16> to vector<16x8xbf16>
    %290 = vector.shape_cast %289 : vector<16x8xbf16> to vector<1x16x8xbf16>
    %291 = vector.extract_strided_slice %277 {offsets = [0, 48], sizes = [16, 8], strides = [1, 1]} : vector<16x96xbf16> to vector<16x8xbf16>
    %292 = vector.shape_cast %291 : vector<16x8xbf16> to vector<1x16x8xbf16>
    %293 = vector.extract_strided_slice %277 {offsets = [0, 56], sizes = [16, 8], strides = [1, 1]} : vector<16x96xbf16> to vector<16x8xbf16>
    %294 = vector.shape_cast %293 : vector<16x8xbf16> to vector<1x16x8xbf16>
    %295 = tpu.concatenate %288, %290, %292, %294 in 0 : vector<1x16x8xbf16>, vector<1x16x8xbf16>, vector<1x16x8xbf16>, vector<1x16x8xbf16> -> vector<4x16x8xbf16>
    %296 = vector.extract_strided_slice %277 {offsets = [0, 64], sizes = [16, 8], strides = [1, 1]} : vector<16x96xbf16> to vector<16x8xbf16>
    %297 = vector.shape_cast %296 : vector<16x8xbf16> to vector<1x16x8xbf16>
    %298 = vector.extract_strided_slice %277 {offsets = [0, 72], sizes = [16, 8], strides = [1, 1]} : vector<16x96xbf16> to vector<16x8xbf16>
    %299 = vector.shape_cast %298 : vector<16x8xbf16> to vector<1x16x8xbf16>
    %300 = vector.extract_strided_slice %277 {offsets = [0, 80], sizes = [16, 8], strides = [1, 1]} : vector<16x96xbf16> to vector<16x8xbf16>
    %301 = vector.shape_cast %300 : vector<16x8xbf16> to vector<1x16x8xbf16>
    %302 = vector.extract_strided_slice %277 {offsets = [0, 88], sizes = [16, 8], strides = [1, 1]} : vector<16x96xbf16> to vector<16x8xbf16>
    %303 = vector.shape_cast %302 : vector<16x8xbf16> to vector<1x16x8xbf16>
    %304 = tpu.concatenate %297, %299, %301, %303 in 0 : vector<1x16x8xbf16>, vector<1x16x8xbf16>, vector<1x16x8xbf16>, vector<1x16x8xbf16> -> vector<4x16x8xbf16>
    %c0_94 = arith.constant 0 : index
    %c0_95 = arith.constant 0 : index
    %c0_96 = arith.constant 0 : index
    %305 = vector.load %arg2[%c0_94, %c0_95, %c0_96] : memref<1x1x16xf32, #tpu.memory_space<vmem>>, vector<1x1x16xf32>
    %306 = tpu.concatenate %305, %305, %305, %305 in 0 : vector<1x1x16xf32>, vector<1x1x16xf32>, vector<1x1x16xf32>, vector<1x1x16xf32> -> vector<4x1x16xf32>
    %cst_97 = arith.constant 1.000000e+00 : f32
    %307 = vector.broadcast %cst_97 : f32 to vector<4x1x16xf32>
    %308 = arith.subf %307, %306 : vector<4x1x16xf32>
    %cst_98 = arith.constant -1.000000e+30 : f32
    %309 = vector.broadcast %cst_98 : f32 to vector<4x1x16xf32>
    %310 = arith.mulf %309, %308 : vector<4x1x16xf32>
    "tpu.trace_start"() <{level = 10 : i32, message = "zqd,zkd->zqk"}> : () -> ()
    %cst_99 = arith.constant dense<0.000000e+00> : vector<4x16x16xf32>
    %311 = tpu.matmul %304, %286, %cst_99 {dimension_numbers = #tpu.dot_dimension_numbers<[2], [2], [1], [1], [0, 0, 0, 1, 1, 1], [0], [0]>} : vector<4x16x8xbf16>, vector<4x16x8xbf16>, vector<4x16x16xf32> -> vector<4x16x16xf32>
    "tpu.trace_stop"() : () -> ()
    %312 = vector.broadcast %306 : vector<4x1x16xf32> to vector<4x16x16xf32>
    %313 = arith.mulf %312, %311 : vector<4x16x16xf32>
    %314 = vector.broadcast %310 : vector<4x1x16xf32> to vector<4x16x16xf32>
    %315 = arith.addf %313, %314 : vector<4x16x16xf32>
    %cst_100 = arith.constant dense<0xFF800000> : vector<4x16xf32>
    %316 = vector.multi_reduction <maximumf>, %315, %cst_100 [2] : vector<4x16x16xf32> to vector<4x16xf32>
    %317 = vector.shape_cast %316 : vector<4x16xf32> to vector<4x16x1xf32>
    %318 = vector.broadcast %317 : vector<4x16x1xf32> to vector<4x16x16xf32>
    %319 = arith.subf %315, %318 : vector<4x16x16xf32>
    %320 = math.exp %319 : vector<4x16x16xf32>
    %cst_101 = arith.constant dense<0.000000e+00> : vector<4x16xf32>
    %321 = vector.multi_reduction <add>, %320, %cst_101 [2] : vector<4x16x16xf32> to vector<4x16xf32>
    %322 = vector.shape_cast %321 : vector<4x16xf32> to vector<4x16x1xf32>
    %323 = tpu.reciprocal %322 {approx = true} : vector<4x16x1xf32> -> vector<4x16x1xf32>
    %324 = vector.broadcast %323 : vector<4x16x1xf32> to vector<4x16x16xf32>
    %325 = arith.mulf %320, %324 : vector<4x16x16xf32>
    %326 = arith.truncf %325 : vector<4x16x16xf32> to vector<4x16x16xbf16>
    "tpu.trace_start"() <{level = 10 : i32, message = "zqk,zkd->zqd"}> : () -> ()
    %cst_102 = arith.constant dense<0.000000e+00> : vector<4x16x8xf32>
    %327 = tpu.matmul %326, %295, %cst_102 {dimension_numbers = #tpu.dot_dimension_numbers<[2], [1], [1], [2], [0, 0, 0, 1, 1, 2], [0], [0]>} : vector<4x16x16xbf16>, vector<4x16x8xbf16>, vector<4x16x8xf32> -> vector<4x16x8xf32>
    "tpu.trace_stop"() : () -> ()
    %328 = vector.extract_strided_slice %327 {offsets = [0, 0, 0], sizes = [1, 16, 8], strides = [1, 1, 1]} : vector<4x16x8xf32> to vector<1x16x8xf32>
    %329 = vector.extract_strided_slice %327 {offsets = [1, 0, 0], sizes = [1, 16, 8], strides = [1, 1, 1]} : vector<4x16x8xf32> to vector<1x16x8xf32>
    %330 = vector.extract_strided_slice %327 {offsets = [2, 0, 0], sizes = [1, 16, 8], strides = [1, 1, 1]} : vector<4x16x8xf32> to vector<1x16x8xf32>
    %331 = vector.extract_strided_slice %327 {offsets = [3, 0, 0], sizes = [1, 16, 8], strides = [1, 1, 1]} : vector<4x16x8xf32> to vector<1x16x8xf32>
    %332 = tpu.concatenate %328, %329, %330, %331 in 2 : vector<1x16x8xf32>, vector<1x16x8xf32>, vector<1x16x8xf32>, vector<1x16x8xf32> -> vector<1x16x32xf32>
    %333 = vector.shape_cast %332 : vector<1x16x32xf32> to vector<16x32xf32>
    %334 = arith.addf %333, %249 : vector<16x32xf32>
    %c0_103 = arith.constant 0 : index
    %c0_104 = arith.constant 0 : index
    %335 = vector.load %arg11[%c0_103, %c0_104] : memref<1x32xf32, #tpu.memory_space<vmem>>, vector<1x32xf32>
    %c0_105 = arith.constant 0 : index
    %c0_106 = arith.constant 0 : index
    %336 = vector.load %arg12[%c0_105, %c0_106] : memref<1x32xf32, #tpu.memory_space<vmem>>, vector<1x32xf32>
    %cst_107 = arith.constant dense<0.000000e+00> : vector<16xf32>
    %337 = vector.multi_reduction <add>, %334, %cst_107 [1] : vector<16x32xf32> to vector<16xf32>
    %338 = vector.shape_cast %337 : vector<16xf32> to vector<16x1xf32>
    %cst_108 = arith.constant 3.200000e+01 : f32
    %339 = vector.broadcast %cst_108 : f32 to vector<16x1xf32>
    %340 = arith.divf %338, %339 : vector<16x1xf32>
    %341 = vector.broadcast %340 : vector<16x1xf32> to vector<16x32xf32>
    %342 = arith.subf %334, %341 : vector<16x32xf32>
    %343 = arith.mulf %342, %342 : vector<16x32xf32>
    %cst_109 = arith.constant dense<0.000000e+00> : vector<16xf32>
    %344 = vector.multi_reduction <add>, %343, %cst_109 [1] : vector<16x32xf32> to vector<16xf32>
    %345 = vector.shape_cast %344 : vector<16xf32> to vector<16x1xf32>
    %cst_110 = arith.constant 3.200000e+01 : f32
    %346 = vector.broadcast %cst_110 : f32 to vector<16x1xf32>
    %347 = arith.divf %345, %346 : vector<16x1xf32>
    %348 = vector.broadcast %340 : vector<16x1xf32> to vector<16x32xf32>
    %349 = arith.subf %334, %348 : vector<16x32xf32>
    %cst_111 = arith.constant 9.99999974E-6 : f32
    %350 = vector.broadcast %cst_111 : f32 to vector<16x1xf32>
    %351 = arith.addf %347, %350 : vector<16x1xf32>
    %352 = math.rsqrt %351 : vector<16x1xf32>
    %353 = vector.broadcast %352 : vector<16x1xf32> to vector<16x32xf32>
    %354 = arith.mulf %349, %353 : vector<16x32xf32>
    %355 = vector.broadcast %335 : vector<1x32xf32> to vector<16x32xf32>
    %356 = arith.mulf %354, %355 : vector<16x32xf32>
    %357 = vector.broadcast %336 : vector<1x32xf32> to vector<16x32xf32>
    %358 = arith.addf %356, %357 : vector<16x32xf32>
    %359 = arith.truncf %358 : vector<16x32xf32> to vector<16x32xbf16>
    %c0_112 = arith.constant 0 : index
    %c0_113 = arith.constant 0 : index
    %360 = vector.load %arg13[%c0_112, %c0_113] : memref<32x32xbf16, #tpu.memory_space<vmem>>, vector<32x32xbf16>
    %cst_114 = arith.constant dense<0.000000e+00> : vector<16x32xf32>
    %361 = tpu.matmul %359, %360, %cst_114 {dimension_numbers = #tpu.dot_dimension_numbers<[1], [0], [0], [1], [0, 0, 1, 1], [], []>} : vector<16x32xbf16>, vector<32x32xbf16>, vector<16x32xf32> -> vector<16x32xf32>
    %c0_115 = arith.constant 0 : index
    %c0_116 = arith.constant 0 : index
    %362 = vector.load %arg14[%c0_115, %c0_116] : memref<1x32xf32, #tpu.memory_space<vmem>>, vector<1x32xf32>
    %363 = vector.broadcast %362 : vector<1x32xf32> to vector<16x32xf32>
    %364 = arith.addf %361, %363 : vector<16x32xf32>
    %cst_117 = arith.constant 0.000000e+00 : f32
    %365 = vector.broadcast %cst_117 : f32 to vector<16x32xf32>
    %366 = arith.maximumf %364, %365 : vector<16x32xf32>
    %367 = arith.truncf %366 : vector<16x32xf32> to vector<16x32xbf16>
    %c0_118 = arith.constant 0 : index
    %c0_119 = arith.constant 0 : index
    %368 = vector.load %arg15[%c0_118, %c0_119] : memref<32x32xbf16, #tpu.memory_space<vmem>>, vector<32x32xbf16>
    %cst_120 = arith.constant dense<0.000000e+00> : vector<16x32xf32>
    %369 = tpu.matmul %367, %368, %cst_120 {dimension_numbers = #tpu.dot_dimension_numbers<[1], [0], [0], [1], [0, 0, 1, 1], [], []>} : vector<16x32xbf16>, vector<32x32xbf16>, vector<16x32xf32> -> vector<16x32xf32>
    %c0_121 = arith.constant 0 : index
    %c0_122 = arith.constant 0 : index
    %370 = vector.load %arg16[%c0_121, %c0_122] : memref<1x32xf32, #tpu.memory_space<vmem>>, vector<1x32xf32>
    %371 = vector.broadcast %370 : vector<1x32xf32> to vector<16x32xf32>
    %372 = arith.addf %369, %371 : vector<16x32xf32>
    %373 = arith.addf %372, %334 : vector<16x32xf32>
    %c0_123 = arith.constant 0 : index
    %c0_124 = arith.constant 0 : index
    %374 = vector.load %arg17[%c0_123, %c0_124] : memref<16x32xf32, #tpu.memory_space<vmem>>, vector<16x32xf32>
    tpu.vector_store %arg17[%c0_123, %c0_124], %373 {strides = array<i32>} : memref<16x32xf32, #tpu.memory_space<vmem>>, vector<16x32xf32>,
    return
  }
  func.func @transform_0(%arg0: i32) -> (i32, i32) {
    %c0_i32 = arith.constant 0 : i32
    %c0_i32_0 = arith.constant 0 : i32
    return %arg0, %c0_i32 : i32, i32
  }
  func.func @transform_1(%arg0: i32) -> (i32, i32, i32) {
    %c0_i32 = arith.constant 0 : i32
    %c0_i32_0 = arith.constant 0 : i32
    %c0_i32_1 = arith.constant 0 : i32
    return %arg0, %c0_i32, %c0_i32_0 : i32, i32, i32
  }
  func.func @transform_2(%arg0: i32) -> (i32, i32) {
    %c0_i32 = arith.constant 0 : i32
    %c0_i32_0 = arith.constant 0 : i32
    %c0_i32_1 = arith.constant 0 : i32
    return %c0_i32, %c0_i32_0 : i32, i32
  }
  func.func @transform_3(%arg0: i32) -> (i32, i32) {
    %c0_i32 = arith.constant 0 : i32
    %c0_i32_0 = arith.constant 0 : i32
    %c0_i32_1 = arith.constant 0 : i32
    return %c0_i32, %c0_i32_0 : i32, i32
  }
  func.func @transform_4(%arg0: i32) -> (i32, i32) {
    %c0_i32 = arith.constant 0 : i32
    %c0_i32_0 = arith.constant 0 : i32
    %c0_i32_1 = arith.constant 0 : i32
    return %c0_i32, %c0_i32_0 : i32, i32
  }
  func.func @transform_5(%arg0: i32) -> (i32, i32, i32, i32) {
    %c0_i32 = arith.constant 0 : i32
    %c0_i32_0 = arith.constant 0 : i32
    %c0_i32_1 = arith.constant 0 : i32
    %c0_i32_2 = arith.constant 0 : i32
    %c0_i32_3 = arith.constant 0 : i32
    return %c0_i32, %c0_i32_0, %c0_i32_1, %c0_i32_2 : i32, i32, i32, i32
  }
  func.func @transform_6(%arg0: i32) -> (i32, i32) {
    %c0_i32 = arith.constant 0 : i32
    %c0_i32_0 = arith.constant 0 : i32
    %c0_i32_1 = arith.constant 0 : i32
    return %c0_i32, %c0_i32_0 : i32, i32
  }
  func.func @transform_7(%arg0: i32) -> (i32, i32) {
    %c0_i32 = arith.constant 0 : i32
    %c0_i32_0 = arith.constant 0 : i32
    %c0_i32_1 = arith.constant 0 : i32
    return %c0_i32, %c0_i32_0 : i32, i32
  }
  func.func @transform_8(%arg0: i32) -> (i32, i32) {
    %c0_i32 = arith.constant 0 : i32
    %c0_i32_0 = arith.constant 0 : i32
    %c0_i32_1 = arith.constant 0 : i32
    return %c0_i32, %c0_i32_0 : i32, i32
  }
  func.func @transform_9(%arg0: i32) -> (i32, i32) {
    %c0_i32 = arith.constant 0 : i32
    %c0_i32_0 = arith.constant 0 : i32
    %c0_i32_1 = arith.constant 0 : i32
    return %c0_i32, %c0_i32_0 : i32, i32
  }
  func.func @transform_10(%arg0: i32) -> (i32, i32) {
    %c0_i32 = arith.constant 0 : i32
    %c0_i32_0 = arith.constant 0 : i32
    %c0_i32_1 = arith.constant 0 : i32
    return %c0_i32, %c0_i32_0 : i32, i32
  }
  func.func @transform_11(%arg0: i32) -> (i32, i32) {
    %c0_i32 = arith.constant 0 : i32
    %c0_i32_0 = arith.constant 0 : i32
    %c0_i32_1 = arith.constant 0 : i32
    return %c0_i32, %c0_i32_0 : i32, i32
  }
  func.func @transform_12(%arg0: i32) -> (i32, i32) {
    %c0_i32 = arith.constant 0 : i32
    %c0_i32_0 = arith.constant 0 : i32
    %c0_i32_1 = arith.constant 0 : i32
    return %c0_i32, %c0_i32_0 : i32, i32
  }
  func.func @transform_13(%arg0: i32) -> (i32, i32) {
    %c0_i32 = arith.constant 0 : i32
    %c0_i32_0 = arith.constant 0 : i32
    %c0_i32_1 = arith.constant 0 : i32
    return %c0_i32, %c0_i32_0 : i32, i32
  }
  func.func @transform_14(%arg0: i32) -> (i32, i32) {
    %c0_i32 = arith.constant 0 : i32
    %c0_i32_0 = arith.constant 0 : i32
    %c0_i32_1 = arith.constant 0 : i32
    return %c0_i32, %c0_i32_0 : i32, i32
  }
  func.func @transform_15(%arg0: i32) -> (i32, i32) {
    %c0_i32 = arith.constant 0 : i32
    %c0_i32_0 = arith.constant 0 : i32
    %c0_i32_1 = arith.constant 0 : i32
    return %c0_i32, %c0_i32_0 : i32, i32
  }
  func.func @transform_16(%arg0: i32) -> (i32, i32) {
    %c0_i32 = arith.constant 0 : i32
    %c0_i32_0 = arith.constant 0 : i32
    return %arg0, %c0_i32 : i32, i32
  }
}

module attributes {stable_mosaic.version = 11 : i64} {
  func.func @encoder_block_kernel(%arg0: i32, %arg1: memref<16x32xf32, #tpu.memory_space<vmem>>, %arg2: memref<1x1x16xf32, #tpu.memory_space<vmem>>, %arg3: memref<16x32xf32, #tpu.memory_space<vmem>>, %arg4: memref<2x32xf32, #tpu.memory_space<vmem>>, %arg5: memref<2x32xf32, #tpu.memory_space<vmem>>, %arg6: memref<2x5x32x32xf32, #tpu.memory_space<vmem>>, %arg7: memref<2x32xf32, #tpu.memory_space<vmem>>, %arg8: memref<1x32xf32, #tpu.memory_space<vmem>>, %arg9: memref<1x32xf32, #tpu.memory_space<vmem>>, %arg10: memref<32x96xbf16, #tpu.memory_space<vmem>>, %arg11: memref<1x32xf32, #tpu.memory_space<vmem>>, %arg12: memref<1x32xf32, #tpu.memory_space<vmem>>, %arg13: memref<32x32xbf16, #tpu.memory_space<vmem>>, %arg14: memref<1x32xf32, #tpu.memory_space<vmem>>, %arg15: memref<32x32xbf16, #tpu.memory_space<vmem>>, %arg16: memref<1x32xf32, #tpu.memory_space<vmem>>, %arg17: memref<16x32xf32, #tpu.memory_space<vmem>>) attributes {dimension_semantics = [#tpu.dimension_semantics<parallel>], iteration_bounds = array<i64: 2>, scalar_prefetch = 0 : i64, scratch_operands = 0 : i64, tpu.core_type = #tpu.core_type<tc>, window_params = [{transform_indices = @transform_0, window_bounds = array<i64: 16, 32>}, {transform_indices = @transform_1, window_bounds = array<i64: 1, 1, 16>}, {pipeline_mode = #tpu.pipeline_mode<synchronous>, transform_indices = @transform_2, window_bounds = array<i64: 16, 32>}, {pipeline_mode = #tpu.pipeline_mode<synchronous>, transform_indices = @transform_3, window_bounds = array<i64: 2, 32>}, {pipeline_mode = #tpu.pipeline_mode<synchronous>, transform_indices = @transform_4, window_bounds = array<i64: 2, 32>}, {pipeline_mode = #tpu.pipeline_mode<synchronous>, transform_indices = @transform_5, window_bounds = array<i64: 2, 5, 32, 32>}, {pipeline_mode = #tpu.pipeline_mode<synchronous>, transform_indices = @transform_6, window_bounds = array<i64: 2, 32>}, {pipeline_mode = #tpu.pipeline_mode<synchronous>, transform_indices = @transform_7, window_bounds = array<i64: 1, 32>}, {pipeline_mode = #tpu.pipeline_mode<synchronous>, transform_indices = @transform_8, window_bounds = array<i64: 1, 32>}, {pipeline_mode = #tpu.pipeline_mode<synchronous>, transform_indices = @transform_9, window_bounds = array<i64: 32, 96>}, {pipeline_mode = #tpu.pipeline_mode<synchronous>, transform_indices = @transform_10, window_bounds = array<i64: 1, 32>}, {pipeline_mode = #tpu.pipeline_mode<synchronous>, transform_indices = @transform_11, window_bounds = array<i64: 1, 32>}, {pipeline_mode = #tpu.pipeline_mode<synchronous>, transform_indices = @transform_12, window_bounds = array<i64: 32, 32>}, {pipeline_mode = #tpu.pipeline_mode<synchronous>, transform_indices = @transform_13, window_bounds = array<i64: 1, 32>}, {pipeline_mode = #tpu.pipeline_mode<synchronous>, transform_indices = @transform_14, window_bounds = array<i64: 32, 32>}, {pipeline_mode = #tpu.pipeline_mode<synchronous>, transform_indices = @transform_15, window_bounds = array<i64: 1, 32>}, {transform_indices = @transform_16, window_bounds = array<i64: 16, 32>}]} {
    %c0 = arith.constant 0 : index
    %c0_0 = arith.constant 0 : index
    %0 = vector.load %arg1[%c0, %c0_0] : memref<16x32xf32, #tpu.memory_space<vmem>>, vector<16x32xf32>
    %c0_1 = arith.constant 0 : index
    %c0_2 = arith.constant 0 : index
    %1 = vector.load %arg3[%c0_1, %c0_2] : memref<16x32xf32, #tpu.memory_space<vmem>>, vector<16x32xf32>
    %2 = arith.addf %0, %1 : vector<16x32xf32>
    %3 = tpu.iota {dimensions = array<i32: 0>} : vector<16x1xi32>
    %c16_i32 = arith.constant 16 : i32
    %c0_i32 = arith.constant 0 : i32
    %4 = arith.cmpi eq, %c16_i32, %c0_i32 : i32
    %c1_i32 = arith.constant 1 : i32
    %5 = arith.select %4, %c1_i32, %c16_i32 : i32
    %6 = vector.broadcast %5 : i32 to vector<16x1xi32>
    %7 = arith.remsi %3, %6 : vector<16x1xi32>
    %c0_i32_3 = arith.constant 0 : i32
    %8 = vector.broadcast %c0_i32_3 : i32 to vector<16x1xi32>
    %9 = arith.cmpi ne, %7, %8 : vector<16x1xi32>
    %c0_i32_4 = arith.constant 0 : i32
    %10 = vector.broadcast %c0_i32_4 : i32 to vector<16x1xi32>
    %11 = arith.cmpi slt, %7, %10 : vector<16x1xi32>
    %c0_i32_5 = arith.constant 0 : i32
    %12 = arith.cmpi slt, %5, %c0_i32_5 : i32
    %13 = vector.broadcast %12 : i1 to vector<16x1xi1>
    %14 = vector.broadcast %13 : vector<16x1xi1> to vector<16x1xi1>
    %15 = arith.xori %11, %14 : vector<16x1xi1>
    %16 = arith.andi %15, %9 : vector<16x1xi1>
    %17 = vector.broadcast %5 : i32 to vector<16x1xi32>
    %18 = arith.addi %7, %17 : vector<16x1xi32>
    %19 = arith.select %16, %18, %7 : vector<16x1xi1>, vector<16x1xi32>
    %c0_6 = arith.constant 0 : index
    %c0_7 = arith.constant 0 : index
    %20 = vector.load %arg4[%c0_6, %c0_7] : memref<2x32xf32, #tpu.memory_space<vmem>>, vector<2x32xf32>
    %c0_8 = arith.constant 0 : index
    %c0_9 = arith.constant 0 : index
    %21 = vector.load %arg5[%c0_8, %c0_9] : memref<2x32xf32, #tpu.memory_space<vmem>>, vector<2x32xf32>
    %c0_10 = arith.constant 0 : index
    %c0_11 = arith.constant 0 : index
    %22 = vector.load %arg7[%c0_10, %c0_11] : memref<2x32xf32, #tpu.memory_space<vmem>>, vector<2x32xf32>
    %c0_12 = arith.constant 0 : index
    %c0_13 = arith.constant 0 : index
    %c0_14 = arith.constant 0 : index
    %c0_15 = arith.constant 0 : index
    %23 = vector.load %arg6[%c0_12, %c0_13, %c0_14, %c0_15] : memref<2x5x32x32xf32, #tpu.memory_space<vmem>>, vector<2x5x32x32xf32>
    %24 = vector.extract_strided_slice %20 {offsets = [0, 0], sizes = [1, 32], strides = [1, 1]} : vector<2x32xf32> to vector<1x32xf32>
    %25 = vector.shape_cast %24 : vector<1x32xf32> to vector<32xf32>
    %26 = vector.shape_cast %25 : vector<32xf32> to vector<1x32xf32>
    %27 = vector.extract_strided_slice %21 {offsets = [0, 0], sizes = [1, 32], strides = [1, 1]} : vector<2x32xf32> to vector<1x32xf32>
    %28 = vector.shape_cast %27 : vector<1x32xf32> to vector<32xf32>
    %29 = vector.shape_cast %28 : vector<32xf32> to vector<1x32xf32>
    %cst = arith.constant dense<0.000000e+00> : vector<16xf32>
    %30 = vector.multi_reduction <add>, %2, %cst [1] : vector<16x32xf32> to vector<16xf32>
    %31 = vector.shape_cast %30 : vector<16xf32> to vector<16x1xf32>
    %cst_16 = arith.constant 3.200000e+01 : f32
    %32 = vector.broadcast %cst_16 : f32 to vector<16x1xf32>
    %33 = arith.divf %31, %32 : vector<16x1xf32>
    %34 = vector.broadcast %33 : vector<16x1xf32> to vector<16x32xf32>
    %35 = arith.subf %2, %34 : vector<16x32xf32>
    %36 = arith.mulf %35, %35 : vector<16x32xf32>
    %cst_17 = arith.constant dense<0.000000e+00> : vector<16xf32>
    %37 = vector.multi_reduction <add>, %36, %cst_17 [1] : vector<16x32xf32> to vector<16xf32>
    %38 = vector.shape_cast %37 : vector<16xf32> to vector<16x1xf32>
    %cst_18 = arith.constant 3.200000e+01 : f32
    %39 = vector.broadcast %cst_18 : f32 to vector<16x1xf32>
    %40 = arith.divf %38, %39 : vector<16x1xf32>
    %41 = vector.broadcast %33 : vector<16x1xf32> to vector<16x32xf32>
    %42 = arith.subf %2, %41 : vector<16x32xf32>
    %cst_19 = arith.constant 9.99999974E-6 : f32
    %43 = vector.broadcast %cst_19 : f32 to vector<16x1xf32>
    %44 = arith.addf %40, %43 : vector<16x1xf32>
    %45 = math.rsqrt %44 : vector<16x1xf32>
    %46 = vector.broadcast %45 : vector<16x1xf32> to vector<16x32xf32>
    %47 = arith.mulf %42, %46 : vector<16x32xf32>
    %48 = vector.broadcast %26 : vector<1x32xf32> to vector<16x32xf32>
    %49 = arith.mulf %47, %48 : vector<16x32xf32>
    %50 = vector.broadcast %29 : vector<1x32xf32> to vector<16x32xf32>
    %51 = arith.addf %49, %50 : vector<16x32xf32>
    %cst_20 = arith.constant 0.000000e+00 : f32
    %52 = vector.broadcast %cst_20 : f32 to vector<16x32xf32>
    %c2_i32 = arith.constant 2 : i32
    %53 = tpu.dynamic_rotate %51 by %c2_i32 dim 0 : vector<16x32xf32>, i32 -> vector<16x32xf32>
    %c-2_i32 = arith.constant -2 : i32
    %54 = vector.broadcast %c-2_i32 : i32 to vector<16x1xi32>
    %55 = arith.addi %19, %54 : vector<16x1xi32>
    %c0_i32_21 = arith.constant 0 : i32
    %56 = vector.broadcast %c0_i32_21 : i32 to vector<16x1xi32>
    %57 = arith.cmpi sge, %55, %56 : vector<16x1xi32>
    %c-2_i32_22 = arith.constant -2 : i32
    %58 = vector.broadcast %c-2_i32_22 : i32 to vector<16x1xi32>
    %59 = arith.addi %19, %58 : vector<16x1xi32>
    %c16_i32_23 = arith.constant 16 : i32
    %60 = vector.broadcast %c16_i32_23 : i32 to vector<16x1xi32>
    %61 = arith.cmpi slt, %59, %60 : vector<16x1xi32>
    %62 = arith.andi %57, %61 : vector<16x1xi1>
    %cst_24 = arith.constant 0.000000e+00 : f32
    %63 = vector.shape_cast %62 : vector<16x1xi1> to vector<16x1xi1>
    %64 = vector.broadcast %63 : vector<16x1xi1> to vector<16x32xi1>
    %65 = vector.broadcast %cst_24 : f32 to vector<16x32xf32>
    %66 = arith.select %64, %53, %65 : vector<16x32xi1>, vector<16x32xf32>
    %67 = vector.extract_strided_slice %23 {offsets = [0, 0, 0, 0], sizes = [1, 1, 32, 32], strides = [1, 1, 1, 1]} : vector<2x5x32x32xf32> to vector<1x1x32x32xf32>
    %68 = vector.shape_cast %67 : vector<1x1x32x32xf32> to vector<32x32xf32>
    %cst_25 = arith.constant dense<0.000000e+00> : vector<16x32xf32>
    %69 = tpu.matmul %66, %68, %cst_25 {dimension_numbers = #tpu.dot_dimension_numbers<[1], [0], [0], [1], [0, 0, 1, 1], [], []>} : vector<16x32xf32>, vector<32x32xf32>, vector<16x32xf32> -> vector<16x32xf32>
    %70 = arith.addf %52, %69 : vector<16x32xf32>
    %c1_i32_26 = arith.constant 1 : i32
    %71 = tpu.dynamic_rotate %51 by %c1_i32_26 dim 0 : vector<16x32xf32>, i32 -> vector<16x32xf32>
    %c-1_i32 = arith.constant -1 : i32
    %72 = vector.broadcast %c-1_i32 : i32 to vector<16x1xi32>
    %73 = arith.addi %19, %72 : vector<16x1xi32>
    %c0_i32_27 = arith.constant 0 : i32
    %74 = vector.broadcast %c0_i32_27 : i32 to vector<16x1xi32>
    %75 = arith.cmpi sge, %73, %74 : vector<16x1xi32>
    %c-1_i32_28 = arith.constant -1 : i32
    %76 = vector.broadcast %c-1_i32_28 : i32 to vector<16x1xi32>
    %77 = arith.addi %19, %76 : vector<16x1xi32>
    %c16_i32_29 = arith.constant 16 : i32
    %78 = vector.broadcast %c16_i32_29 : i32 to vector<16x1xi32>
    %79 = arith.cmpi slt, %77, %78 : vector<16x1xi32>
    %80 = arith.andi %75, %79 : vector<16x1xi1>
    %cst_30 = arith.constant 0.000000e+00 : f32
    %81 = vector.shape_cast %80 : vector<16x1xi1> to vector<16x1xi1>
    %82 = vector.broadcast %81 : vector<16x1xi1> to vector<16x32xi1>
    %83 = vector.broadcast %cst_30 : f32 to vector<16x32xf32>
    %84 = arith.select %82, %71, %83 : vector<16x32xi1>, vector<16x32xf32>
    %85 = vector.extract_strided_slice %23 {offsets = [0, 1, 0, 0], sizes = [1, 1, 32, 32], strides = [1, 1, 1, 1]} : vector<2x5x32x32xf32> to vector<1x1x32x32xf32>
    %86 = vector.shape_cast %85 : vector<1x1x32x32xf32> to vector<32x32xf32>
    %cst_31 = arith.constant dense<0.000000e+00> : vector<16x32xf32>
    %87 = tpu.matmul %84, %86, %cst_31 {dimension_numbers = #tpu.dot_dimension_numbers<[1], [0], [0], [1], [0, 0, 1, 1], [], []>} : vector<16x32xf32>, vector<32x32xf32>, vector<16x32xf32> -> vector<16x32xf32>
    %88 = arith.addf %70, %87 : vector<16x32xf32>
    %89 = vector.extract_strided_slice %23 {offsets = [0, 2, 0, 0], sizes = [1, 1, 32, 32], strides = [1, 1, 1, 1]} : vector<2x5x32x32xf32> to vector<1x1x32x32xf32>
    %90 = vector.shape_cast %89 : vector<1x1x32x32xf32> to vector<32x32xf32>
    %cst_32 = arith.constant dense<0.000000e+00> : vector<16x32xf32>
    %91 = tpu.matmul %51, %90, %cst_32 {dimension_numbers = #tpu.dot_dimension_numbers<[1], [0], [0], [1], [0, 0, 1, 1], [], []>} : vector<16x32xf32>, vector<32x32xf32>, vector<16x32xf32> -> vector<16x32xf32>
    %92 = arith.addf %88, %91 : vector<16x32xf32>
    %c15_i32 = arith.constant 15 : i32
    %93 = tpu.dynamic_rotate %51 by %c15_i32 dim 0 : vector<16x32xf32>, i32 -> vector<16x32xf32>
    %c1_i32_33 = arith.constant 1 : i32
    %94 = vector.broadcast %c1_i32_33 : i32 to vector<16x1xi32>
    %95 = arith.addi %19, %94 : vector<16x1xi32>
    %c0_i32_34 = arith.constant 0 : i32
    %96 = vector.broadcast %c0_i32_34 : i32 to vector<16x1xi32>
    %97 = arith.cmpi sge, %95, %96 : vector<16x1xi32>
    %c1_i32_35 = arith.constant 1 : i32
    %98 = vector.broadcast %c1_i32_35 : i32 to vector<16x1xi32>
    %99 = arith.addi %19, %98 : vector<16x1xi32>
    %c16_i32_36 = arith.constant 16 : i32
    %100 = vector.broadcast %c16_i32_36 : i32 to vector<16x1xi32>
    %101 = arith.cmpi slt, %99, %100 : vector<16x1xi32>
    %102 = arith.andi %97, %101 : vector<16x1xi1>
    %cst_37 = arith.constant 0.000000e+00 : f32
    %103 = vector.shape_cast %102 : vector<16x1xi1> to vector<16x1xi1>
    %104 = vector.broadcast %103 : vector<16x1xi1> to vector<16x32xi1>
    %105 = vector.broadcast %cst_37 : f32 to vector<16x32xf32>
    %106 = arith.select %104, %93, %105 : vector<16x32xi1>, vector<16x32xf32>
    %107 = vector.extract_strided_slice %23 {offsets = [0, 3, 0, 0], sizes = [1, 1, 32, 32], strides = [1, 1, 1, 1]} : vector<2x5x32x32xf32> to vector<1x1x32x32xf32>
    %108 = vector.shape_cast %107 : vector<1x1x32x32xf32> to vector<32x32xf32>
    %cst_38 = arith.constant dense<0.000000e+00> : vector<16x32xf32>
    %109 = tpu.matmul %106, %108, %cst_38 {dimension_numbers = #tpu.dot_dimension_numbers<[1], [0], [0], [1], [0, 0, 1, 1], [], []>} : vector<16x32xf32>, vector<32x32xf32>, vector<16x32xf32> -> vector<16x32xf32>
    %110 = arith.addf %92, %109 : vector<16x32xf32>
    %c14_i32 = arith.constant 14 : i32
    %111 = tpu.dynamic_rotate %51 by %c14_i32 dim 0 : vector<16x32xf32>, i32 -> vector<16x32xf32>
    %c2_i32_39 = arith.constant 2 : i32
    %112 = vector.broadcast %c2_i32_39 : i32 to vector<16x1xi32>
    %113 = arith.addi %19, %112 : vector<16x1xi32>
    %c0_i32_40 = arith.constant 0 : i32
    %114 = vector.broadcast %c0_i32_40 : i32 to vector<16x1xi32>
    %115 = arith.cmpi sge, %113, %114 : vector<16x1xi32>
    %c2_i32_41 = arith.constant 2 : i32
    %116 = vector.broadcast %c2_i32_41 : i32 to vector<16x1xi32>
    %117 = arith.addi %19, %116 : vector<16x1xi32>
    %c16_i32_42 = arith.constant 16 : i32
    %118 = vector.broadcast %c16_i32_42 : i32 to vector<16x1xi32>
    %119 = arith.cmpi slt, %117, %118 : vector<16x1xi32>
    %120 = arith.andi %115, %119 : vector<16x1xi1>
    %cst_43 = arith.constant 0.000000e+00 : f32
    %121 = vector.shape_cast %120 : vector<16x1xi1> to vector<16x1xi1>
    %122 = vector.broadcast %121 : vector<16x1xi1> to vector<16x32xi1>
    %123 = vector.broadcast %cst_43 : f32 to vector<16x32xf32>
    %124 = arith.select %122, %111, %123 : vector<16x32xi1>, vector<16x32xf32>
    %125 = vector.extract_strided_slice %23 {offsets = [0, 4, 0, 0], sizes = [1, 1, 32, 32], strides = [1, 1, 1, 1]} : vector<2x5x32x32xf32> to vector<1x1x32x32xf32>
    %126 = vector.shape_cast %125 : vector<1x1x32x32xf32> to vector<32x32xf32>
    %cst_44 = arith.constant dense<0.000000e+00> : vector<16x32xf32>
    %127 = tpu.matmul %124, %126, %cst_44 {dimension_numbers = #tpu.dot_dimension_numbers<[1], [0], [0], [1], [0, 0, 1, 1], [], []>} : vector<16x32xf32>, vector<32x32xf32>, vector<16x32xf32> -> vector<16x32xf32>
    %128 = arith.addf %110, %127 : vector<16x32xf32>
    %129 = vector.extract_strided_slice %22 {offsets = [0, 0], sizes = [1, 32], strides = [1, 1]} : vector<2x32xf32> to vector<1x32xf32>
    %130 = vector.shape_cast %129 : vector<1x32xf32> to vector<32xf32>
    %131 = vector.shape_cast %130 : vector<32xf32> to vector<1x32xf32>
    %132 = vector.broadcast %131 : vector<1x32xf32> to vector<16x32xf32>
    %133 = arith.addf %128, %132 : vector<16x32xf32>
    %cst_45 = arith.constant 0.000000e+00 : f32
    %134 = vector.broadcast %cst_45 : f32 to vector<16x32xf32>
    %135 = arith.maximumf %133, %134 : vector<16x32xf32>
    %136 = arith.addf %135, %2 : vector<16x32xf32>
    %137 = vector.extract_strided_slice %20 {offsets = [1, 0], sizes = [1, 32], strides = [1, 1]} : vector<2x32xf32> to vector<1x32xf32>
    %138 = vector.shape_cast %137 : vector<1x32xf32> to vector<32xf32>
    %139 = vector.shape_cast %138 : vector<32xf32> to vector<1x32xf32>
    %140 = vector.extract_strided_slice %21 {offsets = [1, 0], sizes = [1, 32], strides = [1, 1]} : vector<2x32xf32> to vector<1x32xf32>
    %141 = vector.shape_cast %140 : vector<1x32xf32> to vector<32xf32>
    %142 = vector.shape_cast %141 : vector<32xf32> to vector<1x32xf32>
    %cst_46 = arith.constant dense<0.000000e+00> : vector<16xf32>
    %143 = vector.multi_reduction <add>, %136, %cst_46 [1] : vector<16x32xf32> to vector<16xf32>
    %144 = vector.shape_cast %143 : vector<16xf32> to vector<16x1xf32>
    %cst_47 = arith.constant 3.200000e+01 : f32
    %145 = vector.broadcast %cst_47 : f32 to vector<16x1xf32>
    %146 = arith.divf %144, %145 : vector<16x1xf32>
    %147 = vector.broadcast %146 : vector<16x1xf32> to vector<16x32xf32>
    %148 = arith.subf %136, %147 : vector<16x32xf32>
    %149 = arith.mulf %148, %148 : vector<16x32xf32>
    %cst_48 = arith.constant dense<0.000000e+00> : vector<16xf32>
    %150 = vector.multi_reduction <add>, %149, %cst_48 [1] : vector<16x32xf32> to vector<16xf32>
    %151 = vector.shape_cast %150 : vector<16xf32> to vector<16x1xf32>
    %cst_49 = arith.constant 3.200000e+01 : f32
    %152 = vector.broadcast %cst_49 : f32 to vector<16x1xf32>
    %153 = arith.divf %151, %152 : vector<16x1xf32>
    %154 = vector.broadcast %146 : vector<16x1xf32> to vector<16x32xf32>
    %155 = arith.subf %136, %154 : vector<16x32xf32>
    %cst_50 = arith.constant 9.99999974E-6 : f32
    %156 = vector.broadcast %cst_50 : f32 to vector<16x1xf32>
    %157 = arith.addf %153, %156 : vector<16x1xf32>
    %158 = math.rsqrt %157 : vector<16x1xf32>
    %159 = vector.broadcast %158 : vector<16x1xf32> to vector<16x32xf32>
    %160 = arith.mulf %155, %159 : vector<16x32xf32>
    %161 = vector.broadcast %139 : vector<1x32xf32> to vector<16x32xf32>
    %162 = arith.mulf %160, %161 : vector<16x32xf32>
    %163 = vector.broadcast %142 : vector<1x32xf32> to vector<16x32xf32>
    %164 = arith.addf %162, %163 : vector<16x32xf32>
    %cst_51 = arith.constant 0.000000e+00 : f32
    %165 = vector.broadcast %cst_51 : f32 to vector<16x32xf32>
    %c2_i32_52 = arith.constant 2 : i32
    %166 = tpu.dynamic_rotate %164 by %c2_i32_52 dim 0 : vector<16x32xf32>, i32 -> vector<16x32xf32>
    %c-2_i32_53 = arith.constant -2 : i32
    %167 = vector.broadcast %c-2_i32_53 : i32 to vector<16x1xi32>
    %168 = arith.addi %19, %167 : vector<16x1xi32>
    %c0_i32_54 = arith.constant 0 : i32
    %169 = vector.broadcast %c0_i32_54 : i32 to vector<16x1xi32>
    %170 = arith.cmpi sge, %168, %169 : vector<16x1xi32>
    %c-2_i32_55 = arith.constant -2 : i32
    %171 = vector.broadcast %c-2_i32_55 : i32 to vector<16x1xi32>
    %172 = arith.addi %19, %171 : vector<16x1xi32>
    %c16_i32_56 = arith.constant 16 : i32
    %173 = vector.broadcast %c16_i32_56 : i32 to vector<16x1xi32>
    %174 = arith.cmpi slt, %172, %173 : vector<16x1xi32>
    %175 = arith.andi %170, %174 : vector<16x1xi1>
    %cst_57 = arith.constant 0.000000e+00 : f32
    %176 = vector.shape_cast %175 : vector<16x1xi1> to vector<16x1xi1>
    %177 = vector.broadcast %176 : vector<16x1xi1> to vector<16x32xi1>
    %178 = vector.broadcast %cst_57 : f32 to vector<16x32xf32>
    %179 = arith.select %177, %166, %178 : vector<16x32xi1>, vector<16x32xf32>
    %180 = vector.extract_strided_slice %23 {offsets = [1, 0, 0, 0], sizes = [1, 1, 32, 32], strides = [1, 1, 1, 1]} : vector<2x5x32x32xf32> to vector<1x1x32x32xf32>
    %181 = vector.shape_cast %180 : vector<1x1x32x32xf32> to vector<32x32xf32>
    %cst_58 = arith.constant dense<0.000000e+00> : vector<16x32xf32>
    %182 = tpu.matmul %179, %181, %cst_58 {dimension_numbers = #tpu.dot_dimension_numbers<[1], [0], [0], [1], [0, 0, 1, 1], [], []>} : vector<16x32xf32>, vector<32x32xf32>, vector<16x32xf32> -> vector<16x32xf32>
    %183 = arith.addf %165, %182 : vector<16x32xf32>
    %c1_i32_59 = arith.constant 1 : i32
    %184 = tpu.dynamic_rotate %164 by %c1_i32_59 dim 0 : vector<16x32xf32>, i32 -> vector<16x32xf32>
    %c-1_i32_60 = arith.constant -1 : i32
    %185 = vector.broadcast %c-1_i32_60 : i32 to vector<16x1xi32>
    %186 = arith.addi %19, %185 : vector<16x1xi32>
    %c0_i32_61 = arith.constant 0 : i32
    %187 = vector.broadcast %c0_i32_61 : i32 to vector<16x1xi32>
    %188 = arith.cmpi sge, %186, %187 : vector<16x1xi32>
    %c-1_i32_62 = arith.constant -1 : i32
    %189 = vector.broadcast %c-1_i32_62 : i32 to vector<16x1xi32>
    %190 = arith.addi %19, %189 : vector<16x1xi32>
    %c16_i32_63 = arith.constant 16 : i32
    %191 = vector.broadcast %c16_i32_63 : i32 to vector<16x1xi32>
    %192 = arith.cmpi slt, %190, %191 : vector<16x1xi32>
    %193 = arith.andi %188, %192 : vector<16x1xi1>
    %cst_64 = arith.constant 0.000000e+00 : f32
    %194 = vector.shape_cast %193 : vector<16x1xi1> to vector<16x1xi1>
    %195 = vector.broadcast %194 : vector<16x1xi1> to vector<16x32xi1>
    %196 = vector.broadcast %cst_64 : f32 to vector<16x32xf32>
    %197 = arith.select %195, %184, %196 : vector<16x32xi1>, vector<16x32xf32>
    %198 = vector.extract_strided_slice %23 {offsets = [1, 1, 0, 0], sizes = [1, 1, 32, 32], strides = [1, 1, 1, 1]} : vector<2x5x32x32xf32> to vector<1x1x32x32xf32>
    %199 = vector.shape_cast %198 : vector<1x1x32x32xf32> to vector<32x32xf32>
    %cst_65 = arith.constant dense<0.000000e+00> : vector<16x32xf32>
    %200 = tpu.matmul %197, %199, %cst_65 {dimension_numbers = #tpu.dot_dimension_numbers<[1], [0], [0], [1], [0, 0, 1, 1], [], []>} : vector<16x32xf32>, vector<32x32xf32>, vector<16x32xf32> -> vector<16x32xf32>
    %201 = arith.addf %183, %200 : vector<16x32xf32>
    %202 = vector.extract_strided_slice %23 {offsets = [1, 2, 0, 0], sizes = [1, 1, 32, 32], strides = [1, 1, 1, 1]} : vector<2x5x32x32xf32> to vector<1x1x32x32xf32>
    %203 = vector.shape_cast %202 : vector<1x1x32x32xf32> to vector<32x32xf32>
    %cst_66 = arith.constant dense<0.000000e+00> : vector<16x32xf32>
    %204 = tpu.matmul %164, %203, %cst_66 {dimension_numbers = #tpu.dot_dimension_numbers<[1], [0], [0], [1], [0, 0, 1, 1], [], []>} : vector<16x32xf32>, vector<32x32xf32>, vector<16x32xf32> -> vector<16x32xf32>
    %205 = arith.addf %201, %204 : vector<16x32xf32>
    %c15_i32_67 = arith.constant 15 : i32
    %206 = tpu.dynamic_rotate %164 by %c15_i32_67 dim 0 : vector<16x32xf32>, i32 -> vector<16x32xf32>
    %c1_i32_68 = arith.constant 1 : i32
    %207 = vector.broadcast %c1_i32_68 : i32 to vector<16x1xi32>
    %208 = arith.addi %19, %207 : vector<16x1xi32>
    %c0_i32_69 = arith.constant 0 : i32
    %209 = vector.broadcast %c0_i32_69 : i32 to vector<16x1xi32>
    %210 = arith.cmpi sge, %208, %209 : vector<16x1xi32>
    %c1_i32_70 = arith.constant 1 : i32
    %211 = vector.broadcast %c1_i32_70 : i32 to vector<16x1xi32>
    %212 = arith.addi %19, %211 : vector<16x1xi32>
    %c16_i32_71 = arith.constant 16 : i32
    %213 = vector.broadcast %c16_i32_71 : i32 to vector<16x1xi32>
    %214 = arith.cmpi slt, %212, %213 : vector<16x1xi32>
    %215 = arith.andi %210, %214 : vector<16x1xi1>
    %cst_72 = arith.constant 0.000000e+00 : f32
    %216 = vector.shape_cast %215 : vector<16x1xi1> to vector<16x1xi1>
    %217 = vector.broadcast %216 : vector<16x1xi1> to vector<16x32xi1>
    %218 = vector.broadcast %cst_72 : f32 to vector<16x32xf32>
    %219 = arith.select %217, %206, %218 : vector<16x32xi1>, vector<16x32xf32>
    %220 = vector.extract_strided_slice %23 {offsets = [1, 3, 0, 0], sizes = [1, 1, 32, 32], strides = [1, 1, 1, 1]} : vector<2x5x32x32xf32> to vector<1x1x32x32xf32>
    %221 = vector.shape_cast %220 : vector<1x1x32x32xf32> to vector<32x32xf32>
    %cst_73 = arith.constant dense<0.000000e+00> : vector<16x32xf32>
    %222 = tpu.matmul %219, %221, %cst_73 {dimension_numbers = #tpu.dot_dimension_numbers<[1], [0], [0], [1], [0, 0, 1, 1], [], []>} : vector<16x32xf32>, vector<32x32xf32>, vector<16x32xf32> -> vector<16x32xf32>
    %223 = arith.addf %205, %222 : vector<16x32xf32>
    %c14_i32_74 = arith.constant 14 : i32
    %224 = tpu.dynamic_rotate %164 by %c14_i32_74 dim 0 : vector<16x32xf32>, i32 -> vector<16x32xf32>
    %c2_i32_75 = arith.constant 2 : i32
    %225 = vector.broadcast %c2_i32_75 : i32 to vector<16x1xi32>
    %226 = arith.addi %19, %225 : vector<16x1xi32>
    %c0_i32_76 = arith.constant 0 : i32
    %227 = vector.broadcast %c0_i32_76 : i32 to vector<16x1xi32>
    %228 = arith.cmpi sge, %226, %227 : vector<16x1xi32>
    %c2_i32_77 = arith.constant 2 : i32
    %229 = vector.broadcast %c2_i32_77 : i32 to vector<16x1xi32>
    %230 = arith.addi %19, %229 : vector<16x1xi32>
    %c16_i32_78 = arith.constant 16 : i32
    %231 = vector.broadcast %c16_i32_78 : i32 to vector<16x1xi32>
    %232 = arith.cmpi slt, %230, %231 : vector<16x1xi32>
    %233 = arith.andi %228, %232 : vector<16x1xi1>
    %cst_79 = arith.constant 0.000000e+00 : f32
    %234 = vector.shape_cast %233 : vector<16x1xi1> to vector<16x1xi1>
    %235 = vector.broadcast %234 : vector<16x1xi1> to vector<16x32xi1>
    %236 = vector.broadcast %cst_79 : f32 to vector<16x32xf32>
    %237 = arith.select %235, %224, %236 : vector<16x32xi1>, vector<16x32xf32>
    %238 = vector.extract_strided_slice %23 {offsets = [1, 4, 0, 0], sizes = [1, 1, 32, 32], strides = [1, 1, 1, 1]} : vector<2x5x32x32xf32> to vector<1x1x32x32xf32>
    %239 = vector.shape_cast %238 : vector<1x1x32x32xf32> to vector<32x32xf32>
    %cst_80 = arith.constant dense<0.000000e+00> : vector<16x32xf32>
    %240 = tpu.matmul %237, %239, %cst_80 {dimension_numbers = #tpu.dot_dimension_numbers<[1], [0], [0], [1], [0, 0, 1, 1], [], []>} : vector<16x32xf32>, vector<32x32xf32>, vector<16x32xf32> -> vector<16x32xf32>
    %241 = arith.addf %223, %240 : vector<16x32xf32>
    %242 = vector.extract_strided_slice %22 {offsets = [1, 0], sizes = [1, 32], strides = [1, 1]} : vector<2x32xf32> to vector<1x32xf32>
    %243 = vector.shape_cast %242 : vector<1x32xf32> to vector<32xf32>
    %244 = vector.shape_cast %243 : vector<32xf32> to vector<1x32xf32>
    %245 = vector.broadcast %244 : vector<1x32xf32> to vector<16x32xf32>
    %246 = arith.addf %241, %245 : vector<16x32xf32>
    %cst_81 = arith.constant 0.000000e+00 : f32
    %247 = vector.broadcast %cst_81 : f32 to vector<16x32xf32>
    %248 = arith.maximumf %246, %247 : vector<16x32xf32>
    %249 = arith.addf %248, %136 : vector<16x32xf32>
    %c0_82 = arith.constant 0 : index
    %c0_83 = arith.constant 0 : index
    %250 = vector.load %arg8[%c0_82, %c0_83] : memref<1x32xf32, #tpu.memory_space<vmem>>, vector<1x32xf32>
    %c0_84 = arith.constant 0 : index
    %c0_85 = arith.constant 0 : index
    %251 = vector.load %arg9[%c0_84, %c0_85] : memref<1x32xf32, #tpu.memory_space<vmem>>, vector<1x32xf32>
    %cst_86 = arith.constant dense<0.000000e+00> : vector<16xf32>
    %252 = vector.multi_reduction <add>, %249, %cst_86 [1] : vector<16x32xf32> to vector<16xf32>
    %253 = vector.shape_cast %252 : vector<16xf32> to vector<16x1xf32>
    %cst_87 = arith.constant 3.200000e+01 : f32
    %254 = vector.broadcast %cst_87 : f32 to vector<16x1xf32>
    %255 = arith.divf %253, %254 : vector<16x1xf32>
    %256 = vector.broadcast %255 : vector<16x1xf32> to vector<16x32xf32>
    %257 = arith.subf %249, %256 : vector<16x32xf32>
    %258 = arith.mulf %257, %257 : vector<16x32xf32>
    %cst_88 = arith.constant dense<0.000000e+00> : vector<16xf32>
    %259 = vector.multi_reduction <add>, %258, %cst_88 [1] : vector<16x32xf32> to vector<16xf32>
    %260 = vector.shape_cast %259 : vector<16xf32> to vector<16x1xf32>
    %cst_89 = arith.constant 3.200000e+01 : f32
    %261 = vector.broadcast %cst_89 : f32 to vector<16x1xf32>
    %262 = arith.divf %260, %261 : vector<16x1xf32>
    %263 = vector.broadcast %255 : vector<16x1xf32> to vector<16x32xf32>
    %264 = arith.subf %249, %263 : vector<16x32xf32>
    %cst_90 = arith.constant 9.99999974E-6 : f32
    %265 = vector.broadcast %cst_90 : f32 to vector<16x1xf32>
    %266 = arith.addf %262, %265 : vector<16x1xf32>
    %267 = math.rsqrt %266 : vector<16x1xf32>
    %268 = vector.broadcast %267 : vector<16x1xf32> to vector<16x32xf32>
    %269 = arith.mulf %264, %268 : vector<16x32xf32>
    %270 = vector.broadcast %250 : vector<1x32xf32> to vector<16x32xf32>
    %271 = arith.mulf %269, %270 : vector<16x32xf32>
    %272 = vector.broadcast %251 : vector<1x32xf32> to vector<16x32xf32>
    %273 = arith.addf %271, %272 : vector<16x32xf32>
    %274 = arith.truncf %273 : vector<16x32xf32> to vector<16x32xbf16>
    %c0_91 = arith.constant 0 : index
    %c0_92 = arith.constant 0 : index
    %275 = vector.load %arg10[%c0_91, %c0_92] : memref<32x96xbf16, #tpu.memory_space<vmem>>, vector<32x96xbf16>
    %cst_93 = arith.constant dense<0.000000e+00> : vector<16x96xf32>
    %276 = tpu.matmul %274, %275, %cst_93 {dimension_numbers = #tpu.dot_dimension_numbers<[1], [0], [0], [1], [0, 0, 1, 1], [], []>} : vector<16x32xbf16>, vector<32x96xbf16>, vector<16x96xf32> -> vector<16x96xf32>
    %277 = arith.truncf %276 : vector<16x96xf32> to vector<16x96xbf16>
    %278 = vector.extract_strided_slice %277 {offsets = [0, 0], sizes = [16, 8], strides = [1, 1]} : vector<16x96xbf16> to vector<16x8xbf16>
    %279 = vector.shape_cast %278 : vector<16x8xbf16> to vector<1x16x8xbf16>
    %280 = vector.extract_strided_slice %277 {offsets = [0, 8], sizes = [16, 8], strides = [1, 1]} : vector<16x96xbf16> to vector<16x8xbf16>
    %281 = vector.shape_cast %280 : vector<16x8xbf16> to vector<1x16x8xbf16>
    %282 = vector.extract_strided_slice %277 {offsets = [0, 16], sizes = [16, 8], strides = [1, 1]} : vector<16x96xbf16> to vector<16x8xbf16>
    %283 = vector.shape_cast %282 : vector<16x8xbf16> to vector<1x16x8xbf16>
    %284 = vector.extract_strided_slice %277 {offsets = [0, 24], sizes = [16, 8], strides = [1, 1]} : vector<16x96xbf16> to vector<16x8xbf16>
    %285 = vector.shape_cast %284 : vector<16x8xbf16> to vector<1x16x8xbf16>
    %286 = tpu.concatenate %279, %281, %283, %285 in 0 : vector<1x16x8xbf16>, vector<1x16x8xbf16>, vector<1x16x8xbf16>, vector<1x16x8xbf16> -> vector<4x16x8xbf16>
    %287 = vector.extract_strided_slice %277 {offsets = [0, 32], sizes = [16, 8], strides = [1, 1]} : vector<16x96xbf16> to vector<16x8xbf16>
    %288 = vector.shape_cast %287 : vector<16x8xbf16> to vector<1x16x8xbf16>
    %289 = vector.extract_strided_slice %277 {offsets = [0, 40], sizes = [16, 8], strides = [1, 1]} : vector<16x96xbf16> to vector<16x8xbf16>
    %290 = vector.shape_cast %289 : vector<16x8xbf16> to vector<1x16x8xbf16>
    %291 = vector.extract_strided_slice %277 {offsets = [0, 48], sizes = [16, 8], strides = [1, 1]} : vector<16x96xbf16> to vector<16x8xbf16>
    %292 = vector.shape_cast %291 : vector<16x8xbf16> to vector<1x16x8xbf16>
    %293 = vector.extract_strided_slice %277 {offsets = [0, 56], sizes = [16, 8], strides = [1, 1]} : vector<16x96xbf16> to vector<16x8xbf16>
    %294 = vector.shape_cast %293 : vector<16x8xbf16> to vector<1x16x8xbf16>
    %295 = tpu.concatenate %288, %290, %292, %294 in 0 : vector<1x16x8xbf16>, vector<1x16x8xbf16>, vector<1x16x8xbf16>, vector<1x16x8xbf16> -> vector<4x16x8xbf16>
    %296 = vector.extract_strided_slice %277 {offsets = [0, 64], sizes = [16, 8], strides = [1, 1]} : vector<16x96xbf16> to vector<16x8xbf16>
    %297 = vector.shape_cast %296 : vector<16x8xbf16> to vector<1x16x8xbf16>
    %298 = vector.extract_strided_slice %277 {offsets = [0, 72], sizes = [16, 8], strides = [1, 1]} : vector<16x96xbf16> to vector<16x8xbf16>
    %299 = vector.shape_cast %298 : vector<16x8xbf16> to vector<1x16x8xbf16>
    %300 = vector.extract_strided_slice %277 {offsets = [0, 80], sizes = [16, 8], strides = [1, 1]} : vector<16x96xbf16> to vector<16x8xbf16>
    %301 = vector.shape_cast %300 : vector<16x8xbf16> to vector<1x16x8xbf16>
    %302 = vector.extract_strided_slice %277 {offsets = [0, 88], sizes = [16, 8], strides = [1, 1]} : vector<16x96xbf16> to vector<16x8xbf16>
    %303 = vector.shape_cast %302 : vector<16x8xbf16> to vector<1x16x8xbf16>
    %304 = tpu.concatenate %297, %299, %301, %303 in 0 : vector<1x16x8xbf16>, vector<1x16x8xbf16>, vector<1x16x8xbf16>, vector<1x16x8xbf16> -> vector<4x16x8xbf16>
    %c0_94 = arith.constant 0 : index
    %c0_95 = arith.constant 0 : index
    %c0_96 = arith.constant 0 : index
    %305 = vector.load %arg2[%c0_94, %c0_95, %c0_96] : memref<1x1x16xf32, #tpu.memory_space<vmem>>, vector<1x1x16xf32>
    %306 = tpu.concatenate %305, %305, %305, %305 in 0 : vector<1x1x16xf32>, vector<1x1x16xf32>, vector<1x1x16xf32>, vector<1x1x16xf32> -> vector<4x1x16xf32>
    %cst_97 = arith.constant 1.000000e+00 : f32
    %307 = vector.broadcast %cst_97 : f32 to vector<4x1x16xf32>
    %308 = arith.subf %307, %306 : vector<4x1x16xf32>
    %cst_98 = arith.constant -1.000000e+30 : f32
    %309 = vector.broadcast %cst_98 : f32 to vector<4x1x16xf32>
    %310 = arith.mulf %309, %308 : vector<4x1x16xf32>
    "tpu.trace_start"() <{level = 10 : i32, message = "zqd,zkd->zqk"}> : () -> ()
    %cst_99 = arith.constant dense<0.000000e+00> : vector<4x16x16xf32>
    %311 = tpu.matmul %304, %286, %cst_99 {dimension_numbers = #tpu.dot_dimension_numbers<[2], [2], [1], [1], [0, 0, 0, 1, 1, 1], [0], [0]>} : vector<4x16x8xbf16>, vector<4x16x8xbf16>, vector<4x16x16xf32> -> vector<4x16x16xf32>
    "tpu.trace_stop"() : () -> ()
    %312 = vector.broadcast %306 : vector<4x1x16xf32> to vector<4x16x16xf32>
    %313 = arith.mulf %312, %311 : vector<4x16x16xf32>
    %314 = vector.broadcast %310 : vector<4x1x16xf32> to vector<4x16x16xf32>
    %315 = arith.addf %313, %314 : vector<4x16x16xf32>
    %cst_100 = arith.constant dense<0xFF800000> : vector<4x16xf32>
    %316 = vector.multi_reduction <maximumf>, %315, %cst_100 [2] : vector<4x16x16xf32> to vector<4x16xf32>
    %317 = vector.shape_cast %316 : vector<4x16xf32> to vector<4x16x1xf32>
    %318 = vector.broadcast %317 : vector<4x16x1xf32> to vector<4x16x16xf32>
    %319 = arith.subf %315, %318 : vector<4x16x16xf32>
    %320 = math.exp %319 : vector<4x16x16xf32>
    %cst_101 = arith.constant dense<0.000000e+00> : vector<4x16xf32>
    %321 = vector.multi_reduction <add>, %320, %cst_101 [2] : vector<4x16x16xf32> to vector<4x16xf32>
    %322 = vector.shape_cast %321 : vector<4x16xf32> to vector<4x16x1xf32>
    %323 = tpu.reciprocal %322 {approx = true} : vector<4x16x1xf32> -> vector<4x16x1xf32>
    %324 = vector.broadcast %323 : vector<4x16x1xf32> to vector<4x16x16xf32>
    %325 = arith.mulf %320, %324 : vector<4x16x16xf32>
    %326 = arith.truncf %325 : vector<4x16x16xf32> to vector<4x16x16xbf16>
    "tpu.trace_start"() <{level = 10 : i32, message = "zqk,zkd->zqd"}> : () -> ()
    %cst_102 = arith.constant dense<0.000000e+00> : vector<4x16x8xf32>
    %327 = tpu.matmul %326, %295, %cst_102 {dimension_numbers = #tpu.dot_dimension_numbers<[2], [1], [1], [2], [0, 0, 0, 1, 1, 2], [0], [0]>} : vector<4x16x16xbf16>, vector<4x16x8xbf16>, vector<4x16x8xf32> -> vector<4x16x8xf32>
    "tpu.trace_stop"() : () -> ()
    %328 = vector.extract_strided_slice %327 {offsets = [0, 0, 0], sizes = [1, 16, 8], strides = [1, 1, 1]} : vector<4x16x8xf32> to vector<1x16x8xf32>
    %329 = vector.extract_strided_slice %327 {offsets = [1, 0, 0], sizes = [1, 16, 8], strides = [1, 1, 1]} : vector<4x16x8xf32> to vector<1x16x8xf32>
    %330 = vector.extract_strided_slice %327 {offsets = [2, 0, 0], sizes = [1, 16, 8], strides = [1, 1, 1]} : vector<4x16x8xf32> to vector<1x16x8xf32>
    %331 = vector.extract_strided_slice %327 {offsets = [3, 0, 0], sizes = [1, 16, 8], strides = [1, 1, 1]} : vector<4x16x8xf32> to vector<1x16x8xf32>
    %332 = tpu.concatenate %328, %329, %330, %331 in 2 : vector<1x16x8xf32>, vector<1x16x8xf32>, vector<1x16x8xf32>, vector<1x16x8xf32> -> vector<1x16x32xf32>
    %333 = vector.shape_cast %332 : vector<1x16x32xf32> to vector<16x32xf32>
    %334 = arith.addf %333, %249 : vector<16x32xf32>
    %c0_103 = arith.constant 0 : index
    %c0_104 = arith.constant 0 : index
    %335 = vector.load %arg11[%c0_103, %c0_104] : memref<1x32xf32, #tpu.memory_space<vmem>>, vector<1x32xf32>
    %c0_105 = arith.constant 0 : index
    %c0_106 = arith.constant 0 : index
    %336 = vector.load %arg12[%c0_105, %c0_106] : memref<1x32xf32, #tpu.memory_space<vmem>>, vector<1x32xf32>
    %cst_107 = arith.constant dense<0.000000e+00> : vector<16xf32>
    %337 = vector.multi_reduction <add>, %334, %cst_107 [1] : vector<16x32xf32> to vector<16xf32>
    %338 = vector.shape_cast %337 : vector<16xf32> to vector<16x1xf32>
    %cst_108 = arith.constant 3.200000e+01 : f32
    %339 = vector.broadcast %cst_108 : f32 to vector<16x1xf32>
    %340 = arith.divf %338, %339 : vector<16x1xf32>
    %341 = vector.broadcast %340 : vector<16x1xf32> to vector<16x32xf32>
    %342 = arith.subf %334, %341 : vector<16x32xf32>
    %343 = arith.mulf %342, %342 : vector<16x32xf32>
    %cst_109 = arith.constant dense<0.000000e+00> : vector<16xf32>
    %344 = vector.multi_reduction <add>, %343, %cst_109 [1] : vector<16x32xf32> to vector<16xf32>
    %345 = vector.shape_cast %344 : vector<16xf32> to vector<16x1xf32>
    %cst_110 = arith.constant 3.200000e+01 : f32
    %346 = vector.broadcast %cst_110 : f32 to vector<16x1xf32>
    %347 = arith.divf %345, %346 : vector<16x1xf32>
    %348 = vector.broadcast %340 : vector<16x1xf32> to vector<16x32xf32>
    %349 = arith.subf %334, %348 : vector<16x32xf32>
    %cst_111 = arith.constant 9.99999974E-6 : f32
    %350 = vector.broadcast %cst_111 : f32 to vector<16x1xf32>
    %351 = arith.addf %347, %350 : vector<16x1xf32>
    %352 = math.rsqrt %351 : vector<16x1xf32>
    %353 = vector.broadcast %352 : vector<16x1xf32> to vector<16x32xf32>
    %354 = arith.mulf %349, %353 : vector<16x32xf32>
    %355 = vector.broadcast %335 : vector<1x32xf32> to vector<16x32xf32>
    %356 = arith.mulf %354, %355 : vector<16x32xf32>
    %357 = vector.broadcast %336 : vector<1x32xf32> to vector<16x32xf32>
    %358 = arith.addf %356, %357 : vector<16x32xf32>
    %359 = arith.truncf %358 : vector<16x32xf32> to vector<16x32xbf16>
    %c0_112 = arith.constant 0 : index
    %c0_113 = arith.constant 0 : index
    %360 = vector.load %arg13[%c0_112, %c0_113] : memref<32x32xbf16, #tpu.memory_space<vmem>>, vector<32x32xbf16>
    %cst_114 = arith.constant dense<0.000000e+00> : vector<16x32xf32>
    %361 = tpu.matmul %359, %360, %cst_114 {dimension_numbers = #tpu.dot_dimension_numbers<[1], [0], [0], [1], [0, 0, 1, 1], [], []>} : vector<16x32xbf16>, vector<32x32xbf16>, vector<16x32xf32> -> vector<16x32xf32>
    %c0_115 = arith.constant 0 : index
    %c0_116 = arith.constant 0 : index
    %362 = vector.load %arg14[%c0_115, %c0_116] : memref<1x32xf32, #tpu.memory_space<vmem>>, vector<1x32xf32>
    %363 = vector.broadcast %362 : vector<1x32xf32> to vector<16x32xf32>
    %364 = arith.addf %361, %363 : vector<16x32xf32>
    %cst_117 = arith.constant 0.000000e+00 : f32
    %365 = vector.broadcast %cst_117 : f32 to vector<16x32xf32>
    %366 = arith.maximumf %364, %365 : vector<16x32xf32>
    %367 = arith.truncf %366 : vector<16x32xf32> to vector<16x32xbf16>
    %c0_118 = arith.constant 0 : index
    %c0_119 = arith.constant 0 : index
    %368 = vector.load %arg15[%c0_118, %c0_119] : memref<32x32xbf16, #tpu.memory_space<vmem>>, vector<32x32xbf16>
    %cst_120 = arith.constant dense<0.000000e+00> : vector<16x32xf32>
    %369 = tpu.matmul %367, %368, %cst_120 {dimension_numbers = #tpu.dot_dimension_numbers<[1], [0], [0], [1], [0, 0, 1, 1], [], []>} : vector<16x32xbf16>, vector<32x32xbf16>, vector<16x32xf32> -> vector<16x32xf32>
    %c0_121 = arith.constant 0 : index
    %c0_122 = arith.constant 0 : index
    %370 = vector.load %arg16[%c0_121, %c0_122] : memref<1x32xf32, #tpu.memory_space<vmem>>, vector<1x32xf32>
    %371 = vector.broadcast %370 : vector<1x32xf32> to vector<16x32xf32>
    %372 = arith.addf %369, %371 : vector<16x32xf32>
    %373 = arith.addf %372, %334 : vector<16x32xf32>
    %c0_123 = arith.constant 0 : index
    %c0_124 = arith.constant 0 : index
    %374 = vector.load %arg17[%c0_123, %c0_124] : memref<16x32xf32, #tpu.memory_space<vmem>>, vector<16x32xf32>
    tpu.vector_store %arg17[%c0_123, %c0_124], %373 {strides = array<i32>} : memref<16x32xf32, #tpu.memory_space<vmem>>, vector<16x32xf32>,
    return
  }
  func.func @transform_0(%arg0: i32) -> (i32, i32) {
    %c0_i32 = arith.constant 0 : i32
    %c0_i32_0 = arith.constant 0 : i32
    return %arg0, %c0_i32 : i32, i32
  }
  func.func @transform_1(%arg0: i32) -> (i32, i32, i32) {
    %c0_i32 = arith.constant 0 : i32
    %c0_i32_0 = arith.constant 0 : i32
    %c0_i32_1 = arith.constant 0 : i32
    return %arg0, %c0_i32, %c0_i32_0 : i32, i32, i32
  }
  func.func @transform_2(%arg0: i32) -> (i32, i32) {
    %c0_i32 = arith.constant 0 : i32
    %c0_i32_0 = arith.constant 0 : i32
    %c0_i32_1 = arith.constant 0 : i32
    return %c0_i32, %c0_i32_0 : i32, i32
  }
  func.func @transform_3(%arg0: i32) -> (i32, i32) {
    %c0_i32 = arith.constant 0 : i32
    %c0_i32_0 = arith.constant 0 : i32
    %c0_i32_1 = arith.constant 0 : i32
    return %c0_i32, %c0_i32_0 : i32, i32
  }
  func.func @transform_4(%arg0: i32) -> (i32, i32) {
    %c0_i32 = arith.constant 0 : i32
    %c0_i32_0 = arith.constant 0 : i32
    %c0_i32_1 = arith.constant 0 : i32
    return %c0_i32, %c0_i32_0 : i32, i32
  }
  func.func @transform_5(%arg0: i32) -> (i32, i32, i32, i32) {
    %c0_i32 = arith.constant 0 : i32
    %c0_i32_0 = arith.constant 0 : i32
    %c0_i32_1 = arith.constant 0 : i32
    %c0_i32_2 = arith.constant 0 : i32
    %c0_i32_3 = arith.constant 0 : i32
    return %c0_i32, %c0_i32_0, %c0_i32_1, %c0_i32_2 : i32, i32, i32, i32
  }
  func.func @transform_6(%arg0: i32) -> (i32, i32) {
    %c0_i32 = arith.constant 0 : i32
    %c0_i32_0 = arith.constant 0 : i32
    %c0_i32_1 = arith.constant 0 : i32
    return %c0_i32, %c0_i32_0 : i32, i32
  }
  func.func @transform_7(%arg0: i32) -> (i32, i32) {
    %c0_i32 = arith.constant 0 : i32
    %c0_i32_0 = arith.constant 0 : i32
    %c0_i32_1 = arith.constant 0 : i32
    return %c0_i32, %c0_i32_0 : i32, i32
  }
  func.func @transform_8(%arg0: i32) -> (i32, i32) {
    %c0_i32 = arith.constant 0 : i32
    %c0_i32_0 = arith.constant 0 : i32
    %c0_i32_1 = arith.constant 0 : i32
    return %c0_i32, %c0_i32_0 : i32, i32
  }
  func.func @transform_9(%arg0: i32) -> (i32, i32) {
    %c0_i32 = arith.constant 0 : i32
    %c0_i32_0 = arith.constant 0 : i32
    %c0_i32_1 = arith.constant 0 : i32
    return %c0_i32, %c0_i32_0 : i32, i32
  }
  func.func @transform_10(%arg0: i32) -> (i32, i32) {
    %c0_i32 = arith.constant 0 : i32
    %c0_i32_0 = arith.constant 0 : i32
    %c0_i32_1 = arith.constant 0 : i32
    return %c0_i32, %c0_i32_0 : i32, i32
  }
  func.func @transform_11(%arg0: i32) -> (i32, i32) {
    %c0_i32 = arith.constant 0 : i32
    %c0_i32_0 = arith.constant 0 : i32
    %c0_i32_1 = arith.constant 0 : i32
    return %c0_i32, %c0_i32_0 : i32, i32
  }
  func.func @transform_12(%arg0: i32) -> (i32, i32) {
    %c0_i32 = arith.constant 0 : i32
    %c0_i32_0 = arith.constant 0 : i32
    %c0_i32_1 = arith.constant 0 : i32
    return %c0_i32, %c0_i32_0 : i32, i32
  }
  func.func @transform_13(%arg0: i32) -> (i32, i32) {
    %c0_i32 = arith.constant 0 : i32
    %c0_i32_0 = arith.constant 0 : i32
    %c0_i32_1 = arith.constant 0 : i32
    return %c0_i32, %c0_i32_0 : i32, i32
  }
  func.func @transform_14(%arg0: i32) -> (i32, i32) {
    %c0_i32 = arith.constant 0 : i32
    %c0_i32_0 = arith.constant 0 : i32
    %c0_i32_1 = arith.constant 0 : i32
    return %c0_i32, %c0_i32_0 : i32, i32
  }
  func.func @transform_15(%arg0: i32) -> (i32, i32) {
    %c0_i32 = arith.constant 0 : i32
    %c0_i32_0 = arith.constant 0 : i32
    %c0_i32_1 = arith.constant 0 : i32
    return %c0_i32, %c0_i32_0 : i32, i32
  }
  func.func @transform_16(%arg0: i32) -> (i32, i32) {
    %c0_i32 = arith.constant 0 : i32
    %c0_i32_0 = arith.constant 0 : i32
    return %arg0, %c0_i32 : i32, i32
  }
}

</mosaic_0001>

<bundles_post_ra>
// kernel: tpu_custom_call.1
= control target key start
LH: loop header
LB: loop body
LE: loop exit
PB: predicated region body
PF: predicated region fallthrough
CT: control target
= control target key end

     0   :  { %s4745_s0 = inlined_call_operand.hbm [shape: f32[32,32], index: 0, kind: input, shape index: {}]   ;;  %s4746_s1 = inlined_call_operand.hbm [shape: f32[2,1,16], index: 1, kind: input, shape index: {}]   ;;  %s4747_s2 = inlined_call_operand.hbm [shape: f32[16,32], index: 2, kind: input, shape index: {}]   ;;  %s4748_s3 = inlined_call_operand.hbm [shape: f32[2,32], index: 3, kind: input, shape index: {}]   ;;  %s4749_s4 = inlined_call_operand.hbm [shape: f32[2,32], index: 4, kind: input, shape index: {}]   ;;  %s4750_s5 = inlined_call_operand.hbm [shape: f32[2,5,32,32], index: 5, kind: input, shape index: {}]   ;;  %s4751_s6 = inlined_call_operand.hbm [shape: f32[2,32], index: 6, kind: input, shape index: {}]   ;;  %s4752_s7 = inlined_call_operand.vmem [shape: f32[1,32], index: 7, kind: input, shape index: {}]   ;;  %s4753_s8 = inlined_call_operand.hbm [shape: f32[1,32], index: 8, kind: input, shape index: {}]   ;;  %s4754_s9 = inlined_call_operand.vmem [shape: bf16[32,96], index: 9, kind: input, shape index: {}]   ;;  %s4755_s10 = inlined_call_operand.hbm [shape: f32[1,32], index: 10, kind: input, shape index: {}]   ;;  %s4756_s11 = inlined_call_operand.hbm [shape: f32[1,32], index: 11, kind: input, shape index: {}]   ;;  %s4757_s12 = inlined_call_operand.vmem [shape: bf16[32,32], index: 12, kind: input, shape index: {}]   ;;  %s4758_s13 = inlined_call_operand.hbm [shape: f32[1,32], index: 13, kind: input, shape index: {}]   ;;  %s4759_s14 = inlined_call_operand.vmem [shape: bf16[32,32], index: 14, kind: input, shape index: {}]   ;;  %s4760_s15 = inlined_call_operand.vmem [shape: f32[1,32], index: 15, kind: input, shape index: {}]   ;;  %s4761_s16 = inlined_call_operand.hbm [shape: f32[32,32], index: 16, kind: output, shape index: {}]  }
   0x1   :  { %4774 = sst [smem:[#allocation30_spill]] %s4745_s0 }
   0x2   :  { %4775 = sst [smem:[#allocation31_spill]] %s4747_s2 }
   0x3   :  { %4776 = sst [smem:[#allocation32_spill]] %s4748_s3 }
   0x4   :  { %4777 = sst [smem:[#allocation33_spill]] %s4749_s4 }
   0x5   :  { %4778 = sst [smem:[#allocation34_spill]] %s4750_s5 }
   0x6   :  { %4779 = sst [smem:[#allocation35_spill]] %s4751_s6 }
   0x7   :  { %4780 = sst [smem:[#allocation36_spill]] %s4752_s7 }
   0x8   :  { %4781 = sst [smem:[#allocation37_spill]] %s4753_s8 }
   0x9   :  { %4782 = sst [smem:[#allocation38_spill]] %s4754_s9 }
   0xa   :  { %4783 = sst [smem:[#allocation39_spill]] %s4757_s12 }
   0xb   :  { %4784 = sst [smem:[#allocation40_spill]] %s4759_s14 }
   0xc   :  { %4785 = sst [smem:[#allocation41_spill]] %s4760_s15 }
   0xd   :  { %4786 = sst [smem:[#allocation42_spill]] %s4761_s16 }
   0xe   :  { %21 = vsyncpa [#allocation3], 0 }
   0xf   :  { %23 = vsyncpa [#allocation3 + $0x1], 0 }
  0x10   :  { %24 = vsyncpa [#allocation6], 0 }
  0x11   :  { %26 = vsyncpa [#allocation6 + $0x1], 0 }
  0x12   :  { %27 = vsyncpa [#allocation9], 0 }
  0x13   :  { %28 = vsyncpa [#allocation12], 0 }
  0x14   :  { %29 = vsyncpa [#allocation15], 0 }
  0x15   :  { %30 = vsyncpa [#allocation18], 0 }
  0x16   :  { %31 = vsyncpa [#allocation4], 0 }
  0x17   :  { %33 = vsyncpa [#allocation4 + $0x1], 0  ;;  %s3986_s21 = smov 0   ;;  %s3988_s22 = smov 0  }
  0x18   :  { %s3990_s23 = smov 0   ;;  %s3992_s24 = smov 0  }
  0x19 LB: > { %s3876_s25 = smov [#allocation7]   ;;  %s4007_s27 = sadd.s32 4294967295, %s3874_s24   ;;  %s3874_s24 = sphi %s3992_s24, %s4831_s24   ;;  %s3870_s23 = sphi %s3990_s23, %s4830_s23   ;;  %s3866_s22 = sphi %s3988_s22, %s4829_s22   ;;  %s3862_s21 = sphi %s3986_s21, %s4828_s21  }
  0x1a   : > { %s428_s26 = sshll.u32 %s3876_s25, 4  ;;  %p2823_p0 = scmp.ge.s32.totalorder %s3874_s24, 1  ;;  %s4012_s26 = int_to_ptr.vmem [resolvable:$true] %s428_s26 }
  0x1b   : > { %p4768_p1 = scmp.eq.s32.totalorder %s4007_s27, 0  ;;  %p416_p2 = scmp.lt.s32.totalorder %s3874_s24, 3 }
  0x1c   : > { %s3877_s29 = smov [#allocation8]   ;;  %s3878_s17 = smov [#allocation11]  }
  0x1d   : > { %p4014_p3 = pnand %p2823_p0, %p416_p2  ;;  %s442_s30 = sshll.u32 %s3877_s29, 4  ;;  %s4027_s30 = int_to_ptr.vmem [resolvable:$true] %s442_s30 }
  0x1e   : > { %s463_s18 = sshll.u32 %s3878_s17, 4  ;;  %s4790_s2 = sld [smem:[#allocation31_spill]]  ;;  %s4029_s18 = int_to_ptr.vmem [resolvable:$true] %s463_s18 }
  0x1f   : > { %s4787_s28 = scalar_select %p4014_p3, 1, 0 }
  0x20   : > { %p3305_p5 = pneg %p4014_p3 }
  0x21   : > { %4788 = sst [smem:[#allocation29_spill]] %s4787_s28 }
  0x22   : > { %p4023_p6 = pnand %p3305_p5, %p4768_p1 }
  0x24   : > { %s3472_s25 = scalar_lea.hbm %s4790_s2, 256  ;;  %p4039_p8 = pneg %p4023_p6 }
  0x25   : > { %p3473_p7 = scmp.ne.s32.totalorder %s4790_s2, %s3472_s25  ;;  %p3479_p11 = scmp.lt.u32.totalorder %s3472_s25, %s4790_s2 }
  0x27   : > { %p3475_p9 = pnand %p4039_p8, %p3473_p7 }
  0x29   : > { %p3476_p10 = pneg %p3475_p9 }
  0x2b   : > { %p3481_p12 = pnand %p3479_p11, %p3476_p10 }
  0x2d   : > { %3484 = shalt.err (!%p3481_p12)
}
  0x2e   : > { %s3485_s15 = scalar_lea.vmem %s4012_s26, 256  ;;  %p3493_p5 = scmp.lt.s32.totalorder %s4012_s26, %s4012_s26 }
  0x2f   : > { %p3486_p13 = scmp.ne.s32.totalorder %s4012_s26, %s3485_s15  ;;  %p3494_p4 = scmp.lt.s32.totalorder %s3485_s15, %s3485_s15 }
  0x31   : > { %p3488_p0 = pnand %p3486_p13, %p4039_p8  ;;  %p3495_p7 = por %p3494_p4, %p3493_p5 }
  0x33   : > { %p3489_p2 = pneg %p3488_p0 }
  0x35   : > { %p3496_p9 = pnand %p3495_p7, %p3489_p2 }
  0x37   : > { %3499 = shalt.err (!%p3496_p9)
}
  0x38   : > { %s4770_s16 = smov 128   ;;  %s4771_s14 = smov 8  }
  0x39   : > { %3308 = dma.hbm_to_vmem [thread:$0]  (!%p4023_p6), %s4790_s2, 256, %s4012_s26, [#allocation6], %s4770_s16, %s4770_s16, %s4771_s14  }
  0x3a   : > { %s4792_s3 = sld [smem:[#allocation32_spill]] }
  0x40   : > { %s3500_s15 = scalar_lea.hbm %s4792_s3, 32 }
  0x41   : > { %p3501_p4 = scmp.ne.s32.totalorder %s4792_s3, %s3500_s15  ;;  %p3507_p12 = scmp.lt.u32.totalorder %s3500_s15, %s4792_s3 }
  0x43   : > { %p3503_p10 = pnand %p3501_p4, %p4039_p8 }
  0x45   : > { %p3504_p11 = pneg %p3503_p10 }
  0x47   : > { %p3509_p13 = pnand %p3507_p12, %p3504_p11 }
  0x49   : > { %3512 = shalt.err (!%p3509_p13)
}
  0x4a   : > { %s3513_s26 = scalar_lea.vmem %s4027_s30, 32  ;;  %p3521_p7 = scmp.lt.s32.totalorder %s4027_s30, %s4027_s30 }
  0x4b   : > { %p3514_p0 = scmp.ne.s32.totalorder %s4027_s30, %s3513_s26  ;;  %p3522_p9 = scmp.lt.s32.totalorder %s3513_s26, %s3513_s26 }
  0x4d   : > { %p3516_p2 = pnand %p3514_p0, %p4039_p8  ;;  %p3523_p4 = por %p3522_p9, %p3521_p7 }
  0x4f   : > { %p3517_p5 = pneg %p3516_p2 }
  0x51   : > { %p3524_p10 = pnand %p3523_p4, %p3517_p5 }
  0x53   : > { %3527 = shalt.err (!%p3524_p10)
}
  0x54   : > { %3311 = dma.hbm_to_vmem [thread:$0]  (!%p4023_p6), %s4792_s3, 32, %s4027_s30, [#allocation9]  }
  0x55   : > { %s4793_s5 = sld [smem:[#allocation34_spill]] }
  0x5b   : > { %s3528_s19 = scalar_lea.hbm %s4793_s5, 5120 }
  0x5c   : > { %p3529_p11 = scmp.ne.s32.totalorder %s4793_s5, %s3528_s19  ;;  %p3535_p0 = scmp.lt.u32.totalorder %s3528_s19, %s4793_s5 }
  0x5e   : > { %p3531_p12 = pnand %p3529_p11, %p4039_p8 }
  0x60   : > { %p3532_p13 = pneg %p3531_p12 }
  0x62   : > { %p3537_p2 = pnand %p3535_p0, %p3532_p13 }
  0x64   : > { %3540 = shalt.err (!%p3537_p2)
}
  0x65   : > { %s3541_s30 = scalar_lea.vmem %s4029_s18, 5120  ;;  %p3549_p4 = scmp.lt.s32.totalorder %s4029_s18, %s4029_s18 }
  0x66   : > { %p3542_p5 = scmp.ne.s32.totalorder %s4029_s18, %s3541_s30  ;;  %p3550_p10 = scmp.lt.s32.totalorder %s3541_s30, %s3541_s30 }
  0x68   : > { %p3544_p7 = pnand %p3542_p5, %p4039_p8  ;;  %p3551_p11 = por %p3550_p10, %p3549_p4 }
  0x6a   : > { %p3545_p9 = pneg %p3544_p7 }
  0x6c   : > { %p3552_p12 = pnand %p3551_p11, %p3545_p9 }
  0x6e   : > { %3555 = shalt.err (!%p3552_p12)
}
  0x6f   : > { %3317 = dma.hbm_to_vmem [thread:$0]  (!%p4023_p6), %s4793_s5, 5120, %s4029_s18, [#allocation12], %s4770_s16, %s4770_s16, %s4771_s14  }
  0x70   : > { %s3881_s9 = smov [#allocation14]   ;;  %s3882_s28 = smov [#allocation17]  }
  0x71   : > { %s491_s12 = sshll.u32 %s3881_s9, 4  ;;  %s516_s19 = sshll.u32 %s3882_s28, 4  ;;  %s492_s12 = int_to_ptr.vmem [resolvable:$true] %s491_s12  ;;  %s517_s19 = int_to_ptr.vmem [resolvable:$true] %s516_s19 }
  0x72   : > { %s4794_s8 = sld [smem:[#allocation37_spill]] }
  0x78   : > { %s3556_s17 = scalar_lea.hbm %s4794_s8, 16 }
  0x79   : > { %p3557_p13 = scmp.ne.s32.totalorder %s4794_s8, %s3556_s17  ;;  %p3563_p5 = scmp.lt.u32.totalorder %s3556_s17, %s4794_s8 }
  0x7b   : > { %p3559_p0 = pnand %p3557_p13, %p4039_p8 }
  0x7d   : > { %p3560_p2 = pneg %p3559_p0 }
  0x7f   : > { %p3565_p7 = pnand %p3563_p5, %p3560_p2 }
  0x81   : > { %3568 = shalt.err (!%p3565_p7)
}
  0x82   : > { %s3569_s18 = scalar_lea.vmem %s492_s12, 16  ;;  %s3576_s7 = scalar_lea.vmem %s492_s12, 32 }
  0x83   : > { %p3570_p9 = scmp.ne.s32.totalorder %s492_s12, %s3569_s18  ;;  %p3577_p11 = scmp.lt.s32.totalorder %s492_s12, %s492_s12 }
  0x84   : > { %p3578_p12 = scmp.lt.s32.totalorder %s3576_s7, %s3569_s18 }
  0x85   : > { %p3572_p4 = pnand %p3570_p9, %p4039_p8 }
  0x86   : > { %p3579_p1 = por %p3578_p12, %p3577_p11 }
  0x87   : > { %p3573_p10 = pneg %p3572_p4 }
  0x89   : > { %p3580_p3 = pnand %p3579_p1, %p3573_p10 }
  0x8b   : > { %3583 = shalt.err (!%p3580_p3)
}
  0x8c   : > { %3323 = dma.hbm_to_vmem [thread:$0]  (!%p4023_p6), %s4794_s8, 16, %s492_s12, [#allocation15]  }
  0x8d   : > { %s3584_s25 = scalar_lea.hbm %s4756_s11, 16 }
  0x8e   : > { %p3585_p13 = scmp.ne.s32.totalorder %s4756_s11, %s3584_s25  ;;  %p3591_p3 = scmp.lt.u32.totalorder %s3584_s25, %s4756_s11 }
  0x90   : > { %p3587_p0 = pnand %p3585_p13, %p4039_p8 }
  0x92   : > { %p3588_p1 = pneg %p3587_p0 }
  0x94   : > { %p3593_p2 = pnand %p3591_p3, %p3588_p1 }
  0x96   : > { %3596 = shalt.err (!%p3593_p2)
}
  0x97   : > { %s3597_s18 = scalar_lea.vmem %s517_s19, 16  ;;  %s3604_s12 = scalar_lea.vmem %s517_s19, 32 }
  0x98   : > { %p3598_p5 = scmp.ne.s32.totalorder %s517_s19, %s3597_s18  ;;  %p3605_p4 = scmp.lt.s32.totalorder %s517_s19, %s517_s19 }
  0x99   : > { %p3606_p10 = scmp.lt.s32.totalorder %s3604_s12, %s3597_s18 }
  0x9a   : > { %p3600_p7 = pnand %p3598_p5, %p4039_p8 }
  0x9b   : > { %p3607_p11 = por %p3606_p10, %p3605_p4 }
  0x9c   : > { %p3601_p9 = pneg %p3600_p7 }
  0x9e   : > { %p3608_p12 = pnand %p3607_p11, %p3601_p9 }
  0xa0   : > { %3611 = shalt.err (!%p3608_p12)
}
  0xa1   : > { %3329 = dma.hbm_to_vmem [thread:$0]  (!%p4023_p6), %s4756_s11, 16, %s517_s19, [#allocation18]  }
  0xa2   : > { %s3883_s28 = smov [#allocation10]   ;;  %s3884_s20 = smov [#allocation13]  }
  0xa3   : > { %s453_s2 = sshll.u32 %s3883_s28, 4  ;;  %s477_s25 = sshll.u32 %s3884_s20, 4  ;;  %s454_s2 = int_to_ptr.vmem [resolvable:$true] %s453_s2  ;;  %s478_s25 = int_to_ptr.vmem [resolvable:$true] %s477_s25 }
  0xa4   : > { %s4795_s4 = sld [smem:[#allocation33_spill]] }
  0xaa   : > { %s3612_s30 = scalar_lea.hbm %s4795_s4, 32 }
  0xab   : > { %p3613_p13 = scmp.ne.s32.totalorder %s4795_s4, %s3612_s30  ;;  %p3619_p3 = scmp.lt.u32.totalorder %s3612_s30, %s4795_s4 }
  0xad   : > { %p3615_p0 = pnand %p3613_p13, %p4039_p8 }
  0xaf   : > { %p3616_p1 = pneg %p3615_p0 }
  0xb1   : > { %p3621_p2 = pnand %p3619_p3, %p3616_p1 }
  0xb3   : > { %3624 = shalt.err (!%p3621_p2)
}
  0xb4   : > { %s3625_s19 = scalar_lea.vmem %s454_s2, 32  ;;  %p3633_p4 = scmp.lt.s32.totalorder %s454_s2, %s454_s2 }
  0xb5   : > { %p3626_p5 = scmp.ne.s32.totalorder %s454_s2, %s3625_s19  ;;  %p3634_p10 = scmp.lt.s32.totalorder %s3625_s19, %s3625_s19 }
  0xb7   : > { %p3628_p7 = pnand %p3626_p5, %p4039_p8  ;;  %p3635_p11 = por %p3634_p10, %p3633_p4 }
  0xb9   : > { %p3629_p9 = pneg %p3628_p7 }
  0xbb   : > { %p3636_p12 = pnand %p3635_p11, %p3629_p9 }
  0xbd   : > { %3639 = shalt.err (!%p3636_p12)
}
  0xbe   : > { %3314 = dma.hbm_to_vmem [thread:$0]  (!%p4023_p6), %s4795_s4, 32, %s454_s2, [#allocation9]  }
  0xbf   : > { %s4796_s6 = sld [smem:[#allocation35_spill]] }
  0xc5   : > { %s3640_s15 = scalar_lea.hbm %s4796_s6, 32 }
  0xc6   : > { %p3641_p13 = scmp.ne.s32.totalorder %s4796_s6, %s3640_s15  ;;  %p3647_p3 = scmp.lt.u32.totalorder %s3640_s15, %s4796_s6 }
  0xc8   : > { %p3643_p0 = pnand %p3641_p13, %p4039_p8 }
  0xca   : > { %p3644_p1 = pneg %p3643_p0 }
  0xcc   : > { %p3649_p2 = pnand %p3647_p3, %p3644_p1 }
  0xce   : > { %3652 = shalt.err (!%p3649_p2)
}
  0xcf   : > { %s3653_s7 = scalar_lea.vmem %s478_s25, 32  ;;  %p3661_p4 = scmp.lt.s32.totalorder %s478_s25, %s478_s25 }
  0xd0   : > { %p3654_p5 = scmp.ne.s32.totalorder %s478_s25, %s3653_s7  ;;  %p3662_p10 = scmp.lt.s32.totalorder %s3653_s7, %s3653_s7 }
  0xd2   : > { %p3656_p7 = pnand %p3654_p5, %p4039_p8  ;;  %p3663_p11 = por %p3662_p10, %p3661_p4 }
  0xd4   : > { %p3657_p9 = pneg %p3656_p7 }
  0xd6   : > { %p3664_p12 = pnand %p3663_p11, %p3657_p9 }
  0xd8   : > { %3667 = shalt.err (!%p3664_p12)
}
  0xd9   : > { %3320 = dma.hbm_to_vmem [thread:$0]  (!%p4023_p6), %s4796_s6, 32, %s478_s25, [#allocation12]  }
  0xda   : > { %s3885_s9 = smov [#allocation16]   ;;  %s3886_s20 = smov [#allocation19]  }
  0xdb   : > { %s505_s28 = sshll.u32 %s3885_s9, 4  ;;  %s530_s17 = sshll.u32 %s3886_s20, 4  ;;  %s506_s28 = int_to_ptr.vmem [resolvable:$true] %s505_s28  ;;  %s531_s17 = int_to_ptr.vmem [resolvable:$true] %s530_s17 }
  0xdc   : > { %s3668_s26 = scalar_lea.hbm %s4755_s10, 16 }
  0xdd   : > { %p3669_p13 = scmp.ne.s32.totalorder %s4755_s10, %s3668_s26  ;;  %p3675_p3 = scmp.lt.u32.totalorder %s3668_s26, %s4755_s10 }
  0xdf   : > { %p3671_p0 = pnand %p3669_p13, %p4039_p8 }
  0xe1   : > { %p3672_p1 = pneg %p3671_p0 }
  0xe3   : > { %p3677_p2 = pnand %p3675_p3, %p3672_p1 }
  0xe5   : > { %3680 = shalt.err (!%p3677_p2)
}
  0xe6   : > { %s3681_s25 = scalar_lea.vmem %s506_s28, 16  ;;  %s3688_s19 = scalar_lea.vmem %s506_s28, 32 }
  0xe7   : > { %p3682_p5 = scmp.ne.s32.totalorder %s506_s28, %s3681_s25  ;;  %p3689_p4 = scmp.lt.s32.totalorder %s506_s28, %s506_s28 }
  0xe8   : > { %p3690_p10 = scmp.lt.s32.totalorder %s3688_s19, %s3681_s25 }
  0xe9   : > { %p3684_p7 = pnand %p3682_p5, %p4039_p8 }
  0xea   : > { %p3691_p11 = por %p3690_p10, %p3689_p4 }
  0xeb   : > { %p3685_p9 = pneg %p3684_p7 }
  0xed   : > { %p3692_p12 = pnand %p3691_p11, %p3685_p9 }
  0xef   : > { %3695 = shalt.err (!%p3692_p12)
}
  0xf0   : > { %3326 = dma.hbm_to_vmem [thread:$0]  (!%p4023_p6), %s4755_s10, 16, %s506_s28, [#allocation15]  }
  0xf1   : > { %s3696_s26 = scalar_lea.hbm %s4758_s13, 16 }
  0xf2   : > { %p3697_p13 = scmp.ne.s32.totalorder %s4758_s13, %s3696_s26  ;;  %p3703_p3 = scmp.lt.u32.totalorder %s3696_s26, %s4758_s13 }
  0xf4   : > { %p3699_p0 = pnand %p3697_p13, %p4039_p8 }
  0xf6   : > { %p3700_p1 = pneg %p3699_p0 }
  0xf8   : > { %p3705_p2 = pnand %p3703_p3, %p3700_p1 }
  0xfa   : > { %3708 = shalt.err (!%p3705_p2)
}
  0xfb   : > { %s3709_s25 = scalar_lea.vmem %s531_s17, 16  ;;  %s3716_s28 = scalar_lea.vmem %s531_s17, 32 }
  0xfc   : > { %p3710_p5 = scmp.ne.s32.totalorder %s531_s17, %s3709_s25  ;;  %p3717_p4 = scmp.lt.s32.totalorder %s531_s17, %s531_s17 }
  0xfd   : > { %p3718_p10 = scmp.lt.s32.totalorder %s3716_s28, %s3709_s25 }
  0xfe   : > { %p3712_p7 = pnand %p3710_p5, %p4039_p8 }
  0xff   : > { %p3719_p11 = por %p3718_p10, %p3717_p4 }
 0x100   : > { %p3713_p9 = pneg %p3712_p7 }
 0x102   : > { %p3720_p12 = pnand %p3719_p11, %p3713_p9 }
 0x104   : > { %3723 = shalt.err (!%p3720_p12)
}
 0x105   : > { %3332 = dma.hbm_to_vmem [thread:$0]  (!%p4023_p6), %s4758_s13, 16, %s531_s17, [#allocation18]  }
 0x106   : > { %s2822_s29 = sadd.s32 4294967294, %s3874_s24   ;;  %s4222_s0 = sadd.s32 1, %s3874_s24  }
 0x107   : > { %s46_s20 = sadd.s32 1, %s3870_s23  ;;  %s43_s15 = ssub.s32 %s3874_s24, %s4222_s0 }
 0x108   : > { %p53_p8 = scmp.ne.s32.totalorder %s3870_s23, %s3866_s22  ;;  %p44_p13 = scmp.eq.s32.totalorder %s43_s15, 0 }
 0x109   : > { %p54_p0 = scmp.eq.s32.totalorder %s3874_s24, 0  ;;  %p59_p1 = scmp.ne.s32.totalorder %s3866_s22, %s3862_s21 }
 0x10a   : > { %p403_p3 = scmp.eq.s32.totalorder %s4007_s27, 1  ;;  %p4797_p5 = scmp.eq.s32.totalorder %s4007_s27, 0 }
 0x10b   : > { %s4234_s30 = scalar_select %p44_p13, %s3870_s23, %s46_s20  }
 0x10c   : > { %p55_p2 = por %p54_p0, %p53_p8  ;;  %p4238_p7 = por %p4797_p5, %p59_p1 }
 0x10d   : > { %p4242_p6 = por %p403_p3, %p53_p8  ;;  %p409_p9 = scmp.eq.s32.totalorder %s2822_s29, 1 }
 0x10e   : > { %s4798_s17 = scalar_select %p4238_p7, 1, 0 }
 0x10f   : > { %s4799_s26 = scalar_select %p4242_p6, 1, 0 }
 0x110   : > { %p3353_p4 = scmp.lt.s32.totalorder %s3874_s24, 2  ;;  %s4248_s18 = sand.u32 1, %s3870_s23  }
 0x111   : > { %p4250_p10 = por %p409_p9, %p59_p1  ;;  %s2834_s7 = sshll.u32 %s4248_s18, 4 }
 0x112   : > { %s2898_s2 = sshll.u32 %s3874_s24, 8  ;;  %s4801_s19 = sld [smem:[#allocation30_spill]] }
 0x113   : > { %s4800_s12 = scalar_select %p4250_p10, 1, 0 }
 0x114   : > { %s551_s29 = scalar_lea.vmem [#allocation2], %s2834_s7  ;;  %p4261_p11 = pnand %p3353_p4, %p55_p2 }
 0x115   : > { %s558_s20 = sshll.u32 %s551_s29, 4  ;;  %s548_s14 = scalar_lea.sflag [#allocation3], %s4248_s18  ;;  %s4265_s20 = int_to_ptr.vmem [resolvable:$true] %s558_s20 }
 0x116   : > { %p3726_p8 = pneg %p4261_p11 }
 0x118   : > { %s4259_s9 = scalar_lea.hbm %s4801_s19, %s2898_s2  ;;  %s3729_s25 = scalar_lea.hbm %s4801_s19, 512 }
 0x119   : > { %s3724_s3 = scalar_lea.hbm %s4259_s9, 256  ;;  %p3730_p1 = scmp.lt.u32.totalorder %s4259_s9, %s4801_s19 }
 0x11a   : > { %p3725_p12 = scmp.ne.s32.totalorder %s4259_s9, %s3724_s3  ;;  %p3731_p3 = scmp.lt.u32.totalorder %s3729_s25, %s3724_s3 }
 0x11b   : > { %p3733_p5 = scmp.lt.u32.totalorder %s3724_s3, %s4259_s9 }
 0x11c   : > { %p3727_p13 = pnand %p3726_p8, %p3725_p12  ;;  %p3732_p2 = por %p3731_p3, %p3730_p1 }
 0x11e   : > { %p3728_p0 = pneg %p3727_p13  ;;  %p3734_p9 = por %p3733_p5, %p3732_p2 }
 0x120   : > { %p3735_p4 = pnand %p3734_p9, %p3728_p0 }
 0x122   : > { %3738 = shalt.err (!%p3735_p4)
}
 0x123   : > { %s3739_s16 = scalar_lea.vmem %s4265_s20, 256  ;;  %s3887_s7 = smov [#allocation2]  }
 0x124   : > { %p3740_p12 = scmp.ne.s32.totalorder %s4265_s20, %s3739_s16  ;;  %s3744_s2 = sshll.u32 %s3887_s7, 4  ;;  %s3745_s2 = int_to_ptr.vmem [resolvable:$false] %s3744_s2 }
 0x125   : > { %s3746_s28 = scalar_lea.vmem %s3745_s2, 512  ;;  %p3747_p6 = scmp.lt.s32.totalorder %s4265_s20, %s3745_s2 }
 0x126   : > { %p3742_p13 = pnand %p3740_p12, %p3726_p8  ;;  %p3748_p1 = scmp.lt.s32.totalorder %s3746_s28, %s3739_s16 }
 0x128   : > { %p3743_p10 = pneg %p3742_p13  ;;  %p3749_p3 = por %p3748_p1, %p3747_p6 }
 0x12a   : > { %p3750_p2 = pnand %p3749_p3, %p3743_p10 }
 0x12c   : > { %3753 = shalt.err (!%p3750_p2)
}
 0x12d   : > { %s4803_s3 = smov 8   ;;  %s4804_s25 = smov 128  }
 0x12e   : > { %3336 = dma.hbm_to_vmem [thread:$0]  (!%p4261_p11), %s4259_s9, 256, %s4265_s20, %s548_s14, %s4804_s25, %s4804_s25, %s4803_s3  }
 0x12f   : > { %s2837_s29 = sshll.u32 %s3874_s24, 4  ;;  %s571_s28 = scalar_lea.vmem [#allocation5], %s4248_s18 }
 0x130   : > { %s4303_s2 = scalar_lea.hbm %s4746_s1, %s2837_s29  ;;  %s578_s4 = sshll.u32 %s571_s28, 4  ;;  %s579_s4 = int_to_ptr.vmem [resolvable:$true] %s578_s4 }
 0x131   : > { %s4805_s5 = sand.u32 1, %s3874_s24   ;;  %s3754_s8 = scalar_lea.hbm %s4303_s2, 16 }
 0x132   : > { %s569_s6 = scalar_lea.sflag [#allocation6], %s4805_s5  ;;  %p3755_p6 = scmp.ne.s32.totalorder %s4303_s2, %s3754_s8 }
 0x133   : > { %s3759_s20 = scalar_lea.hbm %s4746_s1, 32  ;;  %p3760_p5 = scmp.lt.u32.totalorder %s4303_s2, %s4746_s1 }
 0x134   : > { %p3757_p10 = pnand %p3755_p6, %p3726_p8  ;;  %p3761_p9 = scmp.lt.u32.totalorder %s3759_s20, %s3754_s8 }
 0x135   : > { %p3763_p12 = scmp.lt.u32.totalorder %s3754_s8, %s4303_s2 }
 0x136   : > { %p3758_p0 = pneg %p3757_p10  ;;  %p3762_p4 = por %p3761_p9, %p3760_p5 }
 0x138   : > { %p3764_p13 = por %p3763_p12, %p3762_p4 }
 0x13a   : > { %p3765_p1 = pnand %p3764_p13, %p3758_p0 }
 0x13c   : > { %3768 = shalt.err (!%p3765_p1)
}
 0x13d   : > { %s3769_s5 = scalar_lea.vmem %s579_s4, 16  ;;  %s3888_s18 = smov [#allocation5]  }
 0x13e   : > { %p3770_p3 = scmp.ne.s32.totalorder %s579_s4, %s3769_s5  ;;  %s3774_s29 = sshll.u32 %s3888_s18, 4  ;;  %s3775_s29 = int_to_ptr.vmem [resolvable:$false] %s3774_s29 }
 0x13f   : > { %s3776_s7 = scalar_lea.vmem %s3775_s29, 32  ;;  %p3777_p10 = scmp.lt.s32.totalorder %s579_s4, %s3775_s29 }
 0x140   : > { %p3772_p2 = pnand %p3770_p3, %p3726_p8  ;;  %p3778_p7 = scmp.lt.s32.totalorder %s3776_s7, %s3769_s5 }
 0x142   : > { %p3773_p6 = pneg %p3772_p2  ;;  %p3779_p5 = por %p3778_p7, %p3777_p10 }
 0x144   : > { %p3780_p9 = pnand %p3779_p5, %p3773_p6 }
 0x146   : > { %3783 = shalt.err (!%p3780_p9)
}
 0x147   : > { %3339 = dma.hbm_to_vmem [thread:$0]  (!%p4261_p11), %s4303_s2, 16, %s579_s4, %s569_s6  }
 0x148   : > { %s4806_s8 = sld [smem:[#allocation29_spill]] }
 0x14e   : > { %p4807_p0 = scmp.ne.s32.totalorder %s4806_s8, 0 }
 0x14f   : > { %s4330_s16 = sand.u32 (!%p4807_p0), 1, %s3866_s22   ;;  %p4808_p7 = scmp.ne.s32.totalorder (!%p4807_p0), %s4798_s17, 0 }
 0x150   : > { %587 = sbr.rel (%p4807_p0) target bundleno = 3917 (0xf4d), region = 84  ;;  %s2839_s28 = sshll.u32 (!%p4807_p0), %s4330_s16, 4 }
 0x151   : > { %s590_s14 = scalar_lea.sflag (!%p4807_p0), [#allocation3], %s4330_s16  ;;  %s593_s9 = scalar_lea.vmem (!%p4807_p0), [#allocation2], %s2839_s28 }
 0x157   : > { %3829 = dma.done.wait (%p4808_p7), %s590_s14, 256  }
 0x158   : > { %3831 = vsyncadd (%p4808_p7), %s590_s14, 4294967040  ;;  %s598_s4 = sand.u32 1, %s4007_s27   ;;  %s601_s15 = scalar_lea.vmem [#allocation5], %s4330_s16 }
 0x159   : > { %s599_s6 = scalar_lea.sflag [#allocation6], %s598_s4 }
 0x15a   : > { %3833 = dma.done.wait (%p4808_p7), %s599_s6, 16  }
 0x15b   : > { %3835 = vsyncadd (%p4808_p7), %s599_s6, 4294967280  ;;  %p4809_p11 = scmp.eq.s32.totalorder %s4007_s27, 0 }
 0x15d   : > { %3837 = dma.done.wait (%p4809_p11), [#allocation6], 256   ;;  %p4810_p8 = pmov %p4809_p11 }
 0x15f   : > { %3839 = vsyncadd (%p4810_p8), [#allocation6], 4294967040  ;;  %p4811_p4 = pmov %p4810_p8 }
 0x161   : > { %3841 = dma.done.wait (%p4811_p4), [#allocation9], 64   ;;  %p4812_p12 = pmov %p4811_p4 }
 0x162   : > { %p4813_p13 = pmov %p4811_p4 }
 0x163   : > { %3843 = vsyncadd (%p4812_p12), [#allocation9], 4294967232 }
 0x164   : > { %3845 = dma.done.wait (%p4813_p13), [#allocation12], 5152   ;;  %p4814_p1 = pmov %p4811_p4 }
 0x166   : > { %3847 = vsyncadd (%p4814_p1), [#allocation12], 4294962144  ;;  %p4815_p3 = pmov %p4814_p1 }
 0x167   : > { %p4816_p2 = pmov %p4814_p1 }
 0x168   : > { %3849 = dma.done.wait (%p4815_p3), [#allocation15], 32  }
 0x169   : > { %3851 = vsyncadd (%p4816_p2), [#allocation15], 4294967264  ;;  %p4817_p6 = pmov %p4814_p1 }
 0x16a   : > { %p4818_p10 = pmov %p4814_p1 }
 0x16b   : > { %3853 = dma.done.wait (%p4817_p6), [#allocation18], 32  }
 0x16c   : > { %3855 = vsyncadd (%p4818_p10), [#allocation18], 4294967264  ;;  %v693_v0 = vld [vmem:[%s593_s9] sm:$0xff]  ;;  %vm769_vm0 = vcmask 261120   ;;  %v694_v2 = vld [vmem:[%s593_s9 + $0x8] sm:$0xff]  ;;  %v699_v29 = vlaneseq  ;;  %s4819_s20 = sld [smem:[#allocation38_spill]] }
 0x16d   : > { %v695_v1 = vld [vmem:[#allocation7] sm:$0xff]  ;;  %v696_v4 = vld [vmem:[#allocation7 + $0x8] sm:$0xff]  ;;  %v733_v18 = vld [vmem:[#allocation11 + $0x20] sm:$0xff]  ;;  %vm3890_vm9 = vmmov 0   ;;  %s4820_s29 = sld [smem:[#allocation36_spill]]  ;;  %vm1907_vm10 = vcmask 64512  }
 0x16e   : > { %v4366_v3 = vadd.f32 %v695_v1, %v693_v0  ;;  %v4368_v5 = vadd.f32 %v696_v4, %v694_v2  ;;  %v734_v19 = vld [vmem:[#allocation11 + $0x28] sm:$0xff]  ;;  %v735_v21 = vld [vmem:[#allocation11 + $0x30] sm:$0xff]  ;;  %v736_v22 = vld [vmem:[#allocation11 + $0x38] sm:$0xff]  ;;  %v4378_v33 = vshrl.u32 %v699_v29, 7  ;;  %s3891_s7 = smov 112   ;;  %s3892_s8 = smov 120  }
 0x16f   : > { %v3167_v20 = vpack.c.bf16 %v734_v19, %v733_v18  ;;  %v3171_v23 = vpack.c.bf16 %v736_v22, %v735_v21  ;;  %v729_v24 = vld [vmem:[#allocation11] sm:$0xff]  ;;  %v730_v25 = vld [vmem:[#allocation11 + $0x8] sm:$0xff]  ;;  %v4383_v36 = vld [vmem:[#allocation8] sm:$0x3]  ;;  %s3893_s14 = smov 104   ;;  %s3894_s9 = smov 64  }
 0x170   : > { %v770_v6 = vsel %vm769_vm0, %v4366_v3, 0.0  ;;  %v773_v7 = vsel %vm769_vm0, %v4368_v5, 0.0  ;;  %v3175_v26 = vpack.c.bf16 %v730_v25, %v729_v24  ;;  %v4381_v35 = vsub.s32 0, %v4378_v33  ;;  %v4387_v39 = vld [vmem:[#allocation10] sm:$0x3]  ;;  %v731_v55 = vld [vmem:[#allocation11 + $0x10] sm:$0xff] }
 0x171   : > { %771 = vadd.xlane.f32.xlu0 %v770_v6  ;;  %3168 = vmatprep.subr.bf16.mxu0 %v3167_v20  ;;  %v706_v41 = vand.u32 15, %v4378_v33  ;;  %vm830_vm1 = vcmp.lt.s32.totalorder %v4378_v33, 1  ;;  %vm811_vm3 = vcmp.lt.s32.totalorder %v4378_v33, 2  ;;  %v732_v56 = vld [vmem:[#allocation11 + $0x18] sm:$0xff]  ;;  %v737_v62 = vld [vmem:[#allocation11 + $0x40] sm:$0xff]  ;;  %v738_v63 = vld [vmem:[#allocation11 + $0x48] sm:$0xff] }
 0x172   : > { %3170 = vmatpush3.bf16.msra.mxu0 %v3167_v20  ;;  %v800_v37 = vrot.slane %v4383_v36, %v4381_v35  ;;  %v806_v42 = vrot.slane %v4387_v39, %v4381_v35  ;;  %v3179_v60 = vpack.c.bf16 %v732_v56, %v731_v55  ;;  %v3183_v1 = vpack.c.bf16 %v738_v63, %v737_v62  ;;  %v739_v2 = vld [vmem:[#allocation11 + $0x50] sm:$0xff]  ;;  %v740_v4 = vld [vmem:[#allocation11 + $0x58] sm:$0xff]  ;;  %v745_v18 = vld [vmem:[#allocation11 + $0x80] sm:$0xff]  ;;  %s3895_s4 = smov 96   ;;  %s3896_s6 = smov 8  }
 0x173   : > { %3172 = vmatprep.subr.bf16.mxu0 %v3171_v23  ;;  %v4392_v46 = vadd.s32 4294967295, %v706_v41  ;;  %v4398_v50 = vadd.s32 4294967294, %v706_v41  ;;  %v3187_v6 = vpack.c.bf16 %v740_v4, %v739_v2  ;;  %vm1094_vm5 = vcmp.lt.s32.totalorder %v4378_v33, 7  ;;  %v746_v19 = vld [vmem:[#allocation11 + $0x88] sm:$0xff]  ;;  %v748_v24 = vld [vmem:[#allocation11 + $0x98] sm:$0xff]  ;;  %v755_v63 = vld [vmem:[#allocation11 + $0xd0] sm:$0xff] }
 0x174   : > { %v3199_v22 = vpack.c.bf16 %v746_v19, %v745_v18  ;;  %vm1196_vm7 = vcmp.lt.s32.totalorder %v4378_v33, 6  ;;  %v749_v2 = vld [vmem:[#allocation11 + $0xa0] sm:$0xff]  ;;  %v750_v4 = vld [vmem:[#allocation11 + $0xa8] sm:$0xff]  ;;  %vm2130_vm11 = vcmask 130048   ;;  %s3898_s17 = smov 24   ;;  %vm2439_vm12 = vcmask 195584  }
 0x175   : > { %774 = vadd.xlane.f32.xlu0 %v773_v7  ;;  %vm835_vm2 = vcmp.ge.s32.totalorder %v4392_v46, 0  ;;  %vm816_vm4 = vcmp.ge.s32.totalorder %v4398_v50, 0  ;;  %v759_v46 = vld [vmem:[#allocation11 + $0xf0] sm:$0xff]  ;;  %s4821_s25 = sld [smem:[#allocation39_spill]]  ;;  %s2899_s2 = sshll.u32 %s4007_s27, 8 }
 0x176   : > { %3174 = vmatpush3.bf16.msra.mxu0 %v3171_v23  ;;  %v747_v23 = vld [vmem:[#allocation11 + $0x90] sm:$0xff]  ;;  %s689_s3 = scalar_lea.vmem [#allocation20], %s2839_s28  ;;  %s2631_s27 = scalar_lea.sflag [#allocation4], %s4330_s16 }
 0x177   : > { %3176 = vmatprep.subr.bf16.mxu0 %v3175_v26  ;;  %s2644_s5 = sshll.u32 %s689_s3, 4  ;;  %p4825_p9 = scmp.ne.s32.totalorder %s4799_s26, 0  ;;  %s4699_s5 = int_to_ptr.vmem [resolvable:$true] %s2644_s5 }
 0x178   : > { %s3784_s28 = scalar_lea.vmem %s4699_s5, 256 }
 0x179   : > { %p3785_p5 = scmp.ne.s32.totalorder %s4699_s5, %s3784_s28 }
 0x17b   : > { %p3786_p0 = pnand %p3785_p5, %p4825_p9 }
 0x17d   : > { %p3787_p7 = pneg %p3786_p0 }
 0x1fe   : > { %v772_v8 = vpop.xlane.xlu0 %771 }
 0x1ff   : > { %v777_v9 = vmul.f32 0.03125, %v772_v8  ;;  %v741_v8 = vld [vmem:[#allocation11 + $0x60] sm:$0xff] }
 0x201   : > { %v779_v10 = vsub.f32 %v4366_v3, %v777_v9  ;;  %v742_v9 = vld [vmem:[#allocation11 + $0x68] sm:$0xff] }
 0x202   : > { %v775_v11 = vpop.xlane.xlu0 %774 }
 0x203   : > { %v778_v12 = vmul.f32 0.03125, %v775_v11  ;;  %v781_v13 = vmul.f32 %v779_v10, %v779_v10  ;;  %v3191_v11 = vpack.c.bf16 %v742_v9, %v741_v8 }
 0x205   : > { %v780_v14 = vsub.f32 %v4368_v5, %v778_v12  ;;  %v783_v15 = vsel %vm769_vm0, %v781_v13, 0.0  ;;  %v743_v12 = vld [vmem:[#allocation11 + $0x70] sm:$0xff]  ;;  %v744_v13 = vld [vmem:[#allocation11 + $0x78] sm:$0xff] }
 0x206   : > { %784 = vadd.xlane.f32.xlu1 %v783_v15 }
 0x207   : > { %v782_v16 = vmul.f32 %v780_v14, %v780_v14 }
 0x209   : > { %v786_v17 = vsel %vm769_vm0, %v782_v16, 0.0 }
 0x20a   : > { %787 = vadd.xlane.f32.xlu1 %v786_v17  ;;  %v3195_v17 = vpack.c.bf16 %v744_v13, %v743_v12  ;;  %v4476_v13 = vsub.s32 1, %v4378_v33 }
 0x293   : > { %v785_v27 = vpop.xlane.xlu1 %784 }
 0x294   : > { %v789_v28 = vmul.f32 0.03125, %v785_v27 }
 0x296   : > { %v791_v30 = vadd.f32 1e-05, %v789_v28  ;;  %v3203_v28 = vpack.c.bf16 %v748_v24, %v747_v23 }
 0x297   : > { %v788_v31 = vpop.xlane.xlu1 %787 }
 0x298   : > { %3424 = vrsqrt.f32 %v791_v30  ;;  %v790_v32 = vmul.f32 0.03125, %v788_v31 }
 0x29a   : > { %v792_v34 = vadd.f32 1e-05, %v790_v32 }
 0x29c   : > { %3426 = vrsqrt.f32 %v792_v34 }
 0x2a2   : > { %v3425_v38 = vpop.eup %3424 }
 0x2a3   : > { %v795_v40 = vmul.f32 %v3425_v38, %v779_v10  ;;  %v701_v10 = vadd.s32 8, %v4378_v33 }
 0x2a5   : > { %v801_v43 = vmul.f32 %v800_v37, %v795_v40  ;;  %v713_v15 = vand.u32 15, %v701_v10 }
 0x2a6   : > { %v3427_v44 = vpop.eup %3426 }
 0x2a7   : > { %v796_v45 = vmul.f32 %v3427_v44, %v780_v14  ;;  %v4394_v47 = vadd.f32 %v806_v42, %v801_v43  ;;  %v4434_v21 = vadd.s32 1, %v713_v15  ;;  %v4448_v31 = vadd.s32 2, %v713_v15 }
 0x2a9   : > { %v802_v48 = vmul.f32 %v800_v37, %v796_v45  ;;  %v828_v51 = vrot.slane %v4394_v47, 7  ;;  %v809_v53 = vrot.slane %v4394_v47, 6  ;;  %v1092_v16 = vrot.slane %v4394_v47, 1  ;;  %v4457_v37 = vld [vmem:[#allocation13] sm:$0x3] }
 0x2aa   : > { %vm1102_vm6 = vcmp.lt.s32.totalorder %v4434_v21, 16  ;;  %v1194_v27 = vrot.slane %v4394_v47, 2  ;;  %vm1204_vm8 = vcmp.lt.s32.totalorder %v4448_v31, 16  ;;  %v1299_v38 = vrot.slane %v4457_v37, %v4381_v35 }
 0x2ab   : > { %v4396_v49 = vadd.f32 %v806_v42, %v802_v48  ;;  %v1782_v21 = vrot.slane %v4457_v37, %v4476_v13 }
 0x2ad   : > { %v829_v52 = vrot.slane %v4396_v49, 7  ;;  %v810_v54 = vrot.slane %v4396_v49, 6  ;;  %v1093_v14 = vrot.slane %v4396_v49, 1 }
 0x2af   : > { %v832_v57 = vsel %vm830_vm1, %v829_v52, %v828_v51  ;;  %v813_v58 = vsel %vm811_vm3, %v810_v54, %v809_v53  ;;  %v831_v61 = vsel %vm830_vm1, %v828_v51, %v829_v52  ;;  %v812_v7 = vsel %vm811_vm3, %v809_v53, %v810_v54 }
 0x2b0   : > { %v845_v59 = vsel %vm835_vm2, %v832_v57, 0.0  ;;  %v826_v0 = vsel %vm816_vm4, %v813_v58, 0.0  ;;  %v1095_v20 = vsel %vm1094_vm5, %v1092_v16, %v1093_v14  ;;  %v1096_v25 = vsel %vm1094_vm5, %v1093_v14, %v1092_v16 }
 0x2b1   : > { %2993 = vmatprep.mubr.msk.f32.mxu0 %vm769_vm0, %v845_v59  ;;  %v1110_v29 = vsel %vm1102_vm6, %v1096_v25, 0.0  ;;  %v1335_v14 = vrot.slane %v4383_v36, %v4476_v13 }
 0x2b2   : > { %2994 = vmatmul.mubr.msk.f32.vlgmr.msra.gmra.mrb[0].mxu0 %vm769_vm0, %v831_v61  ;;  %v754_v61 = vld [vmem:[#allocation11 + $0xc8] sm:$0xff] }
 0x2b3   : > { %3178 = vmatpush3.bf16.msra.mxu0 %v3175_v26  ;;  %3004 = vmatprep.mubr.msk.f32.mxu0 %vm769_vm0, %v826_v0  ;;  %v1195_v26 = vrot.slane %v4396_v49, 2  ;;  %v756_v0 = vld [vmem:[#allocation11 + $0xd8] sm:$0xff] }
 0x2b4   : > { %3180 = vmatprep.subr.bf16.mxu0 %v3179_v60 }
 0x2b5   : > { %v1197_v30 = vsel %vm1196_vm7, %v1194_v27, %v1195_v26  ;;  %v1198_v32 = vsel %vm1196_vm7, %v1195_v26, %v1194_v27 }
 0x2b6   : > { %v1212_v34 = vsel %vm1204_vm8, %v1198_v32, 0.0 }
 0x2b7   : > { %3182 = vmatpush3.bf16.msra.mxu0 %v3179_v60  ;;  %v753_v60 = vld [vmem:[#allocation11 + $0xc0] sm:$0xff] }
 0x2b8   : > { %3184 = vmatprep.subr.bf16.mxu0 %v3183_v1  ;;  %v3207_v62 = vpack.c.bf16 %v754_v61, %v753_v60  ;;  %v767_v60 = vld [vmem:[#allocation11 + $0x130] sm:$0xff]  ;;  %v768_v61 = vld [vmem:[#allocation11 + $0x138] sm:$0xff] }
 0x2ba   : > { %3005 = vmatmul.mubr.msk.f32.vlgmr.msra.gmra.mrb[0].mxu0 %vm769_vm0, %v812_v7  ;;  %3208 = vmatprep.subr.bf16.mxu1 %v3207_v62 }
 0x2bb   : > { %3186 = vmatpush3.bf16.msra.mxu0 %v3183_v1  ;;  %3015 = vmatprep.mubr.msk.f32.mxu0 %vm769_vm0, %v4394_v47  ;;  %v3211_v1 = vpack.c.bf16 %v756_v0, %v755_v63 }
 0x2bc   : > { %3188 = vmatprep.subr.bf16.mxu0 %v3187_v6  ;;  %3210 = vmatpush3.bf16.msra.mxu1 %v3207_v62 }
 0x2bd   : > { %3212 = vmatprep.subr.bf16.mxu1 %v3211_v1 }
 0x2bf   : > { %3190 = vmatpush3.bf16.msra.mxu0 %v3187_v6  ;;  %v3215_v6 = vpack.c.bf16 %v750_v4, %v749_v2 }
 0x2c0   : > { %3192 = vmatprep.subr.bf16.mxu0 %v3191_v11  ;;  %3214 = vmatpush3.bf16.msra.mxu1 %v3211_v1  ;;  %v3243_v1 = vpack.c.bf16 %v768_v61, %v767_v60 }
 0x2c1   : > { %3216 = vmatprep.subr.bf16.mxu1 %v3215_v6 }
 0x2c2   : > { %3016 = vmatmul.mubr.msk.f32.vlgmr.msra.gmra.mrb[0].mxu0 %vm769_vm0, %v4396_v49 }
 0x2c3   : > { %3194 = vmatpush3.bf16.msra.mxu0 %v3191_v11  ;;  %3026 = vmatprep.mubr.msk.f32.mxu0 %vm769_vm0, %v1095_v20 }
 0x2c4   : > { %3196 = vmatprep.subr.bf16.mxu0 %v3195_v17 }
 0x2c7   : > { %3198 = vmatpush3.bf16.msra.mxu0 %v3195_v17  ;;  %v1341_v17 = vrot.slane %v4387_v39, %v4476_v13 }
 0x2c8   : > { %3200 = vmatprep.subr.bf16.mxu0 %v3199_v22 }
 0x2ca   : > { %3027 = vmatmul.mubr.msk.f32.vlgmr.msra.gmra.mrb[0].mxu0 %vm769_vm0, %v1110_v29  ;;  %v752_v29 = vld [vmem:[#allocation11 + $0xb8] sm:$0xff] }
 0x2cb   : > { %3202 = vmatpush3.bf16.msra.mxu0 %v3199_v22  ;;  %3037 = vmatprep.mubr.msk.f32.mxu0 %vm769_vm0, %v1197_v30 }
 0x2cc   : > { %3204 = vmatprep.subr.bf16.mxu0 %v3203_v28 }
 0x2cf   : > { %3206 = vmatpush3.bf16.msra.mxu0 %v3203_v28  ;;  %v751_v28 = vld [vmem:[#allocation11 + $0xb0] sm:$0xff] }
 0x2d2   : > { %3038 = vmatmul.mubr.msk.f32.vlgmr.msra.gmra.mrb[0].mxu0 %vm769_vm0, %v1212_v34  ;;  %v3219_v34 = vpack.c.bf16 %v752_v29, %v751_v28 }
 0x3a5   : > { %v3039_v40 = vpop.f32.mrb[0].mxu0 }
 0x3a6   : > { %v1301_v41 = vadd.f32 %v3039_v40, %v1299_v38  ;;  %v1285_v42 = vpop.f32.mrb[1].mxu0  ;;  %v757_v40 = vld [vmem:[#allocation11 + $0xe0] sm:$0xff] }
 0x3a7   : > { %v1300_v43 = vadd.f32 %v1299_v38, %v1285_v42 }
 0x3a8   : > { %v1303_v44 = vmax.f32 %v1301_v41, 0.0  ;;  %v758_v41 = vld [vmem:[#allocation11 + $0xe8] sm:$0xff] }
 0x3a9   : > { %v1302_v45 = vmax.f32 %v1300_v43, 0.0  ;;  %v3223_v43 = vpack.c.bf16 %v758_v41, %v757_v40 }
 0x3aa   : > { %v4462_v47 = vadd.f32 %v1303_v44, %v4368_v5  ;;  %v760_v44 = vld [vmem:[#allocation11 + $0xf8] sm:$0xff] }
 0x3ab   : > { %v4465_v48 = vadd.f32 %v1302_v45, %v4366_v3  ;;  %v3227_v45 = vpack.c.bf16 %v760_v44, %v759_v46 }
 0x3ac   : > { %v1309_v49 = vsel %vm769_vm0, %v4462_v47, 0.0 }
 0x3ad   : > { %1310 = vadd.xlane.f32.xlu1 %v1309_v49  ;;  %v1306_v51 = vsel %vm769_vm0, %v4465_v48, 0.0 }
 0x3ae   : > { %1307 = vadd.xlane.f32.xlu0 %v1306_v51  ;;  %v761_v51 = vld [vmem:[#allocation11 + $0x100] sm:$0xff] }
 0x43a   : > { %v1311_v52 = vpop.xlane.xlu1 %1310 }
 0x43b   : > { %v1313_v53 = vmul.f32 0.03125, %v1311_v52  ;;  %v1308_v54 = vpop.xlane.xlu0 %1307  ;;  %v762_v52 = vld [vmem:[#allocation11 + $0x108] sm:$0xff] }
 0x43c   : > { %v1312_v55 = vmul.f32 0.03125, %v1308_v54  ;;  %v3231_v50 = vpack.c.bf16 %v762_v52, %v761_v51  ;;  %v764_v54 = vld [vmem:[#allocation11 + $0x118] sm:$0xff] }
 0x43d   : > { %v1315_v56 = vsub.f32 %v4462_v47, %v1313_v53  ;;  %v763_v53 = vld [vmem:[#allocation11 + $0x110] sm:$0xff] }
 0x43e   : > { %v1314_v5 = vsub.f32 %v4465_v48, %v1312_v55 }
 0x43f   : > { %v1317_v57 = vmul.f32 %v1315_v56, %v1315_v56 }
 0x440   : > { %v1316_v58 = vmul.f32 %v1314_v5, %v1314_v5 }
 0x441   : > { %v1321_v3 = vsel %vm769_vm0, %v1317_v57, 0.0  ;;  %v765_v57 = vld [vmem:[#allocation11 + $0x120] sm:$0xff] }
 0x442   : > { %1322 = vadd.xlane.f32.xlu1 %v1321_v3  ;;  %v1318_v59 = vsel %vm769_vm0, %v1316_v58, 0.0  ;;  %v766_v58 = vld [vmem:[#allocation11 + $0x128] sm:$0xff] }
 0x443   : > { %1319 = vadd.xlane.f32.xlu0 %v1318_v59  ;;  %v3239_v59 = vpack.c.bf16 %v766_v58, %v765_v57 }
 0x4cf   : > { %v1323_v7 = vpop.xlane.xlu1 %1322 }
 0x4d0   : > { %v1325_v8 = vmul.f32 0.03125, %v1323_v7  ;;  %v1320_v9 = vpop.xlane.xlu0 %1319 }
 0x4d1   : > { %v1324_v10 = vmul.f32 0.03125, %v1320_v9 }
 0x4d2   : > { %v1327_v11 = vadd.f32 1e-05, %v1325_v8 }
 0x4d3   : > { %v1326_v12 = vadd.f32 1e-05, %v1324_v10 }
 0x4d4   : > { %3428 = vrsqrt.f32 %v1327_v11 }
 0x4d5   : > { %3430 = vrsqrt.f32 %v1326_v12 }
 0x4de   : > { %v3429_v15 = vpop.eup %3428 }
 0x4df   : > { %v3431_v16 = vpop.eup %3430  ;;  %v1331_v18 = vmul.f32 %v3429_v15, %v1315_v56 }
 0x4e0   : > { %v1330_v19 = vmul.f32 %v3431_v16, %v1314_v5  ;;  %v3235_v5 = vpack.c.bf16 %v764_v54, %v763_v53 }
 0x4e1   : > { %v1337_v20 = vmul.f32 %v1335_v14, %v1331_v18 }
 0x4e2   : > { %v1336_v22 = vmul.f32 %v1335_v14, %v1330_v19 }
 0x4e3   : > { %v4482_v23 = vadd.f32 %v1341_v17, %v1337_v20 }
 0x4e4   : > { %v4484_v24 = vadd.f32 %v1341_v17, %v1336_v22 }
 0x4e5   : > { %v1351_v25 = vrot.slane %v4482_v23, 7  ;;  %v1345_v26 = vrot.slane %v4482_v23, 6  ;;  %v1602_v56 = vrot.slane %v4482_v23, 1  ;;  %v1691_v0 = vrot.slane %v4482_v23, 2 }
 0x4e6   : > { %v1350_v27 = vrot.slane %v4484_v24, 7  ;;  %v1344_v36 = vrot.slane %v4484_v24, 6  ;;  %v1601_v55 = vrot.slane %v4484_v24, 1  ;;  %v1690_v63 = vrot.slane %v4484_v24, 2 }
 0x4e8   : > { %v1353_v39 = vsel %vm830_vm1, %v1351_v25, %v1350_v27  ;;  %v1347_v30 = vsel %vm811_vm3, %v1345_v26, %v1344_v36  ;;  %v1352_v38 = vsel %vm830_vm1, %v1350_v27, %v1351_v25  ;;  %v1346_v49 = vsel %vm811_vm3, %v1344_v36, %v1345_v26  ;;  %v3419_v26 = vld [vmem:[%s4819_s20 + $0x8] sm:$0xff]  }
 0x4e9   : > { %v1354_v32 = vsel %vm835_vm2, %v1353_v39, 0.0  ;;  %v1348_v42 = vsel %vm816_vm4, %v1347_v30, 0.0  ;;  %v1603_v3 = vsel %vm1094_vm5, %v1601_v55, %v1602_v56  ;;  %v1604_v62 = vsel %vm1094_vm5, %v1602_v56, %v1601_v55 }
 0x4ea   : > { %3048 = vmatprep.mubr.msk.f32.mxu1 %vm769_vm0, %v1354_v32  ;;  %v1606_v2 = vsel %vm1102_vm6, %v1604_v62, 0.0  ;;  %v1692_v4 = vsel %vm1196_vm7, %v1690_v63, %v1691_v0  ;;  %v3889_v25 = vmov 0.0  }
 0x4eb   : > { %3049 = vmatmul.mubr.msk.f32.vlgmr.msra.gmra.mrb[0].mxu1 %vm769_vm0, %v1352_v38  ;;  %3095 = vmatprep.subr.bf16.mxu0 %v3889_v25 }
 0x4ec   : > { %3218 = vmatpush3.bf16.msra.mxu1 %v3215_v6  ;;  %3059 = vmatprep.mubr.msk.f32.mxu1 %vm769_vm0, %v1348_v42  ;;  %v1693_v6 = vsel %vm1196_vm7, %v1691_v0, %v1690_v63  ;;  %v2871_v42 = vld [vmem:[#allocation14] ss:$0 sm:$0xff]  ;;  %v1902_v0 = vld [vmem:[%s601_s15] sm:$0x1]  ;;  %s3897_s15 = smov 16  }
 0x4ed   : > { %3220 = vmatprep.subr.bf16.mxu1 %v3219_v34  ;;  %v1695_v7 = vsel %vm1204_vm8, %v1693_v6, 0.0  ;;  %3099 = vmatprep.mubr.msk.bf16.mxu0 %vm3890_vm9, %v3889_v25 }
 0x4f0   : > { %3222 = vmatpush3.bf16.msra.mxu1 %v3219_v34  ;;  %v2870_v34 = vld [vmem:[%s4820_s29] ss:$0 sm:$0xff] }
 0x4f1   : > { %3224 = vmatprep.subr.bf16.mxu1 %v3223_v43 }
 0x4f3   : > { %3060 = vmatmul.mubr.msk.f32.vlgmr.msra.gmra.mrb[0].mxu1 %vm769_vm0, %v1346_v49 }
 0x4f4   : > { %3226 = vmatpush3.bf16.msra.mxu1 %v3223_v43  ;;  %3070 = vmatprep.mubr.msk.f32.mxu1 %vm769_vm0, %v4484_v24  ;;  %v3418_v24 = vld [vmem:[%s4819_s20] sm:$0xff]  }
 0x4f5   : > { %3228 = vmatprep.subr.bf16.mxu1 %v3227_v45  ;;  %3096 = vmatpush3.bf16.msra.mxu0 %v3418_v24 }
 0x4f6   : > { %3097 = vmatprep.subr.bf16.mxu0 %v3889_v25 }
 0x4f8   : > { %3230 = vmatpush3.bf16.msra.mxu1 %v3227_v45 }
 0x4f9   : > { %3232 = vmatprep.subr.bf16.mxu1 %v3231_v50  ;;  %3098 = vmatpush3.bf16.msra.mxu0 %v3419_v26 }
 0x4fa   : > { %3109 = vmatprep.subr.bf16.mxu0 %v3889_v25 }
 0x4fb   : > { %3071 = vmatmul.mubr.msk.f32.vlgmr.msra.gmra.mrb[0].mxu1 %vm769_vm0, %v4482_v23 }
 0x4fc   : > { %3234 = vmatpush3.bf16.msra.mxu1 %v3231_v50  ;;  %3081 = vmatprep.mubr.msk.f32.mxu1 %vm769_vm0, %v1603_v3 }
 0x4fd   : > { %3236 = vmatprep.subr.bf16.mxu1 %v3235_v5 }
 0x500   : > { %3238 = vmatpush3.bf16.msra.mxu1 %v3235_v5 }
 0x501   : > { %3240 = vmatprep.subr.bf16.mxu1 %v3239_v59 }
 0x503   : > { %3082 = vmatmul.mubr.msk.f32.vlgmr.msra.gmra.mrb[0].mxu1 %vm769_vm0, %v1606_v2 }
 0x504   : > { %3242 = vmatpush3.bf16.msra.mxu1 %v3239_v59  ;;  %3092 = vmatprep.mubr.msk.f32.mxu1 %vm769_vm0, %v1692_v4  ;;  %v2106_v4 = vrot.slane %v1902_v0, %v4381_v35 }
 0x505   : > { %3244 = vmatprep.subr.bf16.mxu1 %v3243_v1 }
 0x508   : > { %3246 = vmatpush3.bf16.msra.mxu1 %v3243_v1  ;;  %v1903_v1 = vsub.f32 1.0, %v1902_v0 }
 0x509   : > { %3103 = vmatprep.subr.bf16.mxu1 %v3889_v25 }
 0x50a   : > { %v1904_v2 = vmul.f32 -1e+30, %v1903_v1 }
 0x50b   : > { %3093 = vmatmul.mubr.msk.f32.vlgmr.msra.gmra.mrb[0].mxu1 %vm769_vm0, %v1695_v7 }
 0x50c   : > { %3105 = vmatprep.mubr.msk.bf16.mxu1 %vm3890_vm9, %v3889_v25  ;;  %v2120_v6 = vrot.slane %v1904_v2, %v4381_v35 }
 0x5de   : > { %v3094_v8 = vpop.f32.mrb[0].mxu1 }
 0x5df   : > { %v1784_v9 = vadd.f32 %v3094_v8, %v1782_v21  ;;  %v1768_v10 = vpop.f32.mrb[1].mxu1 }
 0x5e0   : > { %v1783_v11 = vadd.f32 %v1782_v21, %v1768_v10 }
 0x5e1   : > { %v1786_v12 = vmax.f32 %v1784_v9, 0.0 }
 0x5e2   : > { %v1785_v14 = vmax.f32 %v1783_v11, 0.0 }
 0x5e3   : > { %v4533_v15 = vadd.f32 %v1786_v12, %v4462_v47 }
 0x5e4   : > { %v4536_v33 = vadd.f32 %v1785_v14, %v4465_v48 }
 0x5e5   : > { %v1794_v31 = vsel %vm769_vm0, %v4533_v15, 0.0 }
 0x5e6   : > { %1795 = vadd.xlane.f32.xlu1 %v1794_v31  ;;  %v1791_v16 = vsel %vm769_vm0, %v4536_v33, 0.0 }
 0x5e7   : > { %1792 = vadd.xlane.f32.xlu0 %v1791_v16 }
 0x673   : > { %v1796_v37 = vpop.xlane.xlu1 %1795 }
 0x674   : > { %v1798_v13 = vmul.f32 0.03125, %v1796_v37  ;;  %v1793_v17 = vpop.xlane.xlu0 %1792 }
 0x675   : > { %v1797_v18 = vmul.f32 0.03125, %v1793_v17 }
 0x676   : > { %v1800_v19 = vsub.f32 %v4533_v15, %v1798_v13 }
 0x677   : > { %v1799_v47 = vsub.f32 %v4536_v33, %v1797_v18 }
 0x678   : > { %v1802_v20 = vmul.f32 %v1800_v19, %v1800_v19 }
 0x679   : > { %v1801_v22 = vmul.f32 %v1799_v47, %v1799_v47 }
 0x67a   : > { %v1806_v48 = vsel %vm769_vm0, %v1802_v20, 0.0 }
 0x67b   : > { %1807 = vadd.xlane.f32.xlu1 %v1806_v48  ;;  %v1803_v23 = vsel %vm769_vm0, %v1801_v22, 0.0 }
 0x67c   : > { %1804 = vadd.xlane.f32.xlu0 %v1803_v23 }
 0x708   : > { %v1808_v27 = vpop.xlane.xlu1 %1807 }
 0x709   : > { %v1810_v36 = vmul.f32 0.03125, %v1808_v27  ;;  %v1805_v28 = vpop.xlane.xlu0 %1804 }
 0x70a   : > { %v1809_v29 = vmul.f32 0.03125, %v1805_v28 }
 0x70b   : > { %v1812_v39 = vadd.f32 1e-05, %v1810_v36 }
 0x70c   : > { %v1811_v30 = vadd.f32 1e-05, %v1809_v29 }
 0x70d   : > { %3432 = vrsqrt.f32 %v1812_v39 }
 0x70e   : > { %3434 = vrsqrt.f32 %v1811_v30 }
 0x717   : > { %v3433_v32 = vpop.eup %3432 }
 0x718   : > { %v3435_v38 = vpop.eup %3434  ;;  %v1816_v40 = vmul.f32 %v3433_v32, %v1800_v19 }
 0x719   : > { %v1815_v41 = vmul.f32 %v3435_v38, %v1799_v47 }
 0x71a   : > { %v1824_v43 = vmul.f32 %v2870_v34, %v1816_v40 }
 0x71b   : > { %v1823_v46 = vmul.f32 %v2870_v34, %v1815_v41 }
 0x71c   : > { %v1832_v44 = vadd.f32 %v2871_v42, %v1824_v43 }
 0x71d   : > { %v1831_v45 = vadd.f32 %v2871_v42, %v1823_v46 }
 0x71f   : > { %v1833_v49 = vpack.c.bf16 %v1832_v44, %v1831_v45 }
 0x721   : > { %3100 = vmatmul.mubr.msk.bf16.vlgmr.msra.gmra.mrb[4].mxu0 %vm769_vm0, %v1833_v49 }
 0x722   : > { %3111 = vmatprep.mubr.msk.bf16.mxu0 %vm3890_vm9, %v3889_v25 }
 0x7f4   : > { %v1887_v51 = vpop.f32.mrb[4].mxu0 }
 0x7f5   : > { %v3101_v52 = vpop.f32.mrb[5].mxu0 }
 0x7f6   : > { %v1890_v50 = vpop.f32.mrb[6].mxu0 }
 0x7f7   : > { %v4566_v53 = vpack.c.bf16 %v1890_v50, %v1887_v51  ;;  %v3102_v54 = vpop.f32.mrb[7].mxu0 }
 0x7f9   : > { %1898 = vrot.lane.b32.xlu1 %v4566_v53, %s3891_s7  ;;  %1896 = vrot.lane.b32.xlu0 %v4566_v53, %s3892_s8  ;;  %v1912_v55 = vsel %vm1907_vm10, %v4566_v53, 0  ;;  %s4822_s8 = sld [smem:[#allocation40_spill]]  ;;  %s4824_s7 = sld [smem:[#allocation42_spill]] }
 0x7fa   : > { %3104 = vmatpush3.bf16.xpose.msra.mxu1 %v1912_v55 }
 0x7fb   : > { %3115 = vmatprep.subr.bf16.mxu1 %v3889_v25 }
 0x7fd   : > { %1900 = vrot.lane.b32.xlu1 %v4566_v53, %s3893_s14 }
 0x7ff   : > { %s4695_s14 = scalar_lea.hbm %s4824_s7, %s2899_s2 }
 0x801   : > { %1905 = vrot.lane.b32.xlu1 %v4566_v53, %s3894_s9 }
 0x86b   : > { %v4575_v56 = vpop.permute.xlu1 %1898  ;;  %v4577_v5 = vpop.permute.xlu0 %1896 }
 0x86c   : > { %2004 = vrot.lane.b32.xlu1 %v4575_v56, %s3894_s9  ;;  %1955 = vrot.lane.b32.xlu0 %v4577_v5, %s3894_s9  ;;  %v1961_v57 = vsel %vm1907_vm10, %v4577_v5, 0  ;;  %v2010_v59 = vsel %vm1907_vm10, %v4575_v56, 0 }
 0x86d   : > { %3110 = vmatpush3.bf16.xpose.msra.mxu0 %v1961_v57 }
 0x86e   : > { %3121 = vmatprep.subr.bf16.mxu0 %v3889_v25 }
 0x86f   : > { %v4584_v58 = vpop.permute.xlu1 %1900 }
 0x870   : > { %2053 = vrot.lane.b32.xlu0 %v4584_v58, %s3894_s9  ;;  %v2059_v62 = vsel %vm1907_vm10, %v4584_v58, 0  ;;  %s3899_s9 = smov [#allocation20]  }
 0x873   : > { %v1906_v3 = vpop.permute.xlu1 %1905 }
 0x874   : > { %3106 = vmatmul.mubr.msk.bf16.vlgmr.msra.gmra.mrb[4].mxu1 %vm1907_vm10, %v1906_v3 }
 0x875   : > { %3116 = vmatpush3.bf16.xpose.msra.mxu1 %v2010_v59  ;;  %3117 = vmatprep.mubr.msk.bf16.mxu1 %vm3890_vm9, %v3889_v25 }
 0x876   : > { %3127 = vmatprep.subr.bf16.mxu1 %v3889_v25 }
 0x8de   : > { %v2005_v60 = vpop.permute.xlu1 %2004  ;;  %v1956_v61 = vpop.permute.xlu0 %1955 }
 0x8df   : > { %3112 = vmatmul.mubr.msk.bf16.vlgmr.msra.gmra.mrb[8].mxu0 %vm1907_vm10, %v1956_v61  ;;  %3118 = vmatmul.mubr.msk.bf16.vlgmr.msra.gmra.mrb[8].mxu1 %vm1907_vm10, %v2005_v60 }
 0x8e0   : > { %3122 = vmatpush3.bf16.xpose.msra.mxu0 %v2059_v62  ;;  %3123 = vmatprep.mubr.msk.bf16.mxu0 %vm3890_vm9, %v3889_v25 }
 0x8e1   : > { %3129 = vmatprep.mubr.msk.bf16.mxu1 %vm3890_vm9, %v3889_v25  ;;  %3133 = vmatprep.subr.bf16.mxu0 %v3889_v25 }
 0x8e2   : > { %v2054_v63 = vpop.permute.xlu0 %2053 }
 0x8e7   : > { %3124 = vmatmul.mubr.msk.bf16.vlgmr.msra.gmra.mrb[12].mxu0 %vm1907_vm10, %v2054_v63 }
 0x8e8   : > { %3135 = vmatprep.mubr.msk.bf16.mxu0 %vm3890_vm9, %v3889_v25 }
 0x947   : > { %v1948_v7 = vpop.f32.mrb[4].mxu1 }
 0x948   : > { %v2108_v21 = vmul.f32 %v2106_v4, %v1948_v7  ;;  %v3107_v8 = vpop.f32.mrb[5].mxu1 }
 0x949   : > { %v1951_v9 = vpop.f32.mrb[6].mxu1 }
 0x94a   : > { %v2109_v10 = vmul.f32 %v2106_v4, %v1951_v9  ;;  %v3108_v11 = vpop.f32.mrb[7].mxu1  ;;  %v2122_v12 = vadd.f32 %v2120_v6, %v2108_v21 }
 0x94c   : > { %v2131_v14 = vsel %vm2130_vm11, %v2122_v12, -inf  ;;  %v2123_v31 = vadd.f32 %v2120_v6, %v2109_v10 }
 0x94d   : > { %2132 = vmax.xlane.f32.xlu1 %v2131_v14 }
 0x94e   : > { %v2134_v16 = vsel %vm2130_vm11, %v2123_v31, -inf }
 0x94f   : > { %2135 = vmax.xlane.f32.xlu0 %v2134_v16 }
 0x9b2   : > { %v1997_v37 = vpop.f32.mrb[8].mxu0  ;;  %v2046_v13 = vpop.f32.mrb[8].mxu1 }
 0x9b3   : > { %v2110_v17 = vmul.f32 %v2106_v4, %v1997_v37  ;;  %v2112_v18 = vmul.f32 %v2106_v4, %v2046_v13  ;;  %v3113_v35 = vpop.f32.mrb[9].mxu0  ;;  %v3119_v19 = vpop.f32.mrb[9].mxu1 }
 0x9b4   : > { %v2000_v47 = vpop.f32.mrb[10].mxu0  ;;  %v2049_v20 = vpop.f32.mrb[10].mxu1 }
 0x9b5   : > { %v2111_v22 = vmul.f32 %v2106_v4, %v2000_v47  ;;  %v3114_v48 = vpop.f32.mrb[11].mxu0  ;;  %v3120_v23 = vpop.f32.mrb[11].mxu1  ;;  %v2126_v24 = vadd.f32 %v2120_v6, %v2112_v18  ;;  %v2124_v26 = vadd.f32 %v2120_v6, %v2110_v17  ;;  %v2113_v27 = vmul.f32 %v2106_v4, %v2049_v20 }
 0x9b7   : > { %v2143_v36 = vsel %vm2130_vm11, %v2126_v24, -inf  ;;  %v2137_v28 = vsel %vm2130_vm11, %v2124_v26, -inf  ;;  %v2125_v29 = vadd.f32 %v2120_v6, %v2111_v22  ;;  %v2127_v38 = vadd.f32 %v2120_v6, %v2113_v27 }
 0x9b8   : > { %2144 = vmax.xlane.f32.xlu1 %v2143_v36  ;;  %2138 = vmax.xlane.f32.xlu0 %v2137_v28 }
 0x9b9   : > { %v2140_v34 = vsel %vm2130_vm11, %v2125_v29, -inf  ;;  %v2146_v46 = vsel %vm2130_vm11, %v2127_v38, -inf }
 0x9ba   : > { %v2095_v39 = vpop.f32.mrb[12].mxu0 }
 0x9bb   : > { %v2114_v30 = vmul.f32 %v2106_v4, %v2095_v39  ;;  %v3125_v32 = vpop.f32.mrb[13].mxu0 }
 0x9bc   : > { %2141 = vmax.xlane.f32.xlu0 %v2140_v34  ;;  %v2098_v40 = vpop.f32.mrb[14].mxu0 }
 0x9bd   : > { %v2115_v41 = vmul.f32 %v2106_v4, %v2098_v40  ;;  %v3126_v42 = vpop.f32.mrb[15].mxu0  ;;  %v2128_v43 = vadd.f32 %v2120_v6, %v2114_v30 }
 0x9bf   : > { %v2149_v44 = vsel %vm2130_vm11, %v2128_v43, -inf  ;;  %v2129_v45 = vadd.f32 %v2120_v6, %v2115_v41 }
 0x9c0   : > { %2147 = vmax.xlane.f32.xlu0 %v2146_v46  ;;  %2150 = vmax.xlane.f32.xlu1 %v2149_v44 }
 0x9c1   : > { %v2152_v49 = vsel %vm2130_vm11, %v2129_v45, -inf }
 0x9c4   : > { %2153 = vmax.xlane.f32.xlu0 %v2152_v49 }
 0x9d1   : > { %2223 = vrot.lane.b32.xlu1 %v4566_v53, %s3895_s4 }
 0x9da   : > { %v2133_v51 = vpop.xlane.xlu1 %2132 }
 0x9db   : > { %v2155_v54 = vsub.f32 %v2122_v12, %v2133_v51 }
 0x9dc   : > { %v2136_v52 = vpop.xlane.xlu0 %2135 }
 0x9dd   : > { %v2156_v50 = vsub.f32 %v2123_v31, %v2136_v52  ;;  %v2163_v57 = vmul.f32 1.442695, %v2155_v54 }
 0x9df   : > { %v2165_v55 = vmul.f32 1.442695, %v2156_v50 }
 0x9e1   : > { %3436 = vpow2.f32 %v2165_v55 }
 0x9e2   : > { %3438 = vpow2.f32 %v2163_v57 }
 0x9eb   : > { %v3437_v3 = vpop.eup %3436 }
 0x9ec   : > { %v2182_v59 = vsel %vm2130_vm11, %v3437_v3, 0.0  ;;  %v3439_v60 = vpop.eup %3438 }
 0x9ed   : > { %2183 = vadd.xlane.f32.xlu0 %v2182_v59  ;;  %v2179_v61 = vsel %vm2130_vm11, %v3439_v60, 0.0 }
 0x9f5   : > { %2180 = vadd.xlane.f32.xlu1 %v2179_v61 }
 0xa45   : > { %v2145_v62 = vpop.xlane.xlu1 %2144  ;;  %v2139_v63 = vpop.xlane.xlu0 %2138 }
 0xa46   : > { %v2159_v0 = vsub.f32 %v2126_v24, %v2145_v62  ;;  %v2157_v53 = vsub.f32 %v2124_v26, %v2139_v63 }
 0xa48   : > { %v2167_v1 = vmul.f32 1.442695, %v2157_v53  ;;  %v2171_v2 = vmul.f32 1.442695, %v2159_v0 }
 0xa49   : > { %v2142_v4 = vpop.xlane.xlu0 %2141 }
 0xa4a   : > { %v2158_v6 = vsub.f32 %v2125_v29, %v2142_v4  ;;  %3440 = vpow2.f32 %v2167_v1 }
 0xa4b   : > { %3442 = vpow2.f32 %v2171_v2 }
 0xa4c   : > { %v2169_v7 = vmul.f32 1.442695, %v2158_v6 }
 0xa4d   : > { %v2148_v21 = vpop.xlane.xlu0 %2147  ;;  %v2151_v8 = vpop.xlane.xlu1 %2150 }
 0xa4e   : > { %3444 = vpow2.f32 %v2169_v7  ;;  %v2160_v9 = vsub.f32 %v2127_v38, %v2148_v21  ;;  %v2161_v10 = vsub.f32 %v2128_v43, %v2151_v8 }
 0xa50   : > { %v2173_v11 = vmul.f32 1.442695, %v2160_v9  ;;  %v2175_v12 = vmul.f32 1.442695, %v2161_v10 }
 0xa51   : > { %v2224_v14 = vpop.permute.xlu1 %2223  ;;  %v2154_v31 = vpop.xlane.xlu0 %2153 }
 0xa52   : > { %3446 = vpow2.f32 %v2173_v11  ;;  %v2162_v16 = vsub.f32 %v2129_v45, %v2154_v31  ;;  %3128 = vmatpush3.bf16.msra.mxu1 %v2224_v14 }
 0xa53   : > { %3448 = vpow2.f32 %v2175_v12  ;;  %3139 = vmatprep.subr.bf16.mxu1 %v3889_v25 }
 0xa54   : > { %v2177_v37 = vmul.f32 1.442695, %v2162_v16  ;;  %v3441_v13 = vpop.eup %3440 }
 0xa55   : > { %v2185_v17 = vsel %vm2130_vm11, %v3441_v13, 0.0  ;;  %v3443_v18 = vpop.eup %3442 }
 0xa56   : > { %3450 = vpow2.f32 %v2177_v37  ;;  %2186 = vadd.xlane.f32.xlu1 %v2185_v17  ;;  %v2191_v47 = vsel %vm2130_vm11, %v3443_v18, 0.0 }
 0xa58   : > { %v3445_v35 = vpop.eup %3444 }
 0xa59   : > { %v2188_v19 = vsel %vm2130_vm11, %v3445_v35, 0.0 }
 0xa5a   : > { %2189 = vadd.xlane.f32.xlu0 %v2188_v19  ;;  %2192 = vadd.xlane.f32.xlu1 %v2191_v47 }
 0xa5c   : > { %v3447_v20 = vpop.eup %3446 }
 0xa5d   : > { %v3449_v22 = vpop.eup %3448  ;;  %v2194_v48 = vsel %vm2130_vm11, %v3447_v20, 0.0 }
 0xa5e   : > { %v2197_v23 = vsel %vm2130_vm11, %v3449_v22, 0.0  ;;  %2195 = vadd.xlane.f32.xlu0 %v2194_v48 }
 0xa5f   : > { %2198 = vadd.xlane.f32.xlu1 %v2197_v23 }
 0xa60   : > { %v3451_v24 = vpop.eup %3450 }
 0xa61   : > { %v2200_v26 = vsel %vm2130_vm11, %v3451_v24, 0.0 }
 0xa62   : > { %2201 = vadd.xlane.f32.xlu0 %v2200_v26 }
 0xa70   : > { %2317 = vrot.lane.b32.xlu1 %v4575_v56, %s3895_s4 }
 0xa74   : > { %2364 = vrot.lane.b32.xlu1 %v4584_v58, %s3895_s4 }
 0xa78   : > { %2270 = vrot.lane.b32.xlu0 %v4577_v5, %s3895_s4  ;;  %s3788_s4 = sshll.u32 %s3899_s9, 4  ;;  %s3789_s4 = int_to_ptr.vmem [resolvable:$false] %s3788_s4 }
 0xa79   : > { %p3791_p11 = scmp.lt.s32.totalorder %s4699_s5, %s3789_s4 }
 0xa7a   : > { %v2184_v27 = vpop.xlane.xlu0 %2183 }
 0xa7b   : > { %3452 = vrcp.f32 %v2184_v27 }
 0xa82   : > { %v2181_v36 = vpop.xlane.xlu1 %2180 }
 0xa83   : > { %3454 = vrcp.f32 %v2181_v36 }
 0xa85   : > { %v3453_v28 = vpop.eup %3452 }
 0xa86   : > { %v2212_v39 = vmul.f32 %v3453_v28, %v3437_v3 }
 0xa8d   : > { %v3455_v29 = vpop.eup %3454 }
 0xa8e   : > { %v2211_v30 = vmul.f32 %v3455_v29, %v3439_v60 }
 0xa90   : > { %v2219_v32 = vpack.c.bf16 %v2212_v39, %v2211_v30 }
 0xa92   : > { %3130 = vmatmul.mubr.msk.bf16.vlgmr.msra.gmra.mrb[12].mxu1 %vm2130_vm11, %v2219_v32 }
 0xa93   : > { %3141 = vmatprep.mubr.msk.bf16.mxu1 %vm3890_vm9, %v3889_v25 }
 0xae3   : > { %v2187_v56 = vpop.xlane.xlu1 %2186 }
 0xae4   : > { %3456 = vrcp.f32 %v2187_v56 }
 0xae7   : > { %v2190_v58 = vpop.xlane.xlu0 %2189  ;;  %v2193_v34 = vpop.xlane.xlu1 %2192 }
 0xae8   : > { %3458 = vrcp.f32 %v2190_v58 }
 0xae9   : > { %3460 = vrcp.f32 %v2193_v34 }
 0xaeb   : > { %v2196_v5 = vpop.xlane.xlu0 %2195 }
 0xaec   : > { %v2199_v38 = vpop.xlane.xlu1 %2198  ;;  %3462 = vrcp.f32 %v2196_v5  ;;  %v3420_v5 = vld [vmem:[%s4821_s25] sm:$0xff]  }
 0xaed   : > { %3464 = vrcp.f32 %v2199_v38  ;;  %v3421_v38 = vld [vmem:[%s4821_s25 + $0x8] sm:$0xff]  }
 0xaee   : > { %v3457_v41 = vpop.eup %3456 }
 0xaef   : > { %v2202_v40 = vpop.xlane.xlu0 %2201  ;;  %v2213_v46 = vmul.f32 %v3457_v41, %v3441_v13 }
 0xaf0   : > { %v2318_v42 = vpop.permute.xlu1 %2317  ;;  %3466 = vrcp.f32 %v2202_v40 }
 0xaf1   : > { %3140 = vmatpush3.bf16.msra.mxu1 %v2318_v42 }
 0xaf2   : > { %v3459_v43 = vpop.eup %3458  ;;  %3151 = vmatprep.subr.bf16.mxu1 %v3889_v25 }
 0xaf3   : > { %v2214_v44 = vmul.f32 %v3459_v43, %v3445_v35  ;;  %v2271_v45 = vpop.permute.xlu0 %2270  ;;  %v3461_v49 = vpop.eup %3460 }
 0xaf4   : > { %3134 = vmatpush3.bf16.msra.mxu0 %v2271_v45  ;;  %v2215_v50 = vmul.f32 %v3461_v49, %v3443_v18  ;;  %v2365_v55 = vpop.permute.xlu1 %2364 }
 0xaf5   : > { %v2220_v51 = vpack.c.bf16 %v2214_v44, %v2213_v46  ;;  %3145 = vmatprep.subr.bf16.mxu0 %v3889_v25 }
 0xaf6   : > { %v3463_v52 = vpop.eup %3462 }
 0xaf7   : > { %v2216_v54 = vmul.f32 %v3463_v52, %v3447_v20  ;;  %3136 = vmatmul.mubr.msk.bf16.vlgmr.msra.gmra.mrb[16].mxu0 %vm2130_vm11, %v2220_v51  ;;  %v3465_v57 = vpop.eup %3464  ;;  %v2883_v51 = vld [vmem:[#allocation16] ss:$0 sm:$0xff] }
 0xaf8   : > { %3146 = vmatpush3.bf16.msra.mxu0 %v2365_v55  ;;  %3147 = vmatprep.mubr.msk.bf16.mxu0 %vm3890_vm9, %v3889_v25  ;;  %v2217_v60 = vmul.f32 %v3465_v57, %v3449_v22  ;;  %v2884_v55 = vld [vmem:[#allocation17] ss:$0 sm:$0xff] }
 0xaf9   : > { %v2221_v3 = vpack.c.bf16 %v2216_v54, %v2215_v50  ;;  %3159 = vmatprep.subr.bf16.mxu0 %v3889_v25 }
 0xafa   : > { %v3467_v59 = vpop.eup %3466 }
 0xafb   : > { %v2218_v61 = vmul.f32 %v3467_v59, %v3451_v24  ;;  %3142 = vmatmul.mubr.msk.bf16.vlgmr.msra.gmra.mrb[16].mxu1 %vm2130_vm11, %v2221_v3 }
 0xafc   : > { %3155 = vmatprep.mubr.msk.bf16.mxu1 %vm3890_vm9, %v3889_v25  ;;  %3152 = vmatpush3.bf16.msra.mxu1 %v3420_v5 }
 0xafd   : > { %v2222_v62 = vpack.c.bf16 %v2218_v61, %v2217_v60  ;;  %3153 = vmatprep.subr.bf16.mxu1 %v3889_v25  ;;  %v3422_v61 = vld [vmem:[%s4822_s8] sm:$0xff]  }
 0xaff   : > { %3148 = vmatmul.mubr.msk.bf16.vlgmr.msra.gmra.mrb[20].mxu0 %vm2130_vm11, %v2222_v62  ;;  %v3423_v62 = vld [vmem:[%s4822_s8 + $0x8] sm:$0xff]  }
 0xb00   : > { %3163 = vmatprep.mubr.msk.bf16.mxu0 %vm3890_vm9, %v3889_v25  ;;  %3154 = vmatpush3.bf16.msra.mxu1 %v3421_v38 }
 0xb01   : > { %3160 = vmatpush3.bf16.msra.mxu0 %v3422_v61 }
 0xb02   : > { %3161 = vmatprep.subr.bf16.mxu0 %v3889_v25 }
 0xb05   : > { %3162 = vmatpush3.bf16.msra.mxu0 %v3423_v62 }
 0xb65   : > { %v2263_v63 = vpop.f32.mrb[12].mxu1 }
 0xb66   : > { %v3131_v0 = vpop.f32.mrb[13].mxu1 }
 0xb67   : > { %v2266_v53 = vpop.f32.mrb[14].mxu1 }
 0xb68   : > { %v3132_v1 = vpop.f32.mrb[15].mxu1 }
 0xbca   : > { %v2310_v2 = vpop.f32.mrb[16].mxu0 }
 0xbcb   : > { %2413 = vrot.lane.b32.xlu1 %v2310_v2, %s3896_s6  ;;  %v3137_v4 = vpop.f32.mrb[17].mxu0 }
 0xbcc   : > { %v2313_v6 = vpop.f32.mrb[18].mxu0 }
 0xbcd   : > { %2415 = vrot.lane.b32.xlu0 %v2313_v6, %s3896_s6  ;;  %v3138_v7 = vpop.f32.mrb[19].mxu0 }
 0xbce   : > { %v2357_v21 = vpop.f32.mrb[16].mxu1 }
 0xbcf   : > { %v3143_v8 = vpop.f32.mrb[17].mxu1  ;;  %2421 = vrot.lane.b32.xlu1 %v2357_v21, %s3897_s15 }
 0xbd0   : > { %v2360_v9 = vpop.f32.mrb[18].mxu1 }
 0xbd1   : > { %v3144_v10 = vpop.f32.mrb[19].mxu1  ;;  %2423 = vrot.lane.b32.xlu0 %v2360_v9, %s3897_s15  ;;  %s3790_s15 = scalar_lea.vmem %s3789_s4, 512 }
 0xbd2   : > { %v2404_v11 = vpop.f32.mrb[20].mxu0  ;;  %p3792_p8 = scmp.lt.s32.totalorder %s3790_s15, %s3784_s28 }
 0xbd3   : > { %2429 = vrot.lane.b32.xlu1 %v2404_v11, %s3898_s17  ;;  %v3149_v12 = vpop.f32.mrb[21].mxu0 }
 0xbd4   : > { %v2407_v14 = vpop.f32.mrb[22].mxu0  ;;  %p3793_p4 = por %p3792_p8, %p3791_p11 }
 0xbd5   : > { %2431 = vrot.lane.b32.xlu0 %v2407_v14, %s3898_s17  ;;  %v3150_v31 = vpop.f32.mrb[23].mxu0  ;;  %s4823_s17 = sld [smem:[#allocation41_spill]] }
 0xbd6   : > { %p3794_p12 = pnand %p3793_p4, %p3787_p7 }
 0xbdb   : > { %v2889_v25 = vld [vmem:[%s4823_s17] ss:$0 sm:$0xff] }
 0xc3d   : > { %v2414_v16 = vpop.permute.xlu1 %2413 }
 0xc3e   : > { %v2435_v18 = vsel %vm1907_vm10, %v2263_v63, %v2414_v16  ;;  %v2885_v63 = vld [vmem:[#allocation19] ss:$0 sm:$0xff] }
 0xc3f   : > { %v2416_v37 = vpop.permute.xlu0 %2415 }
 0xc40   : > { %v2436_v47 = vsel %vm1907_vm10, %v2266_v53, %v2416_v37 }
 0xc41   : > { %v2422_v13 = vpop.permute.xlu1 %2421 }
 0xc42   : > { %v2437_v35 = vsel %vm2130_vm11, %v2435_v18, %v2422_v13 }
 0xc43   : > { %v2424_v17 = vpop.permute.xlu0 %2423 }
 0xc44   : > { %v2438_v22 = vsel %vm2130_vm11, %v2436_v47, %v2424_v17 }
 0xc45   : > { %v2430_v19 = vpop.permute.xlu1 %2429 }
 0xc46   : > { %v2440_v20 = vsel %vm2439_vm12, %v2437_v35, %v2430_v19 }
 0xc47   : > { %v4656_v48 = vadd.f32 %v2440_v20, %v4536_v33  ;;  %v2432_v23 = vpop.permute.xlu0 %2431 }
 0xc48   : > { %v2441_v24 = vsel %vm2439_vm12, %v2438_v22, %v2432_v23 }
 0xc49   : > { %v4659_v26 = vadd.f32 %v2441_v24, %v4533_v15  ;;  %v2446_v27 = vsel %vm769_vm0, %v4656_v48, 0.0 }
 0xc4a   : > { %2447 = vadd.xlane.f32.xlu1 %v2446_v27 }
 0xc4b   : > { %v2449_v36 = vsel %vm769_vm0, %v4659_v26, 0.0 }
 0xc4c   : > { %2450 = vadd.xlane.f32.xlu0 %v2449_v36 }
 0xcd7   : > { %v2448_v28 = vpop.xlane.xlu1 %2447 }
 0xcd8   : > { %v2452_v29 = vmul.f32 0.03125, %v2448_v28 }
 0xcd9   : > { %v2451_v39 = vpop.xlane.xlu0 %2450 }
 0xcda   : > { %v2454_v30 = vsub.f32 %v4656_v48, %v2452_v29  ;;  %v2453_v33 = vmul.f32 0.03125, %v2451_v39 }
 0xcdc   : > { %v2455_v32 = vsub.f32 %v4659_v26, %v2453_v33  ;;  %v2456_v56 = vmul.f32 %v2454_v30, %v2454_v30 }
 0xcde   : > { %v2458_v15 = vsel %vm769_vm0, %v2456_v56, 0.0  ;;  %v2457_v58 = vmul.f32 %v2455_v32, %v2455_v32 }
 0xcdf   : > { %2459 = vadd.xlane.f32.xlu0 %v2458_v15 }
 0xce0   : > { %v2461_v34 = vsel %vm769_vm0, %v2457_v58, 0.0 }
 0xce3   : > { %2462 = vadd.xlane.f32.xlu0 %v2461_v34 }
 0xd6c   : > { %v2460_v40 = vpop.xlane.xlu0 %2459 }
 0xd6d   : > { %v2464_v41 = vmul.f32 0.03125, %v2460_v40 }
 0xd6f   : > { %v2466_v42 = vadd.f32 1e-05, %v2464_v41 }
 0xd70   : > { %v2463_v43 = vpop.xlane.xlu0 %2462 }
 0xd71   : > { %3468 = vrsqrt.f32 %v2466_v42  ;;  %v2465_v46 = vmul.f32 0.03125, %v2463_v43 }
 0xd73   : > { %v2467_v44 = vadd.f32 1e-05, %v2465_v46 }
 0xd75   : > { %3470 = vrsqrt.f32 %v2467_v44 }
 0xd7b   : > { %v3469_v45 = vpop.eup %3468 }
 0xd7c   : > { %v2470_v49 = vmul.f32 %v3469_v45, %v2454_v30 }
 0xd7e   : > { %v2478_v50 = vmul.f32 %v2883_v51, %v2470_v49 }
 0xd7f   : > { %v3471_v52 = vpop.eup %3470 }
 0xd80   : > { %v2471_v54 = vmul.f32 %v3471_v52, %v2455_v32  ;;  %v2486_v3 = vadd.f32 %v2884_v55, %v2478_v50 }
 0xd82   : > { %v2479_v57 = vmul.f32 %v2883_v51, %v2471_v54 }
 0xd84   : > { %v2487_v59 = vadd.f32 %v2884_v55, %v2479_v57 }
 0xd86   : > { %v2488_v60 = vpack.c.bf16 %v2487_v59, %v2486_v3 }
 0xd88   : > { %3156 = vmatmul.mubr.msk.bf16.vlgmr.msra.gmra.mrb[20].mxu1 %vm769_vm0, %v2488_v60 }
 0xe5b   : > { %v2549_v0 = vpop.f32.mrb[20].mxu1 }
 0xe5c   : > { %v2550_v53 = vadd.f32 %v2885_v63, %v2549_v0  ;;  %v3157_v1 = vpop.f32.mrb[21].mxu1 }
 0xe5d   : > { %v2552_v2 = vpop.f32.mrb[22].mxu1 }
 0xe5e   : > { %v2553_v4 = vadd.f32 %v2885_v63, %v2552_v2  ;;  %v3158_v6 = vpop.f32.mrb[23].mxu1  ;;  %v2556_v7 = vmax.f32 %v2550_v53, 0.0 }
 0xe60   : > { %v2557_v21 = vmax.f32 %v2553_v4, 0.0 }
 0xe62   : > { %v2558_v8 = vpack.c.bf16 %v2557_v21, %v2556_v7 }
 0xe64   : > { %3164 = vmatmul.mubr.msk.bf16.vlgmr.msra.gmra.mrb[24].mxu0 %vm769_vm0, %v2558_v8 }
 0xf37   : > { %v2619_v9 = vpop.f32.mrb[24].mxu0 }
 0xf38   : > { %v2620_v10 = vadd.f32 %v2889_v25, %v2619_v9  ;;  %v3165_v11 = vpop.f32.mrb[25].mxu0 }
 0xf39   : > { %v2622_v12 = vpop.f32.mrb[26].mxu0 }
 0xf3a   : > { %v2626_v14 = vadd.f32 %v2620_v10, %v4656_v48  ;;  %v2623_v31 = vadd.f32 %v2889_v25, %v2622_v12  ;;  %v3166_v16 = vpop.f32.mrb[27].mxu0 }
 0xf3c   : > { %2628 = vst.msk [vmem:[%s689_s3] sm:$0xff] %vm769_vm0, %v2626_v14  ;;  %v2627_v37 = vadd.f32 %v2623_v31, %v4659_v26 }
 0xf3e   : > { %2629 = vst.msk [vmem:[%s689_s3 + $0x8] sm:$0xff] %vm769_vm0, %v2627_v37 }
 0xf3f   : > { %3797 = shalt.err (!%p3794_p12)
}
 0xf40   : > { %s3798_s17 = scalar_lea.hbm %s4695_s14, 256  ;;  %s3802_s18 = scalar_lea.hbm %s4824_s7, 512 }
 0xf41   : > { %p3799_p13 = scmp.ne.s32.totalorder %s4695_s14, %s3798_s17  ;;  %p3803_p2 = scmp.lt.u32.totalorder %s4695_s14, %s4824_s7 }
 0xf42   : > { %p3804_p6 = scmp.lt.u32.totalorder %s3802_s18, %s3798_s17  ;;  %p3806_p5 = scmp.lt.u32.totalorder %s3798_s17, %s4695_s14 }
 0xf43   : > { %p3800_p1 = pnand %p3799_p13, %p4825_p9 }
 0xf44   : > { %p3805_p10 = por %p3804_p6, %p3803_p2 }
 0xf45   : > { %p3801_p3 = pneg %p3800_p1 }
 0xf46   : > { %p3807_p0 = por %p3806_p5, %p3805_p10 }
 0xf48   : > { %p3808_p7 = pnand %p3807_p0, %p3801_p3 }
 0xf4a   : > { %3811 = shalt.err (!%p3808_p7)
}
 0xf4b   : > { %s3900_s28 = smov 128  }
 0xf4c   : > { %3303 = dma.vmem_to_hbm [thread:$0]  (%p4825_p9), %s4699_s5, 256, %s4695_s14, %s2631_s27, %s3900_s28, %s3900_s28, %s3896_s6  }
 0xf4d PF: > { %s2659_s4 = sand.u32 1, %s3862_s21   ;;  %p4826_p11 = scmp.ne.s32.totalorder %s4800_s12, 0 }
 0xf4e   : > { %p4827_p8 = scmp.ge.s32.totalorder %s3874_s24, 2  ;;  %s2660_s15 = scalar_lea.sflag [#allocation4], %s2659_s4 }
 0xf50   : > { %p3341_p4 = pnand %p4827_p8, %p4826_p11 }
 0xf52   : > { %3857 = dma.done.wait (!%p3341_p4), %s2660_s15, 256  }
 0xf53   : > { %3859 = vsyncadd (!%p3341_p4), %s2660_s15, 4294967040  ;;  %p36_p12 = scmp.ge.s32.totalorder %s4222_s0, 4   ;;  %s4828_s21 = smov %s3866_s22 }
 0xf54   : > { %s4829_s22 = smov %s3870_s23  ;;  %s4830_s23 = smov %s4234_s30 }
 0xf55   : > { %s4831_s24 = smov %s4222_s0  ;;  %38 = sbr.rel (!%p36_p12) target bundleno = 25 (0x19), region = 178 }
 0xf5c   :  { %2665 = vsyncpa [#allocation3], 1 }
 0xf5d   :  { %2667 = vsyncpa [#allocation3 + $0x1], 1 }
 0xf5e   :  { %2668 = vsyncpa [#allocation6], 1 }
 0xf5f   :  { %2670 = vsyncpa [#allocation6 + $0x1], 1 }
 0xf60   :  { %2671 = vsyncpa [#allocation9], 1 }
 0xf61   :  { %2672 = vsyncpa [#allocation12], 1 }
 0xf62   :  { %2673 = vsyncpa [#allocation15], 1 }
 0xf63   :  { %2674 = vsyncpa [#allocation18], 1 }
 0xf64   :  { %2675 = vsyncpa [#allocation4], 1 }
 0xf65   :  { %2677 = vsyncpa [#allocation4 + $0x1], 1 }

// kernel: tpu_custom_call.1
= control target key start
LH: loop header
LB: loop body
LE: loop exit
PB: predicated region body
PF: predicated region fallthrough
CT: control target
= control target key end

     0   :  { %s4745_s0 = inlined_call_operand.hbm [shape: f32[32,32], index: 0, kind: input, shape index: {}]   ;;  %s4746_s1 = inlined_call_operand.hbm [shape: f32[2,1,16], index: 1, kind: input, shape index: {}]   ;;  %s4747_s2 = inlined_call_operand.hbm [shape: f32[16,32], index: 2, kind: input, shape index: {}]   ;;  %s4748_s3 = inlined_call_operand.hbm [shape: f32[2,32], index: 3, kind: input, shape index: {}]   ;;  %s4749_s4 = inlined_call_operand.hbm [shape: f32[2,32], index: 4, kind: input, shape index: {}]   ;;  %s4750_s5 = inlined_call_operand.hbm [shape: f32[2,5,32,32], index: 5, kind: input, shape index: {}]   ;;  %s4751_s6 = inlined_call_operand.hbm [shape: f32[2,32], index: 6, kind: input, shape index: {}]   ;;  %s4752_s7 = inlined_call_operand.vmem [shape: f32[1,32], index: 7, kind: input, shape index: {}]   ;;  %s4753_s8 = inlined_call_operand.hbm [shape: f32[1,32], index: 8, kind: input, shape index: {}]   ;;  %s4754_s9 = inlined_call_operand.vmem [shape: bf16[32,96], index: 9, kind: input, shape index: {}]   ;;  %s4755_s10 = inlined_call_operand.hbm [shape: f32[1,32], index: 10, kind: input, shape index: {}]   ;;  %s4756_s11 = inlined_call_operand.hbm [shape: f32[1,32], index: 11, kind: input, shape index: {}]   ;;  %s4757_s12 = inlined_call_operand.vmem [shape: bf16[32,32], index: 12, kind: input, shape index: {}]   ;;  %s4758_s13 = inlined_call_operand.hbm [shape: f32[1,32], index: 13, kind: input, shape index: {}]   ;;  %s4759_s14 = inlined_call_operand.vmem [shape: bf16[32,32], index: 14, kind: input, shape index: {}]   ;;  %s4760_s15 = inlined_call_operand.vmem [shape: f32[1,32], index: 15, kind: input, shape index: {}]   ;;  %s4761_s16 = inlined_call_operand.hbm [shape: f32[32,32], index: 16, kind: output, shape index: {}]  }
   0x1   :  { %4774 = sst [smem:[#allocation30_spill]] %s4745_s0 }
   0x2   :  { %4775 = sst [smem:[#allocation31_spill]] %s4747_s2 }
   0x3   :  { %4776 = sst [smem:[#allocation32_spill]] %s4748_s3 }
   0x4   :  { %4777 = sst [smem:[#allocation33_spill]] %s4749_s4 }
   0x5   :  { %4778 = sst [smem:[#allocation34_spill]] %s4750_s5 }
   0x6   :  { %4779 = sst [smem:[#allocation35_spill]] %s4751_s6 }
   0x7   :  { %4780 = sst [smem:[#allocation36_spill]] %s4752_s7 }
   0x8   :  { %4781 = sst [smem:[#allocation37_spill]] %s4753_s8 }
   0x9   :  { %4782 = sst [smem:[#allocation38_spill]] %s4754_s9 }
   0xa   :  { %4783 = sst [smem:[#allocation39_spill]] %s4757_s12 }
   0xb   :  { %4784 = sst [smem:[#allocation40_spill]] %s4759_s14 }
   0xc   :  { %4785 = sst [smem:[#allocation41_spill]] %s4760_s15 }
   0xd   :  { %4786 = sst [smem:[#allocation42_spill]] %s4761_s16 }
   0xe   :  { %21 = vsyncpa [#allocation3], 0 }
   0xf   :  { %23 = vsyncpa [#allocation3 + $0x1], 0 }
  0x10   :  { %24 = vsyncpa [#allocation6], 0 }
  0x11   :  { %26 = vsyncpa [#allocation6 + $0x1], 0 }
  0x12   :  { %27 = vsyncpa [#allocation9], 0 }
  0x13   :  { %28 = vsyncpa [#allocation12], 0 }
  0x14   :  { %29 = vsyncpa [#allocation15], 0 }
  0x15   :  { %30 = vsyncpa [#allocation18], 0 }
  0x16   :  { %31 = vsyncpa [#allocation4], 0 }
  0x17   :  { %33 = vsyncpa [#allocation4 + $0x1], 0  ;;  %s3986_s21 = smov 0   ;;  %s3988_s22 = smov 0  }
  0x18   :  { %s3990_s23 = smov 0   ;;  %s3992_s24 = smov 0  }
  0x19 LB: > { %s3876_s25 = smov [#allocation7]   ;;  %s4007_s27 = sadd.s32 4294967295, %s3874_s24   ;;  %s3874_s24 = sphi %s3992_s24, %s4831_s24   ;;  %s3870_s23 = sphi %s3990_s23, %s4830_s23   ;;  %s3866_s22 = sphi %s3988_s22, %s4829_s22   ;;  %s3862_s21 = sphi %s3986_s21, %s4828_s21  }
  0x1a   : > { %s428_s26 = sshll.u32 %s3876_s25, 4  ;;  %p2823_p0 = scmp.ge.s32.totalorder %s3874_s24, 1  ;;  %s4012_s26 = int_to_ptr.vmem [resolvable:$true] %s428_s26 }
  0x1b   : > { %p4768_p1 = scmp.eq.s32.totalorder %s4007_s27, 0  ;;  %p416_p2 = scmp.lt.s32.totalorder %s3874_s24, 3 }
  0x1c   : > { %s3877_s29 = smov [#allocation8]   ;;  %s3878_s17 = smov [#allocation11]  }
  0x1d   : > { %p4014_p3 = pnand %p2823_p0, %p416_p2  ;;  %s442_s30 = sshll.u32 %s3877_s29, 4  ;;  %s4027_s30 = int_to_ptr.vmem [resolvable:$true] %s442_s30 }
  0x1e   : > { %s463_s18 = sshll.u32 %s3878_s17, 4  ;;  %s4790_s2 = sld [smem:[#allocation31_spill]]  ;;  %s4029_s18 = int_to_ptr.vmem [resolvable:$true] %s463_s18 }
  0x1f   : > { %s4787_s28 = scalar_select %p4014_p3, 1, 0 }
  0x20   : > { %p3305_p5 = pneg %p4014_p3 }
  0x21   : > { %4788 = sst [smem:[#allocation29_spill]] %s4787_s28 }
  0x22   : > { %p4023_p6 = pnand %p3305_p5, %p4768_p1 }
  0x24   : > { %s3472_s25 = scalar_lea.hbm %s4790_s2, 256  ;;  %p4039_p8 = pneg %p4023_p6 }
  0x25   : > { %p3473_p7 = scmp.ne.s32.totalorder %s4790_s2, %s3472_s25  ;;  %p3479_p11 = scmp.lt.u32.totalorder %s3472_s25, %s4790_s2 }
  0x27   : > { %p3475_p9 = pnand %p4039_p8, %p3473_p7 }
  0x29   : > { %p3476_p10 = pneg %p3475_p9 }
  0x2b   : > { %p3481_p12 = pnand %p3479_p11, %p3476_p10 }
  0x2d   : > { %3484 = shalt.err (!%p3481_p12)
}
  0x2e   : > { %s3485_s15 = scalar_lea.vmem %s4012_s26, 256  ;;  %p3493_p5 = scmp.lt.s32.totalorder %s4012_s26, %s4012_s26 }
  0x2f   : > { %p3486_p13 = scmp.ne.s32.totalorder %s4012_s26, %s3485_s15  ;;  %p3494_p4 = scmp.lt.s32.totalorder %s3485_s15, %s3485_s15 }
  0x31   : > { %p3488_p0 = pnand %p3486_p13, %p4039_p8  ;;  %p3495_p7 = por %p3494_p4, %p3493_p5 }
  0x33   : > { %p3489_p2 = pneg %p3488_p0 }
  0x35   : > { %p3496_p9 = pnand %p3495_p7, %p3489_p2 }
  0x37   : > { %3499 = shalt.err (!%p3496_p9)
}
  0x38   : > { %s4770_s16 = smov 128   ;;  %s4771_s14 = smov 8  }
  0x39   : > { %3308 = dma.hbm_to_vmem [thread:$0]  (!%p4023_p6), %s4790_s2, 256, %s4012_s26, [#allocation6], %s4770_s16, %s4770_s16, %s4771_s14  }
  0x3a   : > { %s4792_s3 = sld [smem:[#allocation32_spill]] }
  0x40   : > { %s3500_s15 = scalar_lea.hbm %s4792_s3, 32 }
  0x41   : > { %p3501_p4 = scmp.ne.s32.totalorder %s4792_s3, %s3500_s15  ;;  %p3507_p12 = scmp.lt.u32.totalorder %s3500_s15, %s4792_s3 }
  0x43   : > { %p3503_p10 = pnand %p3501_p4, %p4039_p8 }
  0x45   : > { %p3504_p11 = pneg %p3503_p10 }
  0x47   : > { %p3509_p13 = pnand %p3507_p12, %p3504_p11 }
  0x49   : > { %3512 = shalt.err (!%p3509_p13)
}
  0x4a   : > { %s3513_s26 = scalar_lea.vmem %s4027_s30, 32  ;;  %p3521_p7 = scmp.lt.s32.totalorder %s4027_s30, %s4027_s30 }
  0x4b   : > { %p3514_p0 = scmp.ne.s32.totalorder %s4027_s30, %s3513_s26  ;;  %p3522_p9 = scmp.lt.s32.totalorder %s3513_s26, %s3513_s26 }
  0x4d   : > { %p3516_p2 = pnand %p3514_p0, %p4039_p8  ;;  %p3523_p4 = por %p3522_p9, %p3521_p7 }
  0x4f   : > { %p3517_p5 = pneg %p3516_p2 }
  0x51   : > { %p3524_p10 = pnand %p3523_p4, %p3517_p5 }
  0x53   : > { %3527 = shalt.err (!%p3524_p10)
}
  0x54   : > { %3311 = dma.hbm_to_vmem [thread:$0]  (!%p4023_p6), %s4792_s3, 32, %s4027_s30, [#allocation9]  }
  0x55   : > { %s4793_s5 = sld [smem:[#allocation34_spill]] }
  0x5b   : > { %s3528_s19 = scalar_lea.hbm %s4793_s5, 5120 }
  0x5c   : > { %p3529_p11 = scmp.ne.s32.totalorder %s4793_s5, %s3528_s19  ;;  %p3535_p0 = scmp.lt.u32.totalorder %s3528_s19, %s4793_s5 }
  0x5e   : > { %p3531_p12 = pnand %p3529_p11, %p4039_p8 }
  0x60   : > { %p3532_p13 = pneg %p3531_p12 }
  0x62   : > { %p3537_p2 = pnand %p3535_p0, %p3532_p13 }
  0x64   : > { %3540 = shalt.err (!%p3537_p2)
}
  0x65   : > { %s3541_s30 = scalar_lea.vmem %s4029_s18, 5120  ;;  %p3549_p4 = scmp.lt.s32.totalorder %s4029_s18, %s4029_s18 }
  0x66   : > { %p3542_p5 = scmp.ne.s32.totalorder %s4029_s18, %s3541_s30  ;;  %p3550_p10 = scmp.lt.s32.totalorder %s3541_s30, %s3541_s30 }
  0x68   : > { %p3544_p7 = pnand %p3542_p5, %p4039_p8  ;;  %p3551_p11 = por %p3550_p10, %p3549_p4 }
  0x6a   : > { %p3545_p9 = pneg %p3544_p7 }
  0x6c   : > { %p3552_p12 = pnand %p3551_p11, %p3545_p9 }
  0x6e   : > { %3555 = shalt.err (!%p3552_p12)
}
  0x6f   : > { %3317 = dma.hbm_to_vmem [thread:$0]  (!%p4023_p6), %s4793_s5, 5120, %s4029_s18, [#allocation12], %s4770_s16, %s4770_s16, %s4771_s14  }
  0x70   : > { %s3881_s9 = smov [#allocation14]   ;;  %s3882_s28 = smov [#allocation17]  }
  0x71   : > { %s491_s12 = sshll.u32 %s3881_s9, 4  ;;  %s516_s19 = sshll.u32 %s3882_s28, 4  ;;  %s492_s12 = int_to_ptr.vmem [resolvable:$true] %s491_s12  ;;  %s517_s19 = int_to_ptr.vmem [resolvable:$true] %s516_s19 }
  0x72   : > { %s4794_s8 = sld [smem:[#allocation37_spill]] }
  0x78   : > { %s3556_s17 = scalar_lea.hbm %s4794_s8, 16 }
  0x79   : > { %p3557_p13 = scmp.ne.s32.totalorder %s4794_s8, %s3556_s17  ;;  %p3563_p5 = scmp.lt.u32.totalorder %s3556_s17, %s4794_s8 }
  0x7b   : > { %p3559_p0 = pnand %p3557_p13, %p4039_p8 }
  0x7d   : > { %p3560_p2 = pneg %p3559_p0 }
  0x7f   : > { %p3565_p7 = pnand %p3563_p5, %p3560_p2 }
  0x81   : > { %3568 = shalt.err (!%p3565_p7)
}
  0x82   : > { %s3569_s18 = scalar_lea.vmem %s492_s12, 16  ;;  %s3576_s7 = scalar_lea.vmem %s492_s12, 32 }
  0x83   : > { %p3570_p9 = scmp.ne.s32.totalorder %s492_s12, %s3569_s18  ;;  %p3577_p11 = scmp.lt.s32.totalorder %s492_s12, %s492_s12 }
  0x84   : > { %p3578_p12 = scmp.lt.s32.totalorder %s3576_s7, %s3569_s18 }
  0x85   : > { %p3572_p4 = pnand %p3570_p9, %p4039_p8 }
  0x86   : > { %p3579_p1 = por %p3578_p12, %p3577_p11 }
  0x87   : > { %p3573_p10 = pneg %p3572_p4 }
  0x89   : > { %p3580_p3 = pnand %p3579_p1, %p3573_p10 }
  0x8b   : > { %3583 = shalt.err (!%p3580_p3)
}
  0x8c   : > { %3323 = dma.hbm_to_vmem [thread:$0]  (!%p4023_p6), %s4794_s8, 16, %s492_s12, [#allocation15]  }
  0x8d   : > { %s3584_s25 = scalar_lea.hbm %s4756_s11, 16 }
  0x8e   : > { %p3585_p13 = scmp.ne.s32.totalorder %s4756_s11, %s3584_s25  ;;  %p3591_p3 = scmp.lt.u32.totalorder %s3584_s25, %s4756_s11 }
  0x90   : > { %p3587_p0 = pnand %p3585_p13, %p4039_p8 }
  0x92   : > { %p3588_p1 = pneg %p3587_p0 }
  0x94   : > { %p3593_p2 = pnand %p3591_p3, %p3588_p1 }
  0x96   : > { %3596 = shalt.err (!%p3593_p2)
}
  0x97   : > { %s3597_s18 = scalar_lea.vmem %s517_s19, 16  ;;  %s3604_s12 = scalar_lea.vmem %s517_s19, 32 }
  0x98   : > { %p3598_p5 = scmp.ne.s32.totalorder %s517_s19, %s3597_s18  ;;  %p3605_p4 = scmp.lt.s32.totalorder %s517_s19, %s517_s19 }
  0x99   : > { %p3606_p10 = scmp.lt.s32.totalorder %s3604_s12, %s3597_s18 }
  0x9a   : > { %p3600_p7 = pnand %p3598_p5, %p4039_p8 }
  0x9b   : > { %p3607_p11 = por %p3606_p10, %p3605_p4 }
  0x9c   : > { %p3601_p9 = pneg %p3600_p7 }
  0x9e   : > { %p3608_p12 = pnand %p3607_p11, %p3601_p9 }
  0xa0   : > { %3611 = shalt.err (!%p3608_p12)
}
  0xa1   : > { %3329 = dma.hbm_to_vmem [thread:$0]  (!%p4023_p6), %s4756_s11, 16, %s517_s19, [#allocation18]  }
  0xa2   : > { %s3883_s28 = smov [#allocation10]   ;;  %s3884_s20 = smov [#allocation13]  }
  0xa3   : > { %s453_s2 = sshll.u32 %s3883_s28, 4  ;;  %s477_s25 = sshll.u32 %s3884_s20, 4  ;;  %s454_s2 = int_to_ptr.vmem [resolvable:$true] %s453_s2  ;;  %s478_s25 = int_to_ptr.vmem [resolvable:$true] %s477_s25 }
  0xa4   : > { %s4795_s4 = sld [smem:[#allocation33_spill]] }
  0xaa   : > { %s3612_s30 = scalar_lea.hbm %s4795_s4, 32 }
  0xab   : > { %p3613_p13 = scmp.ne.s32.totalorder %s4795_s4, %s3612_s30  ;;  %p3619_p3 = scmp.lt.u32.totalorder %s3612_s30, %s4795_s4 }
  0xad   : > { %p3615_p0 = pnand %p3613_p13, %p4039_p8 }
  0xaf   : > { %p3616_p1 = pneg %p3615_p0 }
  0xb1   : > { %p3621_p2 = pnand %p3619_p3, %p3616_p1 }
  0xb3   : > { %3624 = shalt.err (!%p3621_p2)
}
  0xb4   : > { %s3625_s19 = scalar_lea.vmem %s454_s2, 32  ;;  %p3633_p4 = scmp.lt.s32.totalorder %s454_s2, %s454_s2 }
  0xb5   : > { %p3626_p5 = scmp.ne.s32.totalorder %s454_s2, %s3625_s19  ;;  %p3634_p10 = scmp.lt.s32.totalorder %s3625_s19, %s3625_s19 }
  0xb7   : > { %p3628_p7 = pnand %p3626_p5, %p4039_p8  ;;  %p3635_p11 = por %p3634_p10, %p3633_p4 }
  0xb9   : > { %p3629_p9 = pneg %p3628_p7 }
  0xbb   : > { %p3636_p12 = pnand %p3635_p11, %p3629_p9 }
  0xbd   : > { %3639 = shalt.err (!%p3636_p12)
}
  0xbe   : > { %3314 = dma.hbm_to_vmem [thread:$0]  (!%p4023_p6), %s4795_s4, 32, %s454_s2, [#allocation9]  }
  0xbf   : > { %s4796_s6 = sld [smem:[#allocation35_spill]] }
  0xc5   : > { %s3640_s15 = scalar_lea.hbm %s4796_s6, 32 }
  0xc6   : > { %p3641_p13 = scmp.ne.s32.totalorder %s4796_s6, %s3640_s15  ;;  %p3647_p3 = scmp.lt.u32.totalorder %s3640_s15, %s4796_s6 }
  0xc8   : > { %p3643_p0 = pnand %p3641_p13, %p4039_p8 }
  0xca   : > { %p3644_p1 = pneg %p3643_p0 }
  0xcc   : > { %p3649_p2 = pnand %p3647_p3, %p3644_p1 }
  0xce   : > { %3652 = shalt.err (!%p3649_p2)
}
  0xcf   : > { %s3653_s7 = scalar_lea.vmem %s478_s25, 32  ;;  %p3661_p4 = scmp.lt.s32.totalorder %s478_s25, %s478_s25 }
  0xd0   : > { %p3654_p5 = scmp.ne.s32.totalorder %s478_s25, %s3653_s7  ;;  %p3662_p10 = scmp.lt.s32.totalorder %s3653_s7, %s3653_s7 }
  0xd2   : > { %p3656_p7 = pnand %p3654_p5, %p4039_p8  ;;  %p3663_p11 = por %p3662_p10, %p3661_p4 }
  0xd4   : > { %p3657_p9 = pneg %p3656_p7 }
  0xd6   : > { %p3664_p12 = pnand %p3663_p11, %p3657_p9 }
  0xd8   : > { %3667 = shalt.err (!%p3664_p12)
}
  0xd9   : > { %3320 = dma.hbm_to_vmem [thread:$0]  (!%p4023_p6), %s4796_s6, 32, %s478_s25, [#allocation12]  }
  0xda   : > { %s3885_s9 = smov [#allocation16]   ;;  %s3886_s20 = smov [#allocation19]  }
  0xdb   : > { %s505_s28 = sshll.u32 %s3885_s9, 4  ;;  %s530_s17 = sshll.u32 %s3886_s20, 4  ;;  %s506_s28 = int_to_ptr.vmem [resolvable:$true] %s505_s28  ;;  %s531_s17 = int_to_ptr.vmem [resolvable:$true] %s530_s17 }
  0xdc   : > { %s3668_s26 = scalar_lea.hbm %s4755_s10, 16 }
  0xdd   : > { %p3669_p13 = scmp.ne.s32.totalorder %s4755_s10, %s3668_s26  ;;  %p3675_p3 = scmp.lt.u32.totalorder %s3668_s26, %s4755_s10 }
  0xdf   : > { %p3671_p0 = pnand %p3669_p13, %p4039_p8 }
  0xe1   : > { %p3672_p1 = pneg %p3671_p0 }
  0xe3   : > { %p3677_p2 = pnand %p3675_p3, %p3672_p1 }
  0xe5   : > { %3680 = shalt.err (!%p3677_p2)
}
  0xe6   : > { %s3681_s25 = scalar_lea.vmem %s506_s28, 16  ;;  %s3688_s19 = scalar_lea.vmem %s506_s28, 32 }
  0xe7   : > { %p3682_p5 = scmp.ne.s32.totalorder %s506_s28, %s3681_s25  ;;  %p3689_p4 = scmp.lt.s32.totalorder %s506_s28, %s506_s28 }
  0xe8   : > { %p3690_p10 = scmp.lt.s32.totalorder %s3688_s19, %s3681_s25 }
  0xe9   : > { %p3684_p7 = pnand %p3682_p5, %p4039_p8 }
  0xea   : > { %p3691_p11 = por %p3690_p10, %p3689_p4 }
  0xeb   : > { %p3685_p9 = pneg %p3684_p7 }
  0xed   : > { %p3692_p12 = pnand %p3691_p11, %p3685_p9 }
  0xef   : > { %3695 = shalt.err (!%p3692_p12)
}
  0xf0   : > { %3326 = dma.hbm_to_vmem [thread:$0]  (!%p4023_p6), %s4755_s10, 16, %s506_s28, [#allocation15]  }
  0xf1   : > { %s3696_s26 = scalar_lea.hbm %s4758_s13, 16 }
  0xf2   : > { %p3697_p13 = scmp.ne.s32.totalorder %s4758_s13, %s3696_s26  ;;  %p3703_p3 = scmp.lt.u32.totalorder %s3696_s26, %s4758_s13 }
  0xf4   : > { %p3699_p0 = pnand %p3697_p13, %p4039_p8 }
  0xf6   : > { %p3700_p1 = pneg %p3699_p0 }
  0xf8   : > { %p3705_p2 = pnand %p3703_p3, %p3700_p1 }
  0xfa   : > { %3708 = shalt.err (!%p3705_p2)
}
  0xfb   : > { %s3709_s25 = scalar_lea.vmem %s531_s17, 16  ;;  %s3716_s28 = scalar_lea.vmem %s531_s17, 32 }
  0xfc   : > { %p3710_p5 = scmp.ne.s32.totalorder %s531_s17, %s3709_s25  ;;  %p3717_p4 = scmp.lt.s32.totalorder %s531_s17, %s531_s17 }
  0xfd   : > { %p3718_p10 = scmp.lt.s32.totalorder %s3716_s28, %s3709_s25 }
  0xfe   : > { %p3712_p7 = pnand %p3710_p5, %p4039_p8 }
  0xff   : > { %p3719_p11 = por %p3718_p10, %p3717_p4 }
 0x100   : > { %p3713_p9 = pneg %p3712_p7 }
 0x102   : > { %p3720_p12 = pnand %p3719_p11, %p3713_p9 }
 0x104   : > { %3723 = shalt.err (!%p3720_p12)
}
 0x105   : > { %3332 = dma.hbm_to_vmem [thread:$0]  (!%p4023_p6), %s4758_s13, 16, %s531_s17, [#allocation18]  }
 0x106   : > { %s2822_s29 = sadd.s32 4294967294, %s3874_s24   ;;  %s4222_s0 = sadd.s32 1, %s3874_s24  }
 0x107   : > { %s46_s20 = sadd.s32 1, %s3870_s23  ;;  %s43_s15 = ssub.s32 %s3874_s24, %s4222_s0 }
 0x108   : > { %p53_p8 = scmp.ne.s32.totalorder %s3870_s23, %s3866_s22  ;;  %p44_p13 = scmp.eq.s32.totalorder %s43_s15, 0 }
 0x109   : > { %p54_p0 = scmp.eq.s32.totalorder %s3874_s24, 0  ;;  %p59_p1 = scmp.ne.s32.totalorder %s3866_s22, %s3862_s21 }
 0x10a   : > { %p403_p3 = scmp.eq.s32.totalorder %s4007_s27, 1  ;;  %p4797_p5 = scmp.eq.s32.totalorder %s4007_s27, 0 }
 0x10b   : > { %s4234_s30 = scalar_select %p44_p13, %s3870_s23, %s46_s20  }
 0x10c   : > { %p55_p2 = por %p54_p0, %p53_p8  ;;  %p4238_p7 = por %p4797_p5, %p59_p1 }
 0x10d   : > { %p4242_p6 = por %p403_p3, %p53_p8  ;;  %p409_p9 = scmp.eq.s32.totalorder %s2822_s29, 1 }
 0x10e   : > { %s4798_s17 = scalar_select %p4238_p7, 1, 0 }
 0x10f   : > { %s4799_s26 = scalar_select %p4242_p6, 1, 0 }
 0x110   : > { %p3353_p4 = scmp.lt.s32.totalorder %s3874_s24, 2  ;;  %s4248_s18 = sand.u32 1, %s3870_s23  }
 0x111   : > { %p4250_p10 = por %p409_p9, %p59_p1  ;;  %s2834_s7 = sshll.u32 %s4248_s18, 4 }
 0x112   : > { %s2898_s2 = sshll.u32 %s3874_s24, 8  ;;  %s4801_s19 = sld [smem:[#allocation30_spill]] }
 0x113   : > { %s4800_s12 = scalar_select %p4250_p10, 1, 0 }
 0x114   : > { %s551_s29 = scalar_lea.vmem [#allocation2], %s2834_s7  ;;  %p4261_p11 = pnand %p3353_p4, %p55_p2 }
 0x115   : > { %s558_s20 = sshll.u32 %s551_s29, 4  ;;  %s548_s14 = scalar_lea.sflag [#allocation3], %s4248_s18  ;;  %s4265_s20 = int_to_ptr.vmem [resolvable:$true] %s558_s20 }
 0x116   : > { %p3726_p8 = pneg %p4261_p11 }
 0x118   : > { %s4259_s9 = scalar_lea.hbm %s4801_s19, %s2898_s2  ;;  %s3729_s25 = scalar_lea.hbm %s4801_s19, 512 }
 0x119   : > { %s3724_s3 = scalar_lea.hbm %s4259_s9, 256  ;;  %p3730_p1 = scmp.lt.u32.totalorder %s4259_s9, %s4801_s19 }
 0x11a   : > { %p3725_p12 = scmp.ne.s32.totalorder %s4259_s9, %s3724_s3  ;;  %p3731_p3 = scmp.lt.u32.totalorder %s3729_s25, %s3724_s3 }
 0x11b   : > { %p3733_p5 = scmp.lt.u32.totalorder %s3724_s3, %s4259_s9 }
 0x11c   : > { %p3727_p13 = pnand %p3726_p8, %p3725_p12  ;;  %p3732_p2 = por %p3731_p3, %p3730_p1 }
 0x11e   : > { %p3728_p0 = pneg %p3727_p13  ;;  %p3734_p9 = por %p3733_p5, %p3732_p2 }
 0x120   : > { %p3735_p4 = pnand %p3734_p9, %p3728_p0 }
 0x122   : > { %3738 = shalt.err (!%p3735_p4)
}
 0x123   : > { %s3739_s16 = scalar_lea.vmem %s4265_s20, 256  ;;  %s3887_s7 = smov [#allocation2]  }
 0x124   : > { %p3740_p12 = scmp.ne.s32.totalorder %s4265_s20, %s3739_s16  ;;  %s3744_s2 = sshll.u32 %s3887_s7, 4  ;;  %s3745_s2 = int_to_ptr.vmem [resolvable:$false] %s3744_s2 }
 0x125   : > { %s3746_s28 = scalar_lea.vmem %s3745_s2, 512  ;;  %p3747_p6 = scmp.lt.s32.totalorder %s4265_s20, %s3745_s2 }
 0x126   : > { %p3742_p13 = pnand %p3740_p12, %p3726_p8  ;;  %p3748_p1 = scmp.lt.s32.totalorder %s3746_s28, %s3739_s16 }
 0x128   : > { %p3743_p10 = pneg %p3742_p13  ;;  %p3749_p3 = por %p3748_p1, %p3747_p6 }
 0x12a   : > { %p3750_p2 = pnand %p3749_p3, %p3743_p10 }
 0x12c   : > { %3753 = shalt.err (!%p3750_p2)
}
 0x12d   : > { %s4803_s3 = smov 8   ;;  %s4804_s25 = smov 128  }
 0x12e   : > { %3336 = dma.hbm_to_vmem [thread:$0]  (!%p4261_p11), %s4259_s9, 256, %s4265_s20, %s548_s14, %s4804_s25, %s4804_s25, %s4803_s3  }
 0x12f   : > { %s2837_s29 = sshll.u32 %s3874_s24, 4  ;;  %s571_s28 = scalar_lea.vmem [#allocation5], %s4248_s18 }
 0x130   : > { %s4303_s2 = scalar_lea.hbm %s4746_s1, %s2837_s29  ;;  %s578_s4 = sshll.u32 %s571_s28, 4  ;;  %s579_s4 = int_to_ptr.vmem [resolvable:$true] %s578_s4 }
 0x131   : > { %s4805_s5 = sand.u32 1, %s3874_s24   ;;  %s3754_s8 = scalar_lea.hbm %s4303_s2, 16 }
 0x132   : > { %s569_s6 = scalar_lea.sflag [#allocation6], %s4805_s5  ;;  %p3755_p6 = scmp.ne.s32.totalorder %s4303_s2, %s3754_s8 }
 0x133   : > { %s3759_s20 = scalar_lea.hbm %s4746_s1, 32  ;;  %p3760_p5 = scmp.lt.u32.totalorder %s4303_s2, %s4746_s1 }
 0x134   : > { %p3757_p10 = pnand %p3755_p6, %p3726_p8  ;;  %p3761_p9 = scmp.lt.u32.totalorder %s3759_s20, %s3754_s8 }
 0x135   : > { %p3763_p12 = scmp.lt.u32.totalorder %s3754_s8, %s4303_s2 }
 0x136   : > { %p3758_p0 = pneg %p3757_p10  ;;  %p3762_p4 = por %p3761_p9, %p3760_p5 }
 0x138   : > { %p3764_p13 = por %p3763_p12, %p3762_p4 }
 0x13a   : > { %p3765_p1 = pnand %p3764_p13, %p3758_p0 }
 0x13c   : > { %3768 = shalt.err (!%p3765_p1)
}
 0x13d   : > { %s3769_s5 = scalar_lea.vmem %s579_s4, 16  ;;  %s3888_s18 = smov [#allocation5]  }
 0x13e   : > { %p3770_p3 = scmp.ne.s32.totalorder %s579_s4, %s3769_s5  ;;  %s3774_s29 = sshll.u32 %s3888_s18, 4  ;;  %s3775_s29 = int_to_ptr.vmem [resolvable:$false] %s3774_s29 }
 0x13f   : > { %s3776_s7 = scalar_lea.vmem %s3775_s29, 32  ;;  %p3777_p10 = scmp.lt.s32.totalorder %s579_s4, %s3775_s29 }
 0x140   : > { %p3772_p2 = pnand %p3770_p3, %p3726_p8  ;;  %p3778_p7 = scmp.lt.s32.totalorder %s3776_s7, %s3769_s5 }
 0x142   : > { %p3773_p6 = pneg %p3772_p2  ;;  %p3779_p5 = por %p3778_p7, %p3777_p10 }
 0x144   : > { %p3780_p9 = pnand %p3779_p5, %p3773_p6 }
 0x146   : > { %3783 = shalt.err (!%p3780_p9)
}
 0x147   : > { %3339 = dma.hbm_to_vmem [thread:$0]  (!%p4261_p11), %s4303_s2, 16, %s579_s4, %s569_s6  }
 0x148   : > { %s4806_s8 = sld [smem:[#allocation29_spill]] }
 0x14e   : > { %p4807_p0 = scmp.ne.s32.totalorder %s4806_s8, 0 }
 0x14f   : > { %s4330_s16 = sand.u32 (!%p4807_p0), 1, %s3866_s22   ;;  %p4808_p7 = scmp.ne.s32.totalorder (!%p4807_p0), %s4798_s17, 0 }
 0x150   : > { %587 = sbr.rel (%p4807_p0) target bundleno = 3917 (0xf4d), region = 84  ;;  %s2839_s28 = sshll.u32 (!%p4807_p0), %s4330_s16, 4 }
 0x151   : > { %s590_s14 = scalar_lea.sflag (!%p4807_p0), [#allocation3], %s4330_s16  ;;  %s593_s9 = scalar_lea.vmem (!%p4807_p0), [#allocation2], %s2839_s28 }
 0x157   : > { %3829 = dma.done.wait (%p4808_p7), %s590_s14, 256  }
 0x158   : > { %3831 = vsyncadd (%p4808_p7), %s590_s14, 4294967040  ;;  %s598_s4 = sand.u32 1, %s4007_s27   ;;  %s601_s15 = scalar_lea.vmem [#allocation5], %s4330_s16 }
 0x159   : > { %s599_s6 = scalar_lea.sflag [#allocation6], %s598_s4 }
 0x15a   : > { %3833 = dma.done.wait (%p4808_p7), %s599_s6, 16  }
 0x15b   : > { %3835 = vsyncadd (%p4808_p7), %s599_s6, 4294967280  ;;  %p4809_p11 = scmp.eq.s32.totalorder %s4007_s27, 0 }
 0x15d   : > { %3837 = dma.done.wait (%p4809_p11), [#allocation6], 256   ;;  %p4810_p8 = pmov %p4809_p11 }
 0x15f   : > { %3839 = vsyncadd (%p4810_p8), [#allocation6], 4294967040  ;;  %p4811_p4 = pmov %p4810_p8 }
 0x161   : > { %3841 = dma.done.wait (%p4811_p4), [#allocation9], 64   ;;  %p4812_p12 = pmov %p4811_p4 }
 0x162   : > { %p4813_p13 = pmov %p4811_p4 }
 0x163   : > { %3843 = vsyncadd (%p4812_p12), [#allocation9], 4294967232 }
 0x164   : > { %3845 = dma.done.wait (%p4813_p13), [#allocation12], 5152   ;;  %p4814_p1 = pmov %p4811_p4 }
 0x166   : > { %3847 = vsyncadd (%p4814_p1), [#allocation12], 4294962144  ;;  %p4815_p3 = pmov %p4814_p1 }
 0x167   : > { %p4816_p2 = pmov %p4814_p1 }
 0x168   : > { %3849 = dma.done.wait (%p4815_p3), [#allocation15], 32  }
 0x169   : > { %3851 = vsyncadd (%p4816_p2), [#allocation15], 4294967264  ;;  %p4817_p6 = pmov %p4814_p1 }
 0x16a   : > { %p4818_p10 = pmov %p4814_p1 }
 0x16b   : > { %3853 = dma.done.wait (%p4817_p6), [#allocation18], 32  }
 0x16c   : > { %3855 = vsyncadd (%p4818_p10), [#allocation18], 4294967264  ;;  %v693_v0 = vld [vmem:[%s593_s9] sm:$0xff]  ;;  %vm769_vm0 = vcmask 261120   ;;  %v694_v2 = vld [vmem:[%s593_s9 + $0x8] sm:$0xff]  ;;  %v699_v29 = vlaneseq  ;;  %s4819_s20 = sld [smem:[#allocation38_spill]] }
 0x16d   : > { %v695_v1 = vld [vmem:[#allocation7] sm:$0xff]  ;;  %v696_v4 = vld [vmem:[#allocation7 + $0x8] sm:$0xff]  ;;  %v733_v18 = vld [vmem:[#allocation11 + $0x20] sm:$0xff]  ;;  %vm3890_vm9 = vmmov 0   ;;  %s4820_s29 = sld [smem:[#allocation36_spill]]  ;;  %vm1907_vm10 = vcmask 64512  }
 0x16e   : > { %v4366_v3 = vadd.f32 %v695_v1, %v693_v0  ;;  %v4368_v5 = vadd.f32 %v696_v4, %v694_v2  ;;  %v734_v19 = vld [vmem:[#allocation11 + $0x28] sm:$0xff]  ;;  %v735_v21 = vld [vmem:[#allocation11 + $0x30] sm:$0xff]  ;;  %v736_v22 = vld [vmem:[#allocation11 + $0x38] sm:$0xff]  ;;  %v4378_v33 = vshrl.u32 %v699_v29, 7  ;;  %s3891_s7 = smov 112   ;;  %s3892_s8 = smov 120  }
 0x16f   : > { %v3167_v20 = vpack.c.bf16 %v734_v19, %v733_v18  ;;  %v3171_v23 = vpack.c.bf16 %v736_v22, %v735_v21  ;;  %v729_v24 = vld [vmem:[#allocation11] sm:$0xff]  ;;  %v730_v25 = vld [vmem:[#allocation11 + $0x8] sm:$0xff]  ;;  %v4383_v36 = vld [vmem:[#allocation8] sm:$0x3]  ;;  %s3893_s14 = smov 104   ;;  %s3894_s9 = smov 64  }
 0x170   : > { %v770_v6 = vsel %vm769_vm0, %v4366_v3, 0.0  ;;  %v773_v7 = vsel %vm769_vm0, %v4368_v5, 0.0  ;;  %v3175_v26 = vpack.c.bf16 %v730_v25, %v729_v24  ;;  %v4381_v35 = vsub.s32 0, %v4378_v33  ;;  %v4387_v39 = vld [vmem:[#allocation10] sm:$0x3]  ;;  %v731_v55 = vld [vmem:[#allocation11 + $0x10] sm:$0xff] }
 0x171   : > { %771 = vadd.xlane.f32.xlu0 %v770_v6  ;;  %3168 = vmatprep.subr.bf16.mxu0 %v3167_v20  ;;  %v706_v41 = vand.u32 15, %v4378_v33  ;;  %vm830_vm1 = vcmp.lt.s32.totalorder %v4378_v33, 1  ;;  %vm811_vm3 = vcmp.lt.s32.totalorder %v4378_v33, 2  ;;  %v732_v56 = vld [vmem:[#allocation11 + $0x18] sm:$0xff]  ;;  %v737_v62 = vld [vmem:[#allocation11 + $0x40] sm:$0xff]  ;;  %v738_v63 = vld [vmem:[#allocation11 + $0x48] sm:$0xff] }
 0x172   : > { %3170 = vmatpush3.bf16.msra.mxu0 %v3167_v20  ;;  %v800_v37 = vrot.slane %v4383_v36, %v4381_v35  ;;  %v806_v42 = vrot.slane %v4387_v39, %v4381_v35  ;;  %v3179_v60 = vpack.c.bf16 %v732_v56, %v731_v55  ;;  %v3183_v1 = vpack.c.bf16 %v738_v63, %v737_v62  ;;  %v739_v2 = vld [vmem:[#allocation11 + $0x50] sm:$0xff]  ;;  %v740_v4 = vld [vmem:[#allocation11 + $0x58] sm:$0xff]  ;;  %v745_v18 = vld [vmem:[#allocation11 + $0x80] sm:$0xff]  ;;  %s3895_s4 = smov 96   ;;  %s3896_s6 = smov 8  }
 0x173   : > { %3172 = vmatprep.subr.bf16.mxu0 %v3171_v23  ;;  %v4392_v46 = vadd.s32 4294967295, %v706_v41  ;;  %v4398_v50 = vadd.s32 4294967294, %v706_v41  ;;  %v3187_v6 = vpack.c.bf16 %v740_v4, %v739_v2  ;;  %vm1094_vm5 = vcmp.lt.s32.totalorder %v4378_v33, 7  ;;  %v746_v19 = vld [vmem:[#allocation11 + $0x88] sm:$0xff]  ;;  %v748_v24 = vld [vmem:[#allocation11 + $0x98] sm:$0xff]  ;;  %v755_v63 = vld [vmem:[#allocation11 + $0xd0] sm:$0xff] }
 0x174   : > { %v3199_v22 = vpack.c.bf16 %v746_v19, %v745_v18  ;;  %vm1196_vm7 = vcmp.lt.s32.totalorder %v4378_v33, 6  ;;  %v749_v2 = vld [vmem:[#allocation11 + $0xa0] sm:$0xff]  ;;  %v750_v4 = vld [vmem:[#allocation11 + $0xa8] sm:$0xff]  ;;  %vm2130_vm11 = vcmask 130048   ;;  %s3898_s17 = smov 24   ;;  %vm2439_vm12 = vcmask 195584  }
 0x175   : > { %774 = vadd.xlane.f32.xlu0 %v773_v7  ;;  %vm835_vm2 = vcmp.ge.s32.totalorder %v4392_v46, 0  ;;  %vm816_vm4 = vcmp.ge.s32.totalorder %v4398_v50, 0  ;;  %v759_v46 = vld [vmem:[#allocation11 + $0xf0] sm:$0xff]  ;;  %s4821_s25 = sld [smem:[#allocation39_spill]]  ;;  %s2899_s2 = sshll.u32 %s4007_s27, 8 }
 0x176   : > { %3174 = vmatpush3.bf16.msra.mxu0 %v3171_v23  ;;  %v747_v23 = vld [vmem:[#allocation11 + $0x90] sm:$0xff]  ;;  %s689_s3 = scalar_lea.vmem [#allocation20], %s2839_s28  ;;  %s2631_s27 = scalar_lea.sflag [#allocation4], %s4330_s16 }
 0x177   : > { %3176 = vmatprep.subr.bf16.mxu0 %v3175_v26  ;;  %s2644_s5 = sshll.u32 %s689_s3, 4  ;;  %p4825_p9 = scmp.ne.s32.totalorder %s4799_s26, 0  ;;  %s4699_s5 = int_to_ptr.vmem [resolvable:$true] %s2644_s5 }
 0x178   : > { %s3784_s28 = scalar_lea.vmem %s4699_s5, 256 }
 0x179   : > { %p3785_p5 = scmp.ne.s32.totalorder %s4699_s5, %s3784_s28 }
 0x17b   : > { %p3786_p0 = pnand %p3785_p5, %p4825_p9 }
 0x17d   : > { %p3787_p7 = pneg %p3786_p0 }
 0x1fe   : > { %v772_v8 = vpop.xlane.xlu0 %771 }
 0x1ff   : > { %v777_v9 = vmul.f32 0.03125, %v772_v8  ;;  %v741_v8 = vld [vmem:[#allocation11 + $0x60] sm:$0xff] }
 0x201   : > { %v779_v10 = vsub.f32 %v4366_v3, %v777_v9  ;;  %v742_v9 = vld [vmem:[#allocation11 + $0x68] sm:$0xff] }
 0x202   : > { %v775_v11 = vpop.xlane.xlu0 %774 }
 0x203   : > { %v778_v12 = vmul.f32 0.03125, %v775_v11  ;;  %v781_v13 = vmul.f32 %v779_v10, %v779_v10  ;;  %v3191_v11 = vpack.c.bf16 %v742_v9, %v741_v8 }
 0x205   : > { %v780_v14 = vsub.f32 %v4368_v5, %v778_v12  ;;  %v783_v15 = vsel %vm769_vm0, %v781_v13, 0.0  ;;  %v743_v12 = vld [vmem:[#allocation11 + $0x70] sm:$0xff]  ;;  %v744_v13 = vld [vmem:[#allocation11 + $0x78] sm:$0xff] }
 0x206   : > { %784 = vadd.xlane.f32.xlu1 %v783_v15 }
 0x207   : > { %v782_v16 = vmul.f32 %v780_v14, %v780_v14 }
 0x209   : > { %v786_v17 = vsel %vm769_vm0, %v782_v16, 0.0 }
 0x20a   : > { %787 = vadd.xlane.f32.xlu1 %v786_v17  ;;  %v3195_v17 = vpack.c.bf16 %v744_v13, %v743_v12  ;;  %v4476_v13 = vsub.s32 1, %v4378_v33 }
 0x293   : > { %v785_v27 = vpop.xlane.xlu1 %784 }
 0x294   : > { %v789_v28 = vmul.f32 0.03125, %v785_v27 }
 0x296   : > { %v791_v30 = vadd.f32 1e-05, %v789_v28  ;;  %v3203_v28 = vpack.c.bf16 %v748_v24, %v747_v23 }
 0x297   : > { %v788_v31 = vpop.xlane.xlu1 %787 }
 0x298   : > { %3424 = vrsqrt.f32 %v791_v30  ;;  %v790_v32 = vmul.f32 0.03125, %v788_v31 }
 0x29a   : > { %v792_v34 = vadd.f32 1e-05, %v790_v32 }
 0x29c   : > { %3426 = vrsqrt.f32 %v792_v34 }
 0x2a2   : > { %v3425_v38 = vpop.eup %3424 }
 0x2a3   : > { %v795_v40 = vmul.f32 %v3425_v38, %v779_v10  ;;  %v701_v10 = vadd.s32 8, %v4378_v33 }
 0x2a5   : > { %v801_v43 = vmul.f32 %v800_v37, %v795_v40  ;;  %v713_v15 = vand.u32 15, %v701_v10 }
 0x2a6   : > { %v3427_v44 = vpop.eup %3426 }
 0x2a7   : > { %v796_v45 = vmul.f32 %v3427_v44, %v780_v14  ;;  %v4394_v47 = vadd.f32 %v806_v42, %v801_v43  ;;  %v4434_v21 = vadd.s32 1, %v713_v15  ;;  %v4448_v31 = vadd.s32 2, %v713_v15 }
 0x2a9   : > { %v802_v48 = vmul.f32 %v800_v37, %v796_v45  ;;  %v828_v51 = vrot.slane %v4394_v47, 7  ;;  %v809_v53 = vrot.slane %v4394_v47, 6  ;;  %v1092_v16 = vrot.slane %v4394_v47, 1  ;;  %v4457_v37 = vld [vmem:[#allocation13] sm:$0x3] }
 0x2aa   : > { %vm1102_vm6 = vcmp.lt.s32.totalorder %v4434_v21, 16  ;;  %v1194_v27 = vrot.slane %v4394_v47, 2  ;;  %vm1204_vm8 = vcmp.lt.s32.totalorder %v4448_v31, 16  ;;  %v1299_v38 = vrot.slane %v4457_v37, %v4381_v35 }
 0x2ab   : > { %v4396_v49 = vadd.f32 %v806_v42, %v802_v48  ;;  %v1782_v21 = vrot.slane %v4457_v37, %v4476_v13 }
 0x2ad   : > { %v829_v52 = vrot.slane %v4396_v49, 7  ;;  %v810_v54 = vrot.slane %v4396_v49, 6  ;;  %v1093_v14 = vrot.slane %v4396_v49, 1 }
 0x2af   : > { %v832_v57 = vsel %vm830_vm1, %v829_v52, %v828_v51  ;;  %v813_v58 = vsel %vm811_vm3, %v810_v54, %v809_v53  ;;  %v831_v61 = vsel %vm830_vm1, %v828_v51, %v829_v52  ;;  %v812_v7 = vsel %vm811_vm3, %v809_v53, %v810_v54 }
 0x2b0   : > { %v845_v59 = vsel %vm835_vm2, %v832_v57, 0.0  ;;  %v826_v0 = vsel %vm816_vm4, %v813_v58, 0.0  ;;  %v1095_v20 = vsel %vm1094_vm5, %v1092_v16, %v1093_v14  ;;  %v1096_v25 = vsel %vm1094_vm5, %v1093_v14, %v1092_v16 }
 0x2b1   : > { %2993 = vmatprep.mubr.msk.f32.mxu0 %vm769_vm0, %v845_v59  ;;  %v1110_v29 = vsel %vm1102_vm6, %v1096_v25, 0.0  ;;  %v1335_v14 = vrot.slane %v4383_v36, %v4476_v13 }
 0x2b2   : > { %2994 = vmatmul.mubr.msk.f32.vlgmr.msra.gmra.mrb[0].mxu0 %vm769_vm0, %v831_v61  ;;  %v754_v61 = vld [vmem:[#allocation11 + $0xc8] sm:$0xff] }
 0x2b3   : > { %3178 = vmatpush3.bf16.msra.mxu0 %v3175_v26  ;;  %3004 = vmatprep.mubr.msk.f32.mxu0 %vm769_vm0, %v826_v0  ;;  %v1195_v26 = vrot.slane %v4396_v49, 2  ;;  %v756_v0 = vld [vmem:[#allocation11 + $0xd8] sm:$0xff] }
 0x2b4   : > { %3180 = vmatprep.subr.bf16.mxu0 %v3179_v60 }
 0x2b5   : > { %v1197_v30 = vsel %vm1196_vm7, %v1194_v27, %v1195_v26  ;;  %v1198_v32 = vsel %vm1196_vm7, %v1195_v26, %v1194_v27 }
 0x2b6   : > { %v1212_v34 = vsel %vm1204_vm8, %v1198_v32, 0.0 }
 0x2b7   : > { %3182 = vmatpush3.bf16.msra.mxu0 %v3179_v60  ;;  %v753_v60 = vld [vmem:[#allocation11 + $0xc0] sm:$0xff] }
 0x2b8   : > { %3184 = vmatprep.subr.bf16.mxu0 %v3183_v1  ;;  %v3207_v62 = vpack.c.bf16 %v754_v61, %v753_v60  ;;  %v767_v60 = vld [vmem:[#allocation11 + $0x130] sm:$0xff]  ;;  %v768_v61 = vld [vmem:[#allocation11 + $0x138] sm:$0xff] }
 0x2ba   : > { %3005 = vmatmul.mubr.msk.f32.vlgmr.msra.gmra.mrb[0].mxu0 %vm769_vm0, %v812_v7  ;;  %3208 = vmatprep.subr.bf16.mxu1 %v3207_v62 }
 0x2bb   : > { %3186 = vmatpush3.bf16.msra.mxu0 %v3183_v1  ;;  %3015 = vmatprep.mubr.msk.f32.mxu0 %vm769_vm0, %v4394_v47  ;;  %v3211_v1 = vpack.c.bf16 %v756_v0, %v755_v63 }
 0x2bc   : > { %3188 = vmatprep.subr.bf16.mxu0 %v3187_v6  ;;  %3210 = vmatpush3.bf16.msra.mxu1 %v3207_v62 }
 0x2bd   : > { %3212 = vmatprep.subr.bf16.mxu1 %v3211_v1 }
 0x2bf   : > { %3190 = vmatpush3.bf16.msra.mxu0 %v3187_v6  ;;  %v3215_v6 = vpack.c.bf16 %v750_v4, %v749_v2 }
 0x2c0   : > { %3192 = vmatprep.subr.bf16.mxu0 %v3191_v11  ;;  %3214 = vmatpush3.bf16.msra.mxu1 %v3211_v1  ;;  %v3243_v1 = vpack.c.bf16 %v768_v61, %v767_v60 }
 0x2c1   : > { %3216 = vmatprep.subr.bf16.mxu1 %v3215_v6 }
 0x2c2   : > { %3016 = vmatmul.mubr.msk.f32.vlgmr.msra.gmra.mrb[0].mxu0 %vm769_vm0, %v4396_v49 }
 0x2c3   : > { %3194 = vmatpush3.bf16.msra.mxu0 %v3191_v11  ;;  %3026 = vmatprep.mubr.msk.f32.mxu0 %vm769_vm0, %v1095_v20 }
 0x2c4   : > { %3196 = vmatprep.subr.bf16.mxu0 %v3195_v17 }
 0x2c7   : > { %3198 = vmatpush3.bf16.msra.mxu0 %v3195_v17  ;;  %v1341_v17 = vrot.slane %v4387_v39, %v4476_v13 }
 0x2c8   : > { %3200 = vmatprep.subr.bf16.mxu0 %v3199_v22 }
 0x2ca   : > { %3027 = vmatmul.mubr.msk.f32.vlgmr.msra.gmra.mrb[0].mxu0 %vm769_vm0, %v1110_v29  ;;  %v752_v29 = vld [vmem:[#allocation11 + $0xb8] sm:$0xff] }
 0x2cb   : > { %3202 = vmatpush3.bf16.msra.mxu0 %v3199_v22  ;;  %3037 = vmatprep.mubr.msk.f32.mxu0 %vm769_vm0, %v1197_v30 }
 0x2cc   : > { %3204 = vmatprep.subr.bf16.mxu0 %v3203_v28 }
 0x2cf   : > { %3206 = vmatpush3.bf16.msra.mxu0 %v3203_v28  ;;  %v751_v28 = vld [vmem:[#allocation11 + $0xb0] sm:$0xff] }
 0x2d2   : > { %3038 = vmatmul.mubr.msk.f32.vlgmr.msra.gmra.mrb[0].mxu0 %vm769_vm0, %v1212_v34  ;;  %v3219_v34 = vpack.c.bf16 %v752_v29, %v751_v28 }
 0x3a5   : > { %v3039_v40 = vpop.f32.mrb[0].mxu0 }
 0x3a6   : > { %v1301_v41 = vadd.f32 %v3039_v40, %v1299_v38  ;;  %v1285_v42 = vpop.f32.mrb[1].mxu0  ;;  %v757_v40 = vld [vmem:[#allocation11 + $0xe0] sm:$0xff] }
 0x3a7   : > { %v1300_v43 = vadd.f32 %v1299_v38, %v1285_v42 }
 0x3a8   : > { %v1303_v44 = vmax.f32 %v1301_v41, 0.0  ;;  %v758_v41 = vld [vmem:[#allocation11 + $0xe8] sm:$0xff] }
 0x3a9   : > { %v1302_v45 = vmax.f32 %v1300_v43, 0.0  ;;  %v3223_v43 = vpack.c.bf16 %v758_v41, %v757_v40 }
 0x3aa   : > { %v4462_v47 = vadd.f32 %v1303_v44, %v4368_v5  ;;  %v760_v44 = vld [vmem:[#allocation11 + $0xf8] sm:$0xff] }
 0x3ab   : > { %v4465_v48 = vadd.f32 %v1302_v45, %v4366_v3  ;;  %v3227_v45 = vpack.c.bf16 %v760_v44, %v759_v46 }
 0x3ac   : > { %v1309_v49 = vsel %vm769_vm0, %v4462_v47, 0.0 }
 0x3ad   : > { %1310 = vadd.xlane.f32.xlu1 %v1309_v49  ;;  %v1306_v51 = vsel %vm769_vm0, %v4465_v48, 0.0 }
 0x3ae   : > { %1307 = vadd.xlane.f32.xlu0 %v1306_v51  ;;  %v761_v51 = vld [vmem:[#allocation11 + $0x100] sm:$0xff] }
 0x43a   : > { %v1311_v52 = vpop.xlane.xlu1 %1310 }
 0x43b   : > { %v1313_v53 = vmul.f32 0.03125, %v1311_v52  ;;  %v1308_v54 = vpop.xlane.xlu0 %1307  ;;  %v762_v52 = vld [vmem:[#allocation11 + $0x108] sm:$0xff] }
 0x43c   : > { %v1312_v55 = vmul.f32 0.03125, %v1308_v54  ;;  %v3231_v50 = vpack.c.bf16 %v762_v52, %v761_v51  ;;  %v764_v54 = vld [vmem:[#allocation11 + $0x118] sm:$0xff] }
 0x43d   : > { %v1315_v56 = vsub.f32 %v4462_v47, %v1313_v53  ;;  %v763_v53 = vld [vmem:[#allocation11 + $0x110] sm:$0xff] }
 0x43e   : > { %v1314_v5 = vsub.f32 %v4465_v48, %v1312_v55 }
 0x43f   : > { %v1317_v57 = vmul.f32 %v1315_v56, %v1315_v56 }
 0x440   : > { %v1316_v58 = vmul.f32 %v1314_v5, %v1314_v5 }
 0x441   : > { %v1321_v3 = vsel %vm769_vm0, %v1317_v57, 0.0  ;;  %v765_v57 = vld [vmem:[#allocation11 + $0x120] sm:$0xff] }
 0x442   : > { %1322 = vadd.xlane.f32.xlu1 %v1321_v3  ;;  %v1318_v59 = vsel %vm769_vm0, %v1316_v58, 0.0  ;;  %v766_v58 = vld [vmem:[#allocation11 + $0x128] sm:$0xff] }
 0x443   : > { %1319 = vadd.xlane.f32.xlu0 %v1318_v59  ;;  %v3239_v59 = vpack.c.bf16 %v766_v58, %v765_v57 }
 0x4cf   : > { %v1323_v7 = vpop.xlane.xlu1 %1322 }
 0x4d0   : > { %v1325_v8 = vmul.f32 0.03125, %v1323_v7  ;;  %v1320_v9 = vpop.xlane.xlu0 %1319 }
 0x4d1   : > { %v1324_v10 = vmul.f32 0.03125, %v1320_v9 }
 0x4d2   : > { %v1327_v11 = vadd.f32 1e-05, %v1325_v8 }
 0x4d3   : > { %v1326_v12 = vadd.f32 1e-05, %v1324_v10 }
 0x4d4   : > { %3428 = vrsqrt.f32 %v1327_v11 }
 0x4d5   : > { %3430 = vrsqrt.f32 %v1326_v12 }
 0x4de   : > { %v3429_v15 = vpop.eup %3428 }
 0x4df   : > { %v3431_v16 = vpop.eup %3430  ;;  %v1331_v18 = vmul.f32 %v3429_v15, %v1315_v56 }
 0x4e0   : > { %v1330_v19 = vmul.f32 %v3431_v16, %v1314_v5  ;;  %v3235_v5 = vpack.c.bf16 %v764_v54, %v763_v53 }
 0x4e1   : > { %v1337_v20 = vmul.f32 %v1335_v14, %v1331_v18 }
 0x4e2   : > { %v1336_v22 = vmul.f32 %v1335_v14, %v1330_v19 }
 0x4e3   : > { %v4482_v23 = vadd.f32 %v1341_v17, %v1337_v20 }
 0x4e4   : > { %v4484_v24 = vadd.f32 %v1341_v17, %v1336_v22 }
 0x4e5   : > { %v1351_v25 = vrot.slane %v4482_v23, 7  ;;  %v1345_v26 = vrot.slane %v4482_v23, 6  ;;  %v1602_v56 = vrot.slane %v4482_v23, 1  ;;  %v1691_v0 = vrot.slane %v4482_v23, 2 }
 0x4e6   : > { %v1350_v27 = vrot.slane %v4484_v24, 7  ;;  %v1344_v36 = vrot.slane %v4484_v24, 6  ;;  %v1601_v55 = vrot.slane %v4484_v24, 1  ;;  %v1690_v63 = vrot.slane %v4484_v24, 2 }
 0x4e8   : > { %v1353_v39 = vsel %vm830_vm1, %v1351_v25, %v1350_v27  ;;  %v1347_v30 = vsel %vm811_vm3, %v1345_v26, %v1344_v36  ;;  %v1352_v38 = vsel %vm830_vm1, %v1350_v27, %v1351_v25  ;;  %v1346_v49 = vsel %vm811_vm3, %v1344_v36, %v1345_v26  ;;  %v3419_v26 = vld [vmem:[%s4819_s20 + $0x8] sm:$0xff]  }
 0x4e9   : > { %v1354_v32 = vsel %vm835_vm2, %v1353_v39, 0.0  ;;  %v1348_v42 = vsel %vm816_vm4, %v1347_v30, 0.0  ;;  %v1603_v3 = vsel %vm1094_vm5, %v1601_v55, %v1602_v56  ;;  %v1604_v62 = vsel %vm1094_vm5, %v1602_v56, %v1601_v55 }
 0x4ea   : > { %3048 = vmatprep.mubr.msk.f32.mxu1 %vm769_vm0, %v1354_v32  ;;  %v1606_v2 = vsel %vm1102_vm6, %v1604_v62, 0.0  ;;  %v1692_v4 = vsel %vm1196_vm7, %v1690_v63, %v1691_v0  ;;  %v3889_v25 = vmov 0.0  }
 0x4eb   : > { %3049 = vmatmul.mubr.msk.f32.vlgmr.msra.gmra.mrb[0].mxu1 %vm769_vm0, %v1352_v38  ;;  %3095 = vmatprep.subr.bf16.mxu0 %v3889_v25 }
 0x4ec   : > { %3218 = vmatpush3.bf16.msra.mxu1 %v3215_v6  ;;  %3059 = vmatprep.mubr.msk.f32.mxu1 %vm769_vm0, %v1348_v42  ;;  %v1693_v6 = vsel %vm1196_vm7, %v1691_v0, %v1690_v63  ;;  %v2871_v42 = vld [vmem:[#allocation14] ss:$0 sm:$0xff]  ;;  %v1902_v0 = vld [vmem:[%s601_s15] sm:$0x1]  ;;  %s3897_s15 = smov 16  }
 0x4ed   : > { %3220 = vmatprep.subr.bf16.mxu1 %v3219_v34  ;;  %v1695_v7 = vsel %vm1204_vm8, %v1693_v6, 0.0  ;;  %3099 = vmatprep.mubr.msk.bf16.mxu0 %vm3890_vm9, %v3889_v25 }
 0x4f0   : > { %3222 = vmatpush3.bf16.msra.mxu1 %v3219_v34  ;;  %v2870_v34 = vld [vmem:[%s4820_s29] ss:$0 sm:$0xff] }
 0x4f1   : > { %3224 = vmatprep.subr.bf16.mxu1 %v3223_v43 }
 0x4f3   : > { %3060 = vmatmul.mubr.msk.f32.vlgmr.msra.gmra.mrb[0].mxu1 %vm769_vm0, %v1346_v49 }
 0x4f4   : > { %3226 = vmatpush3.bf16.msra.mxu1 %v3223_v43  ;;  %3070 = vmatprep.mubr.msk.f32.mxu1 %vm769_vm0, %v4484_v24  ;;  %v3418_v24 = vld [vmem:[%s4819_s20] sm:$0xff]  }
 0x4f5   : > { %3228 = vmatprep.subr.bf16.mxu1 %v3227_v45  ;;  %3096 = vmatpush3.bf16.msra.mxu0 %v3418_v24 }
 0x4f6   : > { %3097 = vmatprep.subr.bf16.mxu0 %v3889_v25 }
 0x4f8   : > { %3230 = vmatpush3.bf16.msra.mxu1 %v3227_v45 }
 0x4f9   : > { %3232 = vmatprep.subr.bf16.mxu1 %v3231_v50  ;;  %3098 = vmatpush3.bf16.msra.mxu0 %v3419_v26 }
 0x4fa   : > { %3109 = vmatprep.subr.bf16.mxu0 %v3889_v25 }
 0x4fb   : > { %3071 = vmatmul.mubr.msk.f32.vlgmr.msra.gmra.mrb[0].mxu1 %vm769_vm0, %v4482_v23 }
 0x4fc   : > { %3234 = vmatpush3.bf16.msra.mxu1 %v3231_v50  ;;  %3081 = vmatprep.mubr.msk.f32.mxu1 %vm769_vm0, %v1603_v3 }
 0x4fd   : > { %3236 = vmatprep.subr.bf16.mxu1 %v3235_v5 }
 0x500   : > { %3238 = vmatpush3.bf16.msra.mxu1 %v3235_v5 }
 0x501   : > { %3240 = vmatprep.subr.bf16.mxu1 %v3239_v59 }
 0x503   : > { %3082 = vmatmul.mubr.msk.f32.vlgmr.msra.gmra.mrb[0].mxu1 %vm769_vm0, %v1606_v2 }
 0x504   : > { %3242 = vmatpush3.bf16.msra.mxu1 %v3239_v59  ;;  %3092 = vmatprep.mubr.msk.f32.mxu1 %vm769_vm0, %v1692_v4  ;;  %v2106_v4 = vrot.slane %v1902_v0, %v4381_v35 }
 0x505   : > { %3244 = vmatprep.subr.bf16.mxu1 %v3243_v1 }
 0x508   : > { %3246 = vmatpush3.bf16.msra.mxu1 %v3243_v1  ;;  %v1903_v1 = vsub.f32 1.0, %v1902_v0 }
 0x509   : > { %3103 = vmatprep.subr.bf16.mxu1 %v3889_v25 }
 0x50a   : > { %v1904_v2 = vmul.f32 -1e+30, %v1903_v1 }
 0x50b   : > { %3093 = vmatmul.mubr.msk.f32.vlgmr.msra.gmra.mrb[0].mxu1 %vm769_vm0, %v1695_v7 }
 0x50c   : > { %3105 = vmatprep.mubr.msk.bf16.mxu1 %vm3890_vm9, %v3889_v25  ;;  %v2120_v6 = vrot.slane %v1904_v2, %v4381_v35 }
 0x5de   : > { %v3094_v8 = vpop.f32.mrb[0].mxu1 }
 0x5df   : > { %v1784_v9 = vadd.f32 %v3094_v8, %v1782_v21  ;;  %v1768_v10 = vpop.f32.mrb[1].mxu1 }
 0x5e0   : > { %v1783_v11 = vadd.f32 %v1782_v21, %v1768_v10 }
 0x5e1   : > { %v1786_v12 = vmax.f32 %v1784_v9, 0.0 }
 0x5e2   : > { %v1785_v14 = vmax.f32 %v1783_v11, 0.0 }
 0x5e3   : > { %v4533_v15 = vadd.f32 %v1786_v12, %v4462_v47 }
 0x5e4   : > { %v4536_v33 = vadd.f32 %v1785_v14, %v4465_v48 }
 0x5e5   : > { %v1794_v31 = vsel %vm769_vm0, %v4533_v15, 0.0 }
 0x5e6   : > { %1795 = vadd.xlane.f32.xlu1 %v1794_v31  ;;  %v1791_v16 = vsel %vm769_vm0, %v4536_v33, 0.0 }
 0x5e7   : > { %1792 = vadd.xlane.f32.xlu0 %v1791_v16 }
 0x673   : > { %v1796_v37 = vpop.xlane.xlu1 %1795 }
 0x674   : > { %v1798_v13 = vmul.f32 0.03125, %v1796_v37  ;;  %v1793_v17 = vpop.xlane.xlu0 %1792 }
 0x675   : > { %v1797_v18 = vmul.f32 0.03125, %v1793_v17 }
 0x676   : > { %v1800_v19 = vsub.f32 %v4533_v15, %v1798_v13 }
 0x677   : > { %v1799_v47 = vsub.f32 %v4536_v33, %v1797_v18 }
 0x678   : > { %v1802_v20 = vmul.f32 %v1800_v19, %v1800_v19 }
 0x679   : > { %v1801_v22 = vmul.f32 %v1799_v47, %v1799_v47 }
 0x67a   : > { %v1806_v48 = vsel %vm769_vm0, %v1802_v20, 0.0 }
 0x67b   : > { %1807 = vadd.xlane.f32.xlu1 %v1806_v48  ;;  %v1803_v23 = vsel %vm769_vm0, %v1801_v22, 0.0 }
 0x67c   : > { %1804 = vadd.xlane.f32.xlu0 %v1803_v23 }
 0x708   : > { %v1808_v27 = vpop.xlane.xlu1 %1807 }
 0x709   : > { %v1810_v36 = vmul.f32 0.03125, %v1808_v27  ;;  %v1805_v28 = vpop.xlane.xlu0 %1804 }
 0x70a   : > { %v1809_v29 = vmul.f32 0.03125, %v1805_v28 }
 0x70b   : > { %v1812_v39 = vadd.f32 1e-05, %v1810_v36 }
 0x70c   : > { %v1811_v30 = vadd.f32 1e-05, %v1809_v29 }
 0x70d   : > { %3432 = vrsqrt.f32 %v1812_v39 }
 0x70e   : > { %3434 = vrsqrt.f32 %v1811_v30 }
 0x717   : > { %v3433_v32 = vpop.eup %3432 }
 0x718   : > { %v3435_v38 = vpop.eup %3434  ;;  %v1816_v40 = vmul.f32 %v3433_v32, %v1800_v19 }
 0x719   : > { %v1815_v41 = vmul.f32 %v3435_v38, %v1799_v47 }
 0x71a   : > { %v1824_v43 = vmul.f32 %v2870_v34, %v1816_v40 }
 0x71b   : > { %v1823_v46 = vmul.f32 %v2870_v34, %v1815_v41 }
 0x71c   : > { %v1832_v44 = vadd.f32 %v2871_v42, %v1824_v43 }
 0x71d   : > { %v1831_v45 = vadd.f32 %v2871_v42, %v1823_v46 }
 0x71f   : > { %v1833_v49 = vpack.c.bf16 %v1832_v44, %v1831_v45 }
 0x721   : > { %3100 = vmatmul.mubr.msk.bf16.vlgmr.msra.gmra.mrb[4].mxu0 %vm769_vm0, %v1833_v49 }
 0x722   : > { %3111 = vmatprep.mubr.msk.bf16.mxu0 %vm3890_vm9, %v3889_v25 }
 0x7f4   : > { %v1887_v51 = vpop.f32.mrb[4].mxu0 }
 0x7f5   : > { %v3101_v52 = vpop.f32.mrb[5].mxu0 }
 0x7f6   : > { %v1890_v50 = vpop.f32.mrb[6].mxu0 }
 0x7f7   : > { %v4566_v53 = vpack.c.bf16 %v1890_v50, %v1887_v51  ;;  %v3102_v54 = vpop.f32.mrb[7].mxu0 }
 0x7f9   : > { %1898 = vrot.lane.b32.xlu1 %v4566_v53, %s3891_s7  ;;  %1896 = vrot.lane.b32.xlu0 %v4566_v53, %s3892_s8  ;;  %v1912_v55 = vsel %vm1907_vm10, %v4566_v53, 0  ;;  %s4822_s8 = sld [smem:[#allocation40_spill]]  ;;  %s4824_s7 = sld [smem:[#allocation42_spill]] }
 0x7fa   : > { %3104 = vmatpush3.bf16.xpose.msra.mxu1 %v1912_v55 }
 0x7fb   : > { %3115 = vmatprep.subr.bf16.mxu1 %v3889_v25 }
 0x7fd   : > { %1900 = vrot.lane.b32.xlu1 %v4566_v53, %s3893_s14 }
 0x7ff   : > { %s4695_s14 = scalar_lea.hbm %s4824_s7, %s2899_s2 }
 0x801   : > { %1905 = vrot.lane.b32.xlu1 %v4566_v53, %s3894_s9 }
 0x86b   : > { %v4575_v56 = vpop.permute.xlu1 %1898  ;;  %v4577_v5 = vpop.permute.xlu0 %1896 }
 0x86c   : > { %2004 = vrot.lane.b32.xlu1 %v4575_v56, %s3894_s9  ;;  %1955 = vrot.lane.b32.xlu0 %v4577_v5, %s3894_s9  ;;  %v1961_v57 = vsel %vm1907_vm10, %v4577_v5, 0  ;;  %v2010_v59 = vsel %vm1907_vm10, %v4575_v56, 0 }
 0x86d   : > { %3110 = vmatpush3.bf16.xpose.msra.mxu0 %v1961_v57 }
 0x86e   : > { %3121 = vmatprep.subr.bf16.mxu0 %v3889_v25 }
 0x86f   : > { %v4584_v58 = vpop.permute.xlu1 %1900 }
 0x870   : > { %2053 = vrot.lane.b32.xlu0 %v4584_v58, %s3894_s9  ;;  %v2059_v62 = vsel %vm1907_vm10, %v4584_v58, 0  ;;  %s3899_s9 = smov [#allocation20]  }
 0x873   : > { %v1906_v3 = vpop.permute.xlu1 %1905 }
 0x874   : > { %3106 = vmatmul.mubr.msk.bf16.vlgmr.msra.gmra.mrb[4].mxu1 %vm1907_vm10, %v1906_v3 }
 0x875   : > { %3116 = vmatpush3.bf16.xpose.msra.mxu1 %v2010_v59  ;;  %3117 = vmatprep.mubr.msk.bf16.mxu1 %vm3890_vm9, %v3889_v25 }
 0x876   : > { %3127 = vmatprep.subr.bf16.mxu1 %v3889_v25 }
 0x8de   : > { %v2005_v60 = vpop.permute.xlu1 %2004  ;;  %v1956_v61 = vpop.permute.xlu0 %1955 }
 0x8df   : > { %3112 = vmatmul.mubr.msk.bf16.vlgmr.msra.gmra.mrb[8].mxu0 %vm1907_vm10, %v1956_v61  ;;  %3118 = vmatmul.mubr.msk.bf16.vlgmr.msra.gmra.mrb[8].mxu1 %vm1907_vm10, %v2005_v60 }
 0x8e0   : > { %3122 = vmatpush3.bf16.xpose.msra.mxu0 %v2059_v62  ;;  %3123 = vmatprep.mubr.msk.bf16.mxu0 %vm3890_vm9, %v3889_v25 }
 0x8e1   : > { %3129 = vmatprep.mubr.msk.bf16.mxu1 %vm3890_vm9, %v3889_v25  ;;  %3133 = vmatprep.subr.bf16.mxu0 %v3889_v25 }
 0x8e2   : > { %v2054_v63 = vpop.permute.xlu0 %2053 }
 0x8e7   : > { %3124 = vmatmul.mubr.msk.bf16.vlgmr.msra.gmra.mrb[12].mxu0 %vm1907_vm10, %v2054_v63 }
 0x8e8   : > { %3135 = vmatprep.mubr.msk.bf16.mxu0 %vm3890_vm9, %v3889_v25 }
 0x947   : > { %v1948_v7 = vpop.f32.mrb[4].mxu1 }
 0x948   : > { %v2108_v21 = vmul.f32 %v2106_v4, %v1948_v7  ;;  %v3107_v8 = vpop.f32.mrb[5].mxu1 }
 0x949   : > { %v1951_v9 = vpop.f32.mrb[6].mxu1 }
 0x94a   : > { %v2109_v10 = vmul.f32 %v2106_v4, %v1951_v9  ;;  %v3108_v11 = vpop.f32.mrb[7].mxu1  ;;  %v2122_v12 = vadd.f32 %v2120_v6, %v2108_v21 }
 0x94c   : > { %v2131_v14 = vsel %vm2130_vm11, %v2122_v12, -inf  ;;  %v2123_v31 = vadd.f32 %v2120_v6, %v2109_v10 }
 0x94d   : > { %2132 = vmax.xlane.f32.xlu1 %v2131_v14 }
 0x94e   : > { %v2134_v16 = vsel %vm2130_vm11, %v2123_v31, -inf }
 0x94f   : > { %2135 = vmax.xlane.f32.xlu0 %v2134_v16 }
 0x9b2   : > { %v1997_v37 = vpop.f32.mrb[8].mxu0  ;;  %v2046_v13 = vpop.f32.mrb[8].mxu1 }
 0x9b3   : > { %v2110_v17 = vmul.f32 %v2106_v4, %v1997_v37  ;;  %v2112_v18 = vmul.f32 %v2106_v4, %v2046_v13  ;;  %v3113_v35 = vpop.f32.mrb[9].mxu0  ;;  %v3119_v19 = vpop.f32.mrb[9].mxu1 }
 0x9b4   : > { %v2000_v47 = vpop.f32.mrb[10].mxu0  ;;  %v2049_v20 = vpop.f32.mrb[10].mxu1 }
 0x9b5   : > { %v2111_v22 = vmul.f32 %v2106_v4, %v2000_v47  ;;  %v3114_v48 = vpop.f32.mrb[11].mxu0  ;;  %v3120_v23 = vpop.f32.mrb[11].mxu1  ;;  %v2126_v24 = vadd.f32 %v2120_v6, %v2112_v18  ;;  %v2124_v26 = vadd.f32 %v2120_v6, %v2110_v17  ;;  %v2113_v27 = vmul.f32 %v2106_v4, %v2049_v20 }
 0x9b7   : > { %v2143_v36 = vsel %vm2130_vm11, %v2126_v24, -inf  ;;  %v2137_v28 = vsel %vm2130_vm11, %v2124_v26, -inf  ;;  %v2125_v29 = vadd.f32 %v2120_v6, %v2111_v22  ;;  %v2127_v38 = vadd.f32 %v2120_v6, %v2113_v27 }
 0x9b8   : > { %2144 = vmax.xlane.f32.xlu1 %v2143_v36  ;;  %2138 = vmax.xlane.f32.xlu0 %v2137_v28 }
 0x9b9   : > { %v2140_v34 = vsel %vm2130_vm11, %v2125_v29, -inf  ;;  %v2146_v46 = vsel %vm2130_vm11, %v2127_v38, -inf }
 0x9ba   : > { %v2095_v39 = vpop.f32.mrb[12].mxu0 }
 0x9bb   : > { %v2114_v30 = vmul.f32 %v2106_v4, %v2095_v39  ;;  %v3125_v32 = vpop.f32.mrb[13].mxu0 }
 0x9bc   : > { %2141 = vmax.xlane.f32.xlu0 %v2140_v34  ;;  %v2098_v40 = vpop.f32.mrb[14].mxu0 }
 0x9bd   : > { %v2115_v41 = vmul.f32 %v2106_v4, %v2098_v40  ;;  %v3126_v42 = vpop.f32.mrb[15].mxu0  ;;  %v2128_v43 = vadd.f32 %v2120_v6, %v2114_v30 }
 0x9bf   : > { %v2149_v44 = vsel %vm2130_vm11, %v2128_v43, -inf  ;;  %v2129_v45 = vadd.f32 %v2120_v6, %v2115_v41 }
 0x9c0   : > { %2147 = vmax.xlane.f32.xlu0 %v2146_v46  ;;  %2150 = vmax.xlane.f32.xlu1 %v2149_v44 }
 0x9c1   : > { %v2152_v49 = vsel %vm2130_vm11, %v2129_v45, -inf }
 0x9c4   : > { %2153 = vmax.xlane.f32.xlu0 %v2152_v49 }
 0x9d1   : > { %2223 = vrot.lane.b32.xlu1 %v4566_v53, %s3895_s4 }
 0x9da   : > { %v2133_v51 = vpop.xlane.xlu1 %2132 }
 0x9db   : > { %v2155_v54 = vsub.f32 %v2122_v12, %v2133_v51 }
 0x9dc   : > { %v2136_v52 = vpop.xlane.xlu0 %2135 }
 0x9dd   : > { %v2156_v50 = vsub.f32 %v2123_v31, %v2136_v52  ;;  %v2163_v57 = vmul.f32 1.442695, %v2155_v54 }
 0x9df   : > { %v2165_v55 = vmul.f32 1.442695, %v2156_v50 }
 0x9e1   : > { %3436 = vpow2.f32 %v2165_v55 }
 0x9e2   : > { %3438 = vpow2.f32 %v2163_v57 }
 0x9eb   : > { %v3437_v3 = vpop.eup %3436 }
 0x9ec   : > { %v2182_v59 = vsel %vm2130_vm11, %v3437_v3, 0.0  ;;  %v3439_v60 = vpop.eup %3438 }
 0x9ed   : > { %2183 = vadd.xlane.f32.xlu0 %v2182_v59  ;;  %v2179_v61 = vsel %vm2130_vm11, %v3439_v60, 0.0 }
 0x9f5   : > { %2180 = vadd.xlane.f32.xlu1 %v2179_v61 }
 0xa45   : > { %v2145_v62 = vpop.xlane.xlu1 %2144  ;;  %v2139_v63 = vpop.xlane.xlu0 %2138 }
 0xa46   : > { %v2159_v0 = vsub.f32 %v2126_v24, %v2145_v62  ;;  %v2157_v53 = vsub.f32 %v2124_v26, %v2139_v63 }
 0xa48   : > { %v2167_v1 = vmul.f32 1.442695, %v2157_v53  ;;  %v2171_v2 = vmul.f32 1.442695, %v2159_v0 }
 0xa49   : > { %v2142_v4 = vpop.xlane.xlu0 %2141 }
 0xa4a   : > { %v2158_v6 = vsub.f32 %v2125_v29, %v2142_v4  ;;  %3440 = vpow2.f32 %v2167_v1 }
 0xa4b   : > { %3442 = vpow2.f32 %v2171_v2 }
 0xa4c   : > { %v2169_v7 = vmul.f32 1.442695, %v2158_v6 }
 0xa4d   : > { %v2148_v21 = vpop.xlane.xlu0 %2147  ;;  %v2151_v8 = vpop.xlane.xlu1 %2150 }
 0xa4e   : > { %3444 = vpow2.f32 %v2169_v7  ;;  %v2160_v9 = vsub.f32 %v2127_v38, %v2148_v21  ;;  %v2161_v10 = vsub.f32 %v2128_v43, %v2151_v8 }
 0xa50   : > { %v2173_v11 = vmul.f32 1.442695, %v2160_v9  ;;  %v2175_v12 = vmul.f32 1.442695, %v2161_v10 }
 0xa51   : > { %v2224_v14 = vpop.permute.xlu1 %2223  ;;  %v2154_v31 = vpop.xlane.xlu0 %2153 }
 0xa52   : > { %3446 = vpow2.f32 %v2173_v11  ;;  %v2162_v16 = vsub.f32 %v2129_v45, %v2154_v31  ;;  %3128 = vmatpush3.bf16.msra.mxu1 %v2224_v14 }
 0xa53   : > { %3448 = vpow2.f32 %v2175_v12  ;;  %3139 = vmatprep.subr.bf16.mxu1 %v3889_v25 }
 0xa54   : > { %v2177_v37 = vmul.f32 1.442695, %v2162_v16  ;;  %v3441_v13 = vpop.eup %3440 }
 0xa55   : > { %v2185_v17 = vsel %vm2130_vm11, %v3441_v13, 0.0  ;;  %v3443_v18 = vpop.eup %3442 }
 0xa56   : > { %3450 = vpow2.f32 %v2177_v37  ;;  %2186 = vadd.xlane.f32.xlu1 %v2185_v17  ;;  %v2191_v47 = vsel %vm2130_vm11, %v3443_v18, 0.0 }
 0xa58   : > { %v3445_v35 = vpop.eup %3444 }
 0xa59   : > { %v2188_v19 = vsel %vm2130_vm11, %v3445_v35, 0.0 }
 0xa5a   : > { %2189 = vadd.xlane.f32.xlu0 %v2188_v19  ;;  %2192 = vadd.xlane.f32.xlu1 %v2191_v47 }
 0xa5c   : > { %v3447_v20 = vpop.eup %3446 }
 0xa5d   : > { %v3449_v22 = vpop.eup %3448  ;;  %v2194_v48 = vsel %vm2130_vm11, %v3447_v20, 0.0 }
 0xa5e   : > { %v2197_v23 = vsel %vm2130_vm11, %v3449_v22, 0.0  ;;  %2195 = vadd.xlane.f32.xlu0 %v2194_v48 }
 0xa5f   : > { %2198 = vadd.xlane.f32.xlu1 %v2197_v23 }
 0xa60   : > { %v3451_v24 = vpop.eup %3450 }
 0xa61   : > { %v2200_v26 = vsel %vm2130_vm11, %v3451_v24, 0.0 }
 0xa62   : > { %2201 = vadd.xlane.f32.xlu0 %v2200_v26 }
 0xa70   : > { %2317 = vrot.lane.b32.xlu1 %v4575_v56, %s3895_s4 }
 0xa74   : > { %2364 = vrot.lane.b32.xlu1 %v4584_v58, %s3895_s4 }
 0xa78   : > { %2270 = vrot.lane.b32.xlu0 %v4577_v5, %s3895_s4  ;;  %s3788_s4 = sshll.u32 %s3899_s9, 4  ;;  %s3789_s4 = int_to_ptr.vmem [resolvable:$false] %s3788_s4 }
 0xa79   : > { %p3791_p11 = scmp.lt.s32.totalorder %s4699_s5, %s3789_s4 }
 0xa7a   : > { %v2184_v27 = vpop.xlane.xlu0 %2183 }
 0xa7b   : > { %3452 = vrcp.f32 %v2184_v27 }
 0xa82   : > { %v2181_v36 = vpop.xlane.xlu1 %2180 }
 0xa83   : > { %3454 = vrcp.f32 %v2181_v36 }
 0xa85   : > { %v3453_v28 = vpop.eup %3452 }
 0xa86   : > { %v2212_v39 = vmul.f32 %v3453_v28, %v3437_v3 }
 0xa8d   : > { %v3455_v29 = vpop.eup %3454 }
 0xa8e   : > { %v2211_v30 = vmul.f32 %v3455_v29, %v3439_v60 }
 0xa90   : > { %v2219_v32 = vpack.c.bf16 %v2212_v39, %v2211_v30 }
 0xa92   : > { %3130 = vmatmul.mubr.msk.bf16.vlgmr.msra.gmra.mrb[12].mxu1 %vm2130_vm11, %v2219_v32 }
 0xa93   : > { %3141 = vmatprep.mubr.msk.bf16.mxu1 %vm3890_vm9, %v3889_v25 }
 0xae3   : > { %v2187_v56 = vpop.xlane.xlu1 %2186 }
 0xae4   : > { %3456 = vrcp.f32 %v2187_v56 }
 0xae7   : > { %v2190_v58 = vpop.xlane.xlu0 %2189  ;;  %v2193_v34 = vpop.xlane.xlu1 %2192 }
 0xae8   : > { %3458 = vrcp.f32 %v2190_v58 }
 0xae9   : > { %3460 = vrcp.f32 %v2193_v34 }
 0xaeb   : > { %v2196_v5 = vpop.xlane.xlu0 %2195 }
 0xaec   : > { %v2199_v38 = vpop.xlane.xlu1 %2198  ;;  %3462 = vrcp.f32 %v2196_v5  ;;  %v3420_v5 = vld [vmem:[%s4821_s25] sm:$0xff]  }
 0xaed   : > { %3464 = vrcp.f32 %v2199_v38  ;;  %v3421_v38 = vld [vmem:[%s4821_s25 + $0x8] sm:$0xff]  }
 0xaee   : > { %v3457_v41 = vpop.eup %3456 }
 0xaef   : > { %v2202_v40 = vpop.xlane.xlu0 %2201  ;;  %v2213_v46 = vmul.f32 %v3457_v41, %v3441_v13 }
 0xaf0   : > { %v2318_v42 = vpop.permute.xlu1 %2317  ;;  %3466 = vrcp.f32 %v2202_v40 }
 0xaf1   : > { %3140 = vmatpush3.bf16.msra.mxu1 %v2318_v42 }
 0xaf2   : > { %v3459_v43 = vpop.eup %3458  ;;  %3151 = vmatprep.subr.bf16.mxu1 %v3889_v25 }
 0xaf3   : > { %v2214_v44 = vmul.f32 %v3459_v43, %v3445_v35  ;;  %v2271_v45 = vpop.permute.xlu0 %2270  ;;  %v3461_v49 = vpop.eup %3460 }
 0xaf4   : > { %3134 = vmatpush3.bf16.msra.mxu0 %v2271_v45  ;;  %v2215_v50 = vmul.f32 %v3461_v49, %v3443_v18  ;;  %v2365_v55 = vpop.permute.xlu1 %2364 }
 0xaf5   : > { %v2220_v51 = vpack.c.bf16 %v2214_v44, %v2213_v46  ;;  %3145 = vmatprep.subr.bf16.mxu0 %v3889_v25 }
 0xaf6   : > { %v3463_v52 = vpop.eup %3462 }
 0xaf7   : > { %v2216_v54 = vmul.f32 %v3463_v52, %v3447_v20  ;;  %3136 = vmatmul.mubr.msk.bf16.vlgmr.msra.gmra.mrb[16].mxu0 %vm2130_vm11, %v2220_v51  ;;  %v3465_v57 = vpop.eup %3464  ;;  %v2883_v51 = vld [vmem:[#allocation16] ss:$0 sm:$0xff] }
 0xaf8   : > { %3146 = vmatpush3.bf16.msra.mxu0 %v2365_v55  ;;  %3147 = vmatprep.mubr.msk.bf16.mxu0 %vm3890_vm9, %v3889_v25  ;;  %v2217_v60 = vmul.f32 %v3465_v57, %v3449_v22  ;;  %v2884_v55 = vld [vmem:[#allocation17] ss:$0 sm:$0xff] }
 0xaf9   : > { %v2221_v3 = vpack.c.bf16 %v2216_v54, %v2215_v50  ;;  %3159 = vmatprep.subr.bf16.mxu0 %v3889_v25 }
 0xafa   : > { %v3467_v59 = vpop.eup %3466 }
 0xafb   : > { %v2218_v61 = vmul.f32 %v3467_v59, %v3451_v24  ;;  %3142 = vmatmul.mubr.msk.bf16.vlgmr.msra.gmra.mrb[16].mxu1 %vm2130_vm11, %v2221_v3 }
 0xafc   : > { %3155 = vmatprep.mubr.msk.bf16.mxu1 %vm3890_vm9, %v3889_v25  ;;  %3152 = vmatpush3.bf16.msra.mxu1 %v3420_v5 }
 0xafd   : > { %v2222_v62 = vpack.c.bf16 %v2218_v61, %v2217_v60  ;;  %3153 = vmatprep.subr.bf16.mxu1 %v3889_v25  ;;  %v3422_v61 = vld [vmem:[%s4822_s8] sm:$0xff]  }
 0xaff   : > { %3148 = vmatmul.mubr.msk.bf16.vlgmr.msra.gmra.mrb[20].mxu0 %vm2130_vm11, %v2222_v62  ;;  %v3423_v62 = vld [vmem:[%s4822_s8 + $0x8] sm:$0xff]  }
 0xb00   : > { %3163 = vmatprep.mubr.msk.bf16.mxu0 %vm3890_vm9, %v3889_v25  ;;  %3154 = vmatpush3.bf16.msra.mxu1 %v3421_v38 }
 0xb01   : > { %3160 = vmatpush3.bf16.msra.mxu0 %v3422_v61 }
 0xb02   : > { %3161 = vmatprep.subr.bf16.mxu0 %v3889_v25 }
 0xb05   : > { %3162 = vmatpush3.bf16.msra.mxu0 %v3423_v62 }
 0xb65   : > { %v2263_v63 = vpop.f32.mrb[12].mxu1 }
 0xb66   : > { %v3131_v0 = vpop.f32.mrb[13].mxu1 }
 0xb67   : > { %v2266_v53 = vpop.f32.mrb[14].mxu1 }
 0xb68   : > { %v3132_v1 = vpop.f32.mrb[15].mxu1 }
 0xbca   : > { %v2310_v2 = vpop.f32.mrb[16].mxu0 }
 0xbcb   : > { %2413 = vrot.lane.b32.xlu1 %v2310_v2, %s3896_s6  ;;  %v3137_v4 = vpop.f32.mrb[17].mxu0 }
 0xbcc   : > { %v2313_v6 = vpop.f32.mrb[18].mxu0 }
 0xbcd   : > { %2415 = vrot.lane.b32.xlu0 %v2313_v6, %s3896_s6  ;;  %v3138_v7 = vpop.f32.mrb[19].mxu0 }
 0xbce   : > { %v2357_v21 = vpop.f32.mrb[16].mxu1 }
 0xbcf   : > { %v3143_v8 = vpop.f32.mrb[17].mxu1  ;;  %2421 = vrot.lane.b32.xlu1 %v2357_v21, %s3897_s15 }
 0xbd0   : > { %v2360_v9 = vpop.f32.mrb[18].mxu1 }
 0xbd1   : > { %v3144_v10 = vpop.f32.mrb[19].mxu1  ;;  %2423 = vrot.lane.b32.xlu0 %v2360_v9, %s3897_s15  ;;  %s3790_s15 = scalar_lea.vmem %s3789_s4, 512 }
 0xbd2   : > { %v2404_v11 = vpop.f32.mrb[20].mxu0  ;;  %p3792_p8 = scmp.lt.s32.totalorder %s3790_s15, %s3784_s28 }
 0xbd3   : > { %2429 = vrot.lane.b32.xlu1 %v2404_v11, %s3898_s17  ;;  %v3149_v12 = vpop.f32.mrb[21].mxu0 }
 0xbd4   : > { %v2407_v14 = vpop.f32.mrb[22].mxu0  ;;  %p3793_p4 = por %p3792_p8, %p3791_p11 }
 0xbd5   : > { %2431 = vrot.lane.b32.xlu0 %v2407_v14, %s3898_s17  ;;  %v3150_v31 = vpop.f32.mrb[23].mxu0  ;;  %s4823_s17 = sld [smem:[#allocation41_spill]] }
 0xbd6   : > { %p3794_p12 = pnand %p3793_p4, %p3787_p7 }
 0xbdb   : > { %v2889_v25 = vld [vmem:[%s4823_s17] ss:$0 sm:$0xff] }
 0xc3d   : > { %v2414_v16 = vpop.permute.xlu1 %2413 }
 0xc3e   : > { %v2435_v18 = vsel %vm1907_vm10, %v2263_v63, %v2414_v16  ;;  %v2885_v63 = vld [vmem:[#allocation19] ss:$0 sm:$0xff] }
 0xc3f   : > { %v2416_v37 = vpop.permute.xlu0 %2415 }
 0xc40   : > { %v2436_v47 = vsel %vm1907_vm10, %v2266_v53, %v2416_v37 }
 0xc41   : > { %v2422_v13 = vpop.permute.xlu1 %2421 }
 0xc42   : > { %v2437_v35 = vsel %vm2130_vm11, %v2435_v18, %v2422_v13 }
 0xc43   : > { %v2424_v17 = vpop.permute.xlu0 %2423 }
 0xc44   : > { %v2438_v22 = vsel %vm2130_vm11, %v2436_v47, %v2424_v17 }
 0xc45   : > { %v2430_v19 = vpop.permute.xlu1 %2429 }
 0xc46   : > { %v2440_v20 = vsel %vm2439_vm12, %v2437_v35, %v2430_v19 }
 0xc47   : > { %v4656_v48 = vadd.f32 %v2440_v20, %v4536_v33  ;;  %v2432_v23 = vpop.permute.xlu0 %2431 }
 0xc48   : > { %v2441_v24 = vsel %vm2439_vm12, %v2438_v22, %v2432_v23 }
 0xc49   : > { %v4659_v26 = vadd.f32 %v2441_v24, %v4533_v15  ;;  %v2446_v27 = vsel %vm769_vm0, %v4656_v48, 0.0 }
 0xc4a   : > { %2447 = vadd.xlane.f32.xlu1 %v2446_v27 }
 0xc4b   : > { %v2449_v36 = vsel %vm769_vm0, %v4659_v26, 0.0 }
 0xc4c   : > { %2450 = vadd.xlane.f32.xlu0 %v2449_v36 }
 0xcd7   : > { %v2448_v28 = vpop.xlane.xlu1 %2447 }
 0xcd8   : > { %v2452_v29 = vmul.f32 0.03125, %v2448_v28 }
 0xcd9   : > { %v2451_v39 = vpop.xlane.xlu0 %2450 }
 0xcda   : > { %v2454_v30 = vsub.f32 %v4656_v48, %v2452_v29  ;;  %v2453_v33 = vmul.f32 0.03125, %v2451_v39 }
 0xcdc   : > { %v2455_v32 = vsub.f32 %v4659_v26, %v2453_v33  ;;  %v2456_v56 = vmul.f32 %v2454_v30, %v2454_v30 }
 0xcde   : > { %v2458_v15 = vsel %vm769_vm0, %v2456_v56, 0.0  ;;  %v2457_v58 = vmul.f32 %v2455_v32, %v2455_v32 }
 0xcdf   : > { %2459 = vadd.xlane.f32.xlu0 %v2458_v15 }
 0xce0   : > { %v2461_v34 = vsel %vm769_vm0, %v2457_v58, 0.0 }
 0xce3   : > { %2462 = vadd.xlane.f32.xlu0 %v2461_v34 }
 0xd6c   : > { %v2460_v40 = vpop.xlane.xlu0 %2459 }
 0xd6d   : > { %v2464_v41 = vmul.f32 0.03125, %v2460_v40 }
 0xd6f   : > { %v2466_v42 = vadd.f32 1e-05, %v2464_v41 }
 0xd70   : > { %v2463_v43 = vpop.xlane.xlu0 %2462 }
 0xd71   : > { %3468 = vrsqrt.f32 %v2466_v42  ;;  %v2465_v46 = vmul.f32 0.03125, %v2463_v43 }
 0xd73   : > { %v2467_v44 = vadd.f32 1e-05, %v2465_v46 }
 0xd75   : > { %3470 = vrsqrt.f32 %v2467_v44 }
 0xd7b   : > { %v3469_v45 = vpop.eup %3468 }
 0xd7c   : > { %v2470_v49 = vmul.f32 %v3469_v45, %v2454_v30 }
 0xd7e   : > { %v2478_v50 = vmul.f32 %v2883_v51, %v2470_v49 }
 0xd7f   : > { %v3471_v52 = vpop.eup %3470 }
 0xd80   : > { %v2471_v54 = vmul.f32 %v3471_v52, %v2455_v32  ;;  %v2486_v3 = vadd.f32 %v2884_v55, %v2478_v50 }
 0xd82   : > { %v2479_v57 = vmul.f32 %v2883_v51, %v2471_v54 }
 0xd84   : > { %v2487_v59 = vadd.f32 %v2884_v55, %v2479_v57 }
 0xd86   : > { %v2488_v60 = vpack.c.bf16 %v2487_v59, %v2486_v3 }
 0xd88   : > { %3156 = vmatmul.mubr.msk.bf16.vlgmr.msra.gmra.mrb[20].mxu1 %vm769_vm0, %v2488_v60 }
 0xe5b   : > { %v2549_v0 = vpop.f32.mrb[20].mxu1 }
 0xe5c   : > { %v2550_v53 = vadd.f32 %v2885_v63, %v2549_v0  ;;  %v3157_v1 = vpop.f32.mrb[21].mxu1 }
 0xe5d   : > { %v2552_v2 = vpop.f32.mrb[22].mxu1 }
 0xe5e   : > { %v2553_v4 = vadd.f32 %v2885_v63, %v2552_v2  ;;  %v3158_v6 = vpop.f32.mrb[23].mxu1  ;;  %v2556_v7 = vmax.f32 %v2550_v53, 0.0 }
 0xe60   : > { %v2557_v21 = vmax.f32 %v2553_v4, 0.0 }
 0xe62   : > { %v2558_v8 = vpack.c.bf16 %v2557_v21, %v2556_v7 }
 0xe64   : > { %3164 = vmatmul.mubr.msk.bf16.vlgmr.msra.gmra.mrb[24].mxu0 %vm769_vm0, %v2558_v8 }
 0xf37   : > { %v2619_v9 = vpop.f32.mrb[24].mxu0 }
 0xf38   : > { %v2620_v10 = vadd.f32 %v2889_v25, %v2619_v9  ;;  %v3165_v11 = vpop.f32.mrb[25].mxu0 }
 0xf39   : > { %v2622_v12 = vpop.f32.mrb[26].mxu0 }
 0xf3a   : > { %v2626_v14 = vadd.f32 %v2620_v10, %v4656_v48  ;;  %v2623_v31 = vadd.f32 %v2889_v25, %v2622_v12  ;;  %v3166_v16 = vpop.f32.mrb[27].mxu0 }
 0xf3c   : > { %2628 = vst.msk [vmem:[%s689_s3] sm:$0xff] %vm769_vm0, %v2626_v14  ;;  %v2627_v37 = vadd.f32 %v2623_v31, %v4659_v26 }
 0xf3e   : > { %2629 = vst.msk [vmem:[%s689_s3 + $0x8] sm:$0xff] %vm769_vm0, %v2627_v37 }
 0xf3f   : > { %3797 = shalt.err (!%p3794_p12)
}
 0xf40   : > { %s3798_s17 = scalar_lea.hbm %s4695_s14, 256  ;;  %s3802_s18 = scalar_lea.hbm %s4824_s7, 512 }
 0xf41   : > { %p3799_p13 = scmp.ne.s32.totalorder %s4695_s14, %s3798_s17  ;;  %p3803_p2 = scmp.lt.u32.totalorder %s4695_s14, %s4824_s7 }
 0xf42   : > { %p3804_p6 = scmp.lt.u32.totalorder %s3802_s18, %s3798_s17  ;;  %p3806_p5 = scmp.lt.u32.totalorder %s3798_s17, %s4695_s14 }
 0xf43   : > { %p3800_p1 = pnand %p3799_p13, %p4825_p9 }
 0xf44   : > { %p3805_p10 = por %p3804_p6, %p3803_p2 }
 0xf45   : > { %p3801_p3 = pneg %p3800_p1 }
 0xf46   : > { %p3807_p0 = por %p3806_p5, %p3805_p10 }
 0xf48   : > { %p3808_p7 = pnand %p3807_p0, %p3801_p3 }
 0xf4a   : > { %3811 = shalt.err (!%p3808_p7)
}
 0xf4b   : > { %s3900_s28 = smov 128  }
 0xf4c   : > { %3303 = dma.vmem_to_hbm [thread:$0]  (%p4825_p9), %s4699_s5, 256, %s4695_s14, %s2631_s27, %s3900_s28, %s3900_s28, %s3896_s6  }
 0xf4d PF: > { %s2659_s4 = sand.u32 1, %s3862_s21   ;;  %p4826_p11 = scmp.ne.s32.totalorder %s4800_s12, 0 }
 0xf4e   : > { %p4827_p8 = scmp.ge.s32.totalorder %s3874_s24, 2  ;;  %s2660_s15 = scalar_lea.sflag [#allocation4], %s2659_s4 }
 0xf50   : > { %p3341_p4 = pnand %p4827_p8, %p4826_p11 }
 0xf52   : > { %3857 = dma.done.wait (!%p3341_p4), %s2660_s15, 256  }
 0xf53   : > { %3859 = vsyncadd (!%p3341_p4), %s2660_s15, 4294967040  ;;  %p36_p12 = scmp.ge.s32.totalorder %s4222_s0, 4   ;;  %s4828_s21 = smov %s3866_s22 }
 0xf54   : > { %s4829_s22 = smov %s3870_s23  ;;  %s4830_s23 = smov %s4234_s30 }
 0xf55   : > { %s4831_s24 = smov %s4222_s0  ;;  %38 = sbr.rel (!%p36_p12) target bundleno = 25 (0x19), region = 178 }
 0xf5c   :  { %2665 = vsyncpa [#allocation3], 1 }
 0xf5d   :  { %2667 = vsyncpa [#allocation3 + $0x1], 1 }
 0xf5e   :  { %2668 = vsyncpa [#allocation6], 1 }
 0xf5f   :  { %2670 = vsyncpa [#allocation6 + $0x1], 1 }
 0xf60   :  { %2671 = vsyncpa [#allocation9], 1 }
 0xf61   :  { %2672 = vsyncpa [#allocation12], 1 }
 0xf62   :  { %2673 = vsyncpa [#allocation15], 1 }
 0xf63   :  { %2674 = vsyncpa [#allocation18], 1 }
 0xf64   :  { %2675 = vsyncpa [#allocation4], 1 }
 0xf65   :  { %2677 = vsyncpa [#allocation4 + $0x1], 1 }

</bundles_post_ra>
